<compile_context>
chip_gen: v7x
topology: tpu7x:2x2x1
jax: 0.10.0
libtpu: 0.0.40
codegen_flags: <defaults>
</compile_context>

<pallas_src>
import functools

import jax
import jax.numpy as jnp
from jax.experimental import pallas as pl
from jax.experimental.pallas import tpu as pltpu


def _round_up(n, m):
    return ((n + m - 1) // m) * m


def _device_kind():
    try:
        return jax.devices()[0].device_kind.lower()
    except Exception:
        return ""


def _res_block_kernel(x_ref, w1_ref, w2_ref, o_ref, pad_ref, col_ref, hy_ref,
                      *, H, W, C, BB, HALO, HWP):
    """Fused ResBlock forward for one chunk of BB images.

    x_ref  : (BB, C, HWP)         input images, channels-first, flat spatial
    w1_ref : (C, 9*C)             conv1 weight (bf16), row idx (dy*3+dx)*C + ci
    w2_ref : (C, 9*C)             conv2 weight (bf16), same flattening
    o_ref  : (BB, C, HWP)         output (lane-dense last dim)
    pad_ref: (C, HALO+HWP+HALO)   f32 scratch; image interior at lane offset HALO
    col_ref: (9*C, BB*HWP)        bf16 im2col scratch
    hy_ref : (C, BB*HWP)          f32 scratch; holds relu(conv1) then conv2 out
    """
    HW = H * W  # real (unpadded) spatial size; HWP >= HW, multiple of 128

    # Zero only the halo strips, once per grid step (interior is fully
    # overwritten before every conv, so no full-buffer zero fill is needed;
    # scratch is per-core so this is safe under core-parallel splitting).
    zeros_halo = jnp.zeros((C, HALO), jnp.float32)
    pad_ref[:, pl.ds(0, HALO)] = zeros_halo
    pad_ref[:, pl.ds(HALO + HWP, HALO)] = zeros_halo

    # Column masks for the +/-1 lane shifts: the flat shift wraps across image
    # rows, and those wrapped lanes correspond to out-of-bounds columns.
    lane = jax.lax.broadcasted_iota(jnp.int32, (1, HWP), 1)
    xcol = lane % W
    not_left = xcol != 0           # invalid lanes for the dx = -1 taps
    not_right = xcol != (W - 1)    # invalid lanes for the dx = +1 taps
    in_img = lane < HW             # real-pixel lanes (only matters if HWP > HW)

    def build_col(b, img):
        # img: (C, HWP) f32 value for image b of the chunk.
        if HWP != HW:
            img = jnp.where(in_img, img, 0.0)      # keep padded lanes zero
        pad_ref[:, pl.ds(HALO, HWP)] = img         # 128-aligned interior write
        for dy in range(3):
            for dx in range(3):
                t = dy * 3 + dx
                start = HALO + (dy - 1) * W + (dx - 1)
                tap = pad_ref[:, pl.ds(start, HWP)]  # contiguous lane window
                if dx == 0:
                    tap = jnp.where(not_left, tap, 0.0)
                elif dx == 2:
                    tap = jnp.where(not_right, tap, 0.0)
                col_ref[pl.ds(t * C, C), pl.ds(b * HWP, HWP)] = (
                    tap.astype(col_ref.dtype))

    # conv1: one matmul over the whole chunk (M = C, K = 9*C, N = BB*HWP),
    # ReLU fused into the scratch store (no big SSA value survives the loops).
    for b in range(BB):
        build_col(b, x_ref[b].astype(jnp.float32))
    hy_ref[...] = jnp.maximum(
        jnp.dot(w1_ref[...], col_ref[...], preferred_element_type=jnp.float32),
        0.0)

    # conv2 over relu(conv1(x)): rebuild im2col from the h scratch, then reuse
    # the same scratch for the conv2 result (h is dead once col is rebuilt).
    for b in range(BB):
        build_col(b, hy_ref[:, b * HWP:(b + 1) * HWP])
    hy_ref[...] = jnp.dot(w2_ref[...], col_ref[...],
                          preferred_element_type=jnp.float32)

    # Residual add, streamed per image; output stores are lane-dense.
    for b in range(BB):
        o_ref[b] = (x_ref[b].astype(jnp.float32)
                    + hy_ref[:, b * HWP:(b + 1) * HWP]).astype(o_ref.dtype)


def res_block(x, w1, w2, *, col_dtype=None):
    """Pallas ResBlock forward.  x: (B, C, H, W) NCHW; w1, w2: (C, C, 3, 3) OIHW."""
    B, C, H, W = x.shape
    Cout, Cin, K, _ = w1.shape
    assert K == 3 and Cin == C and Cout == C, \
        "ResBlock residual add requires in_channels == out_channels, 3x3 kernel"
    assert C % 8 == 0, "channel count must be a multiple of the sublane width"

    HW = H * W
    HWP = _round_up(HW, 128)            # lane-dense (padded) flat spatial width
    HALO = _round_up(W + 1, 128)        # zeroed strip on each side of interior
    pad_len = HALO + HWP + HALO

    # bf16 im2col/weights (f32 accumulation) when the channel count keeps the
    # packed-sublane writes aligned; otherwise fall back to f32.
    if col_dtype is None:
        col_dtype = jnp.bfloat16 if C % 16 == 0 else jnp.float32

    kind = _device_kind()
    ncores = 2 if ("v7" in kind or "7x" in kind) else 1   # v7x: 2 TCs/chip
    is_v7 = ncores == 2

    # Flatten spatial onto the lane axis (zero-pad to a multiple of 128);
    # flatten weights to (Cout, K*K*Cin) with row index (dy*K + dx)*Cin + ci.
    x_flat = x.reshape(B, C, HW)
    if HWP != HW:
        x_flat = jnp.pad(x_flat, ((0, 0), (0, 0), (0, HWP - HW)))
    w1f = jnp.transpose(w1, (0, 2, 3, 1)).reshape(C, K * K * C).astype(col_dtype)
    w2f = jnp.transpose(w2, (0, 2, 3, 1)).reshape(C, K * K * C).astype(col_dtype)

    xb = jnp.dtype(x.dtype).itemsize
    cb = jnp.dtype(col_dtype).itemsize

    def vmem_usage(bb):
        col = 9 * C * bb * HWP * cb            # col_ref
        pad = C * pad_len * 4                  # pad_ref
        hy = C * bb * HWP * 4                  # hy_ref
        io = 2 * 2 * bb * C * HWP * xb         # double-buffered in + out blocks
        wts = 2 * 2 * C * 9 * C * cb           # double-buffered weights
        return col + pad + hy + io + wts

    # Pick the smallest number of grid steps (largest BB / matmul N) that fits
    # the VMEM budget; on v7x prefer a step count the 2 TCs can split.
    budget = (24 << 20) if is_v7 else (96 << 20)
    divisors = [d for d in range(1, B + 1) if B % d == 0]
    fitting = [d for d in divisors if vmem_usage(B // d) <= budget]
    if fitting:
        pref = [d for d in fitting if d % ncores == 0]
        num_steps = min(pref) if pref else min(fitting)
    else:
        num_steps = B                           # best effort: BB = 1
    BB = B // num_steps

    vmem_limit = int(min((60 << 20) if is_v7 else (126 << 20),
                         max(2 * vmem_usage(BB) + (4 << 20), 32 << 20)))

    if ncores == 2 and num_steps % 2 == 0:
        dim_sem = (pltpu.CORE_PARALLEL,)        # split the batch axis across TCs
    else:
        dim_sem = (pltpu.PARALLEL,)

    flops = 2 * 2 * B * C * HW * (9 * C)        # two convs, 2 flops per MAC
    bytes_accessed = 2 * B * C * HW * xb + 2 * 9 * C * C * cb
    cost = pl.CostEstimate(flops=flops, transcendentals=0,
                           bytes_accessed=bytes_accessed)

    kern = functools.partial(_res_block_kernel, H=H, W=W, C=C, BB=BB,
                             HALO=HALO, HWP=HWP)
    out_flat = pl.pallas_call(
        kern,
        grid=(num_steps,),
        in_specs=[pl.BlockSpec((BB, C, HWP), lambda i: (i, 0, 0)),
                  pl.BlockSpec((C, K * K * C), lambda i: (0, 0)),
                  pl.BlockSpec((C, K * K * C), lambda i: (0, 0))],
        out_specs=pl.BlockSpec((BB, C, HWP), lambda i: (i, 0, 0)),
        out_shape=jax.ShapeDtypeStruct((B, C, HWP), x.dtype),
        scratch_shapes=[pltpu.VMEM((C, pad_len), jnp.float32),
                        pltpu.VMEM((K * K * C, BB * HWP), col_dtype),
                        pltpu.VMEM((C, BB * HWP), jnp.float32)],
        compiler_params=pltpu.CompilerParams(
            dimension_semantics=dim_sem,
            vmem_limit_bytes=vmem_limit),
        cost_estimate=cost,
    )(x_flat, w1f, w2f)

    if HWP != HW:
        out_flat = out_flat[:, :, :HW]
    return out_flat.reshape(B, C, H, W)


# ---------------- pure-JAX references (for correctness check) ----------------

def _conv(a, w):
    return jax.lax.conv_general_dilated(
        a, w, window_strides=(1, 1), padding=((1, 1), (1, 1)),
        dimension_numbers=("NCHW", "OIHW", "NCHW"),
        precision=jax.lax.Precision.HIGHEST)


def res_block_ref(x, w1, w2):
    return x + _conv(jax.nn.relu(_conv(x, w1)), w2)


def res_block_ref_bf16(x, w1, w2):
    # Mirrors the kernel's numerics: bf16 MXU operands, f32 accumulation.
    q = lambda a: a.astype(jnp.bfloat16).astype(jnp.float32)
    h = jax.nn.relu(_conv(q(x), q(w1)))
    return x + _conv(q(h), q(w2))


# ---------------------------------- main ------------------------------------

if __name__ == "__main__":
    B, C, H, W = 2, 32, 16, 16          # in_channels == out_channels == 32

    key = jax.random.PRNGKey(0)
    kx, k1, k2 = jax.random.split(key, 3)
    fan_in = C * 3 * 3
    w1 = jax.random.normal(k1, (C, C, 3, 3), jnp.float32) / jnp.sqrt(fan_in)
    w2 = jax.random.normal(k2, (C, C, 3, 3), jnp.float32) / jnp.sqrt(fan_in)
    x = jax.random.normal(kx, (B, C, H, W), jnp.float32)

    out = jax.block_until_ready(res_block(x, w1, w2))

    ref_f = res_block_ref(x, w1, w2)          # full-f32 reference
    ref_q = res_block_ref_bf16(x, w1, w2)     # same operand precision as kernel
    assert out.shape == ref_f.shape, f"shape mismatch {out.shape} vs {ref_f.shape}"

    err_q = float(jnp.max(jnp.abs(out - ref_q)))
    err_f = float(jnp.max(jnp.abs(out - ref_f)))
    # Tight check against the matched-precision reference (kernel logic),
    # looser check against the f32 reference (bf16 MXU operand rounding).
    assert err_q < 2e-3, f"kernel vs bf16-operand reference: max abs err {err_q}"
    assert err_f < 5e-2, f"kernel vs f32 reference: max abs err {err_f}"

    print("KERNEL_OK")
</pallas_src>

<mosaic_0001>
module attributes {stable_mosaic.version = 11 : i64} {
  func.func @_res_block_kernel(%arg0: i32, %arg1: memref<2x32x256xf32, #tpu.memory_space<vmem>>, %arg2: memref<32x288xbf16, #tpu.memory_space<vmem>>, %arg3: memref<32x288xbf16, #tpu.memory_space<vmem>>, %arg4: memref<2x32x256xf32, #tpu.memory_space<vmem>>, %arg5: memref<32x512xf32, #tpu.memory_space<vmem>>, %arg6: memref<288x512xbf16, #tpu.memory_space<vmem>>, %arg7: memref<32x512xf32, #tpu.memory_space<vmem>>) attributes {dimension_semantics = [#tpu.dimension_semantics<parallel>], iteration_bounds = array<i64: 1>, scalar_prefetch = 0 : i64, scratch_operands = 3 : i64, tpu.core_type = #tpu.core_type<tc>, window_params = [{transform_indices = @transform_0, window_bounds = array<i64: 2, 32, 256>}, {pipeline_mode = #tpu.pipeline_mode<synchronous>, transform_indices = @transform_1, window_bounds = array<i64: 32, 288>}, {pipeline_mode = #tpu.pipeline_mode<synchronous>, transform_indices = @transform_2, window_bounds = array<i64: 32, 288>}, {transform_indices = @transform_3, window_bounds = array<i64: 2, 32, 256>}]} {
    %cst = arith.constant 0.000000e+00 : f32
    %0 = vector.broadcast %cst : f32 to vector<32x128xf32>
    %c0 = arith.constant 0 : index
    %c0_0 = arith.constant 0 : index
    %1 = vector.load %arg5[%c0, %c0_0] : memref<32x512xf32, #tpu.memory_space<vmem>>, vector<32x128xf32>
    tpu.vector_store %arg5[%c0, %c0_0], %0 {strides = array<i32>} : memref<32x512xf32, #tpu.memory_space<vmem>>, vector<32x128xf32>,
    %c0_1 = arith.constant 0 : index
    %c384 = arith.constant 384 : index
    %2 = vector.load %arg5[%c0_1, %c384] : memref<32x512xf32, #tpu.memory_space<vmem>>, vector<32x128xf32>
    tpu.vector_store %arg5[%c0_1, %c384], %0 {strides = array<i32>} : memref<32x512xf32, #tpu.memory_space<vmem>>, vector<32x128xf32>,
    %3 = tpu.iota {dimensions = array<i32: 1>} : vector<1x256xi32>
    %c16_i32 = arith.constant 16 : i32
    %c0_i32 = arith.constant 0 : i32
    %4 = arith.cmpi eq, %c16_i32, %c0_i32 : i32
    %c1_i32 = arith.constant 1 : i32
    %5 = arith.select %4, %c1_i32, %c16_i32 : i32
    %6 = vector.broadcast %5 : i32 to vector<1x256xi32>
    %7 = arith.remsi %3, %6 : vector<1x256xi32>
    %c0_i32_2 = arith.constant 0 : i32
    %8 = vector.broadcast %c0_i32_2 : i32 to vector<1x256xi32>
    %9 = arith.cmpi ne, %7, %8 : vector<1x256xi32>
    %c0_i32_3 = arith.constant 0 : i32
    %10 = vector.broadcast %c0_i32_3 : i32 to vector<1x256xi32>
    %11 = arith.cmpi slt, %7, %10 : vector<1x256xi32>
    %c0_i32_4 = arith.constant 0 : i32
    %12 = arith.cmpi slt, %5, %c0_i32_4 : i32
    %13 = vector.broadcast %12 : i1 to vector<1x256xi1>
    %14 = vector.broadcast %13 : vector<1x256xi1> to vector<1x256xi1>
    %15 = arith.xori %11, %14 : vector<1x256xi1>
    %16 = arith.andi %15, %9 : vector<1x256xi1>
    %17 = vector.broadcast %5 : i32 to vector<1x256xi32>
    %18 = arith.addi %7, %17 : vector<1x256xi32>
    %19 = arith.select %16, %18, %7 : vector<1x256xi1>, vector<1x256xi32>
    %c0_i32_5 = arith.constant 0 : i32
    %20 = vector.broadcast %c0_i32_5 : i32 to vector<1x256xi32>
    %21 = arith.cmpi ne, %19, %20 : vector<1x256xi32>
    %c15_i32 = arith.constant 15 : i32
    %22 = vector.broadcast %c15_i32 : i32 to vector<1x256xi32>
    %23 = arith.cmpi ne, %19, %22 : vector<1x256xi32>
    %c0_6 = arith.constant 0 : index
    %c0_7 = arith.constant 0 : index
    %c0_8 = arith.constant 0 : index
    %24 = vector.load %arg1[%c0_6, %c0_7, %c0_8] : memref<2x32x256xf32, #tpu.memory_space<vmem>>, vector<1x32x256xf32>
    %25 = vector.shape_cast %24 : vector<1x32x256xf32> to vector<32x256xf32>
    %c0_9 = arith.constant 0 : index
    %c128 = arith.constant 128 : index
    %26 = vector.load %arg5[%c0_9, %c128] : memref<32x512xf32, #tpu.memory_space<vmem>>, vector<32x256xf32>
    tpu.vector_store %arg5[%c0_9, %c128], %25 {strides = array<i32>} : memref<32x512xf32, #tpu.memory_space<vmem>>, vector<32x256xf32>,
    %c0_10 = arith.constant 0 : index
    %c111 = arith.constant 111 : index
    %27 = vector.load %arg5[%c0_10, %c111] : memref<32x512xf32, #tpu.memory_space<vmem>>, vector<32x256xf32>
    %cst_11 = arith.constant 0.000000e+00 : f32
    %28 = vector.shape_cast %21 : vector<1x256xi1> to vector<1x256xi1>
    %29 = vector.broadcast %28 : vector<1x256xi1> to vector<32x256xi1>
    %30 = vector.broadcast %cst_11 : f32 to vector<32x256xf32>
    %31 = arith.select %29, %27, %30 : vector<32x256xi1>, vector<32x256xf32>
    %32 = arith.truncf %31 : vector<32x256xf32> to vector<32x256xbf16>
    %c0_12 = arith.constant 0 : index
    %c0_13 = arith.constant 0 : index
    %33 = vector.load %arg6[%c0_12, %c0_13] : memref<288x512xbf16, #tpu.memory_space<vmem>>, vector<32x256xbf16>
    tpu.vector_store %arg6[%c0_12, %c0_13], %32 {strides = array<i32>} : memref<288x512xbf16, #tpu.memory_space<vmem>>, vector<32x256xbf16>,
    %c0_14 = arith.constant 0 : index
    %c112 = arith.constant 112 : index
    %34 = vector.load %arg5[%c0_14, %c112] : memref<32x512xf32, #tpu.memory_space<vmem>>, vector<32x256xf32>
    %35 = arith.truncf %34 : vector<32x256xf32> to vector<32x256xbf16>
    %c32 = arith.constant 32 : index
    %c0_15 = arith.constant 0 : index
    %36 = vector.load %arg6[%c32, %c0_15] : memref<288x512xbf16, #tpu.memory_space<vmem>>, vector<32x256xbf16>
    tpu.vector_store %arg6[%c32, %c0_15], %35 {strides = array<i32>} : memref<288x512xbf16, #tpu.memory_space<vmem>>, vector<32x256xbf16>,
    %c0_16 = arith.constant 0 : index
    %c113 = arith.constant 113 : index
    %37 = vector.load %arg5[%c0_16, %c113] : memref<32x512xf32, #tpu.memory_space<vmem>>, vector<32x256xf32>
    %cst_17 = arith.constant 0.000000e+00 : f32
    %38 = vector.shape_cast %23 : vector<1x256xi1> to vector<1x256xi1>
    %39 = vector.broadcast %38 : vector<1x256xi1> to vector<32x256xi1>
    %40 = vector.broadcast %cst_17 : f32 to vector<32x256xf32>
    %41 = arith.select %39, %37, %40 : vector<32x256xi1>, vector<32x256xf32>
    %42 = arith.truncf %41 : vector<32x256xf32> to vector<32x256xbf16>
    %c64 = arith.constant 64 : index
    %c0_18 = arith.constant 0 : index
    %43 = vector.load %arg6[%c64, %c0_18] : memref<288x512xbf16, #tpu.memory_space<vmem>>, vector<32x256xbf16>
    tpu.vector_store %arg6[%c64, %c0_18], %42 {strides = array<i32>} : memref<288x512xbf16, #tpu.memory_space<vmem>>, vector<32x256xbf16>,
    %c0_19 = arith.constant 0 : index
    %c127 = arith.constant 127 : index
    %44 = vector.load %arg5[%c0_19, %c127] : memref<32x512xf32, #tpu.memory_space<vmem>>, vector<32x256xf32>
    %cst_20 = arith.constant 0.000000e+00 : f32
    %45 = vector.shape_cast %21 : vector<1x256xi1> to vector<1x256xi1>
    %46 = vector.broadcast %45 : vector<1x256xi1> to vector<32x256xi1>
    %47 = vector.broadcast %cst_20 : f32 to vector<32x256xf32>
    %48 = arith.select %46, %44, %47 : vector<32x256xi1>, vector<32x256xf32>
    %49 = arith.truncf %48 : vector<32x256xf32> to vector<32x256xbf16>
    %c96 = arith.constant 96 : index
    %c0_21 = arith.constant 0 : index
    %50 = vector.load %arg6[%c96, %c0_21] : memref<288x512xbf16, #tpu.memory_space<vmem>>, vector<32x256xbf16>
    tpu.vector_store %arg6[%c96, %c0_21], %49 {strides = array<i32>} : memref<288x512xbf16, #tpu.memory_space<vmem>>, vector<32x256xbf16>,
    %c0_22 = arith.constant 0 : index
    %c128_23 = arith.constant 128 : index
    %51 = vector.load %arg5[%c0_22, %c128_23] : memref<32x512xf32, #tpu.memory_space<vmem>>, vector<32x256xf32>
    %52 = arith.truncf %51 : vector<32x256xf32> to vector<32x256xbf16>
    %c128_24 = arith.constant 128 : index
    %c0_25 = arith.constant 0 : index
    %53 = vector.load %arg6[%c128_24, %c0_25] : memref<288x512xbf16, #tpu.memory_space<vmem>>, vector<32x256xbf16>
    tpu.vector_store %arg6[%c128_24, %c0_25], %52 {strides = array<i32>} : memref<288x512xbf16, #tpu.memory_space<vmem>>, vector<32x256xbf16>,
    %c0_26 = arith.constant 0 : index
    %c129 = arith.constant 129 : index
    %54 = vector.load %arg5[%c0_26, %c129] : memref<32x512xf32, #tpu.memory_space<vmem>>, vector<32x256xf32>
    %cst_27 = arith.constant 0.000000e+00 : f32
    %55 = vector.shape_cast %23 : vector<1x256xi1> to vector<1x256xi1>
    %56 = vector.broadcast %55 : vector<1x256xi1> to vector<32x256xi1>
    %57 = vector.broadcast %cst_27 : f32 to vector<32x256xf32>
    %58 = arith.select %56, %54, %57 : vector<32x256xi1>, vector<32x256xf32>
    %59 = arith.truncf %58 : vector<32x256xf32> to vector<32x256xbf16>
    %c160 = arith.constant 160 : index
    %c0_28 = arith.constant 0 : index
    %60 = vector.load %arg6[%c160, %c0_28] : memref<288x512xbf16, #tpu.memory_space<vmem>>, vector<32x256xbf16>
    tpu.vector_store %arg6[%c160, %c0_28], %59 {strides = array<i32>} : memref<288x512xbf16, #tpu.memory_space<vmem>>, vector<32x256xbf16>,
    %c0_29 = arith.constant 0 : index
    %c143 = arith.constant 143 : index
    %61 = vector.load %arg5[%c0_29, %c143] : memref<32x512xf32, #tpu.memory_space<vmem>>, vector<32x256xf32>
    %cst_30 = arith.constant 0.000000e+00 : f32
    %62 = vector.shape_cast %21 : vector<1x256xi1> to vector<1x256xi1>
    %63 = vector.broadcast %62 : vector<1x256xi1> to vector<32x256xi1>
    %64 = vector.broadcast %cst_30 : f32 to vector<32x256xf32>
    %65 = arith.select %63, %61, %64 : vector<32x256xi1>, vector<32x256xf32>
    %66 = arith.truncf %65 : vector<32x256xf32> to vector<32x256xbf16>
    %c192 = arith.constant 192 : index
    %c0_31 = arith.constant 0 : index
    %67 = vector.load %arg6[%c192, %c0_31] : memref<288x512xbf16, #tpu.memory_space<vmem>>, vector<32x256xbf16>
    tpu.vector_store %arg6[%c192, %c0_31], %66 {strides = array<i32>} : memref<288x512xbf16, #tpu.memory_space<vmem>>, vector<32x256xbf16>,
    %c0_32 = arith.constant 0 : index
    %c144 = arith.constant 144 : index
    %68 = vector.load %arg5[%c0_32, %c144] : memref<32x512xf32, #tpu.memory_space<vmem>>, vector<32x256xf32>
    %69 = arith.truncf %68 : vector<32x256xf32> to vector<32x256xbf16>
    %c224 = arith.constant 224 : index
    %c0_33 = arith.constant 0 : index
    %70 = vector.load %arg6[%c224, %c0_33] : memref<288x512xbf16, #tpu.memory_space<vmem>>, vector<32x256xbf16>
    tpu.vector_store %arg6[%c224, %c0_33], %69 {strides = array<i32>} : memref<288x512xbf16, #tpu.memory_space<vmem>>, vector<32x256xbf16>,
    %c0_34 = arith.constant 0 : index
    %c145 = arith.constant 145 : index
    %71 = vector.load %arg5[%c0_34, %c145] : memref<32x512xf32, #tpu.memory_space<vmem>>, vector<32x256xf32>
    %cst_35 = arith.constant 0.000000e+00 : f32
    %72 = vector.shape_cast %23 : vector<1x256xi1> to vector<1x256xi1>
    %73 = vector.broadcast %72 : vector<1x256xi1> to vector<32x256xi1>
    %74 = vector.broadcast %cst_35 : f32 to vector<32x256xf32>
    %75 = arith.select %73, %71, %74 : vector<32x256xi1>, vector<32x256xf32>
    %76 = arith.truncf %75 : vector<32x256xf32> to vector<32x256xbf16>
    %c256 = arith.constant 256 : index
    %c0_36 = arith.constant 0 : index
    %77 = vector.load %arg6[%c256, %c0_36] : memref<288x512xbf16, #tpu.memory_space<vmem>>, vector<32x256xbf16>
    tpu.vector_store %arg6[%c256, %c0_36], %76 {strides = array<i32>} : memref<288x512xbf16, #tpu.memory_space<vmem>>, vector<32x256xbf16>,
    %c1 = arith.constant 1 : index
    %c0_37 = arith.constant 0 : index
    %c0_38 = arith.constant 0 : index
    %78 = vector.load %arg1[%c1, %c0_37, %c0_38] : memref<2x32x256xf32, #tpu.memory_space<vmem>>, vector<1x32x256xf32>
    %79 = vector.shape_cast %78 : vector<1x32x256xf32> to vector<32x256xf32>
    %c0_39 = arith.constant 0 : index
    %c128_40 = arith.constant 128 : index
    %80 = vector.load %arg5[%c0_39, %c128_40] : memref<32x512xf32, #tpu.memory_space<vmem>>, vector<32x256xf32>
    tpu.vector_store %arg5[%c0_39, %c128_40], %79 {strides = array<i32>} : memref<32x512xf32, #tpu.memory_space<vmem>>, vector<32x256xf32>,
    %c0_41 = arith.constant 0 : index
    %c111_42 = arith.constant 111 : index
    %81 = vector.load %arg5[%c0_41, %c111_42] : memref<32x512xf32, #tpu.memory_space<vmem>>, vector<32x256xf32>
    %cst_43 = arith.constant 0.000000e+00 : f32
    %82 = vector.shape_cast %21 : vector<1x256xi1> to vector<1x256xi1>
    %83 = vector.broadcast %82 : vector<1x256xi1> to vector<32x256xi1>
    %84 = vector.broadcast %cst_43 : f32 to vector<32x256xf32>
    %85 = arith.select %83, %81, %84 : vector<32x256xi1>, vector<32x256xf32>
    %86 = arith.truncf %85 : vector<32x256xf32> to vector<32x256xbf16>
    %c0_44 = arith.constant 0 : index
    %c256_45 = arith.constant 256 : index
    %87 = vector.load %arg6[%c0_44, %c256_45] : memref<288x512xbf16, #tpu.memory_space<vmem>>, vector<32x256xbf16>
    tpu.vector_store %arg6[%c0_44, %c256_45], %86 {strides = array<i32>} : memref<288x512xbf16, #tpu.memory_space<vmem>>, vector<32x256xbf16>,
    %c0_46 = arith.constant 0 : index
    %c112_47 = arith.constant 112 : index
    %88 = vector.load %arg5[%c0_46, %c112_47] : memref<32x512xf32, #tpu.memory_space<vmem>>, vector<32x256xf32>
    %89 = arith.truncf %88 : vector<32x256xf32> to vector<32x256xbf16>
    %c32_48 = arith.constant 32 : index
    %c256_49 = arith.constant 256 : index
    %90 = vector.load %arg6[%c32_48, %c256_49] : memref<288x512xbf16, #tpu.memory_space<vmem>>, vector<32x256xbf16>
    tpu.vector_store %arg6[%c32_48, %c256_49], %89 {strides = array<i32>} : memref<288x512xbf16, #tpu.memory_space<vmem>>, vector<32x256xbf16>,
    %c0_50 = arith.constant 0 : index
    %c113_51 = arith.constant 113 : index
    %91 = vector.load %arg5[%c0_50, %c113_51] : memref<32x512xf32, #tpu.memory_space<vmem>>, vector<32x256xf32>
    %cst_52 = arith.constant 0.000000e+00 : f32
    %92 = vector.shape_cast %23 : vector<1x256xi1> to vector<1x256xi1>
    %93 = vector.broadcast %92 : vector<1x256xi1> to vector<32x256xi1>
    %94 = vector.broadcast %cst_52 : f32 to vector<32x256xf32>
    %95 = arith.select %93, %91, %94 : vector<32x256xi1>, vector<32x256xf32>
    %96 = arith.truncf %95 : vector<32x256xf32> to vector<32x256xbf16>
    %c64_53 = arith.constant 64 : index
    %c256_54 = arith.constant 256 : index
    %97 = vector.load %arg6[%c64_53, %c256_54] : memref<288x512xbf16, #tpu.memory_space<vmem>>, vector<32x256xbf16>
    tpu.vector_store %arg6[%c64_53, %c256_54], %96 {strides = array<i32>} : memref<288x512xbf16, #tpu.memory_space<vmem>>, vector<32x256xbf16>,
    %c0_55 = arith.constant 0 : index
    %c127_56 = arith.constant 127 : index
    %98 = vector.load %arg5[%c0_55, %c127_56] : memref<32x512xf32, #tpu.memory_space<vmem>>, vector<32x256xf32>
    %cst_57 = arith.constant 0.000000e+00 : f32
    %99 = vector.shape_cast %21 : vector<1x256xi1> to vector<1x256xi1>
    %100 = vector.broadcast %99 : vector<1x256xi1> to vector<32x256xi1>
    %101 = vector.broadcast %cst_57 : f32 to vector<32x256xf32>
    %102 = arith.select %100, %98, %101 : vector<32x256xi1>, vector<32x256xf32>
    %103 = arith.truncf %102 : vector<32x256xf32> to vector<32x256xbf16>
    %c96_58 = arith.constant 96 : index
    %c256_59 = arith.constant 256 : index
    %104 = vector.load %arg6[%c96_58, %c256_59] : memref<288x512xbf16, #tpu.memory_space<vmem>>, vector<32x256xbf16>
    tpu.vector_store %arg6[%c96_58, %c256_59], %103 {strides = array<i32>} : memref<288x512xbf16, #tpu.memory_space<vmem>>, vector<32x256xbf16>,
    %c0_60 = arith.constant 0 : index
    %c128_61 = arith.constant 128 : index
    %105 = vector.load %arg5[%c0_60, %c128_61] : memref<32x512xf32, #tpu.memory_space<vmem>>, vector<32x256xf32>
    %106 = arith.truncf %105 : vector<32x256xf32> to vector<32x256xbf16>
    %c128_62 = arith.constant 128 : index
    %c256_63 = arith.constant 256 : index
    %107 = vector.load %arg6[%c128_62, %c256_63] : memref<288x512xbf16, #tpu.memory_space<vmem>>, vector<32x256xbf16>
    tpu.vector_store %arg6[%c128_62, %c256_63], %106 {strides = array<i32>} : memref<288x512xbf16, #tpu.memory_space<vmem>>, vector<32x256xbf16>,
    %c0_64 = arith.constant 0 : index
    %c129_65 = arith.constant 129 : index
    %108 = vector.load %arg5[%c0_64, %c129_65] : memref<32x512xf32, #tpu.memory_space<vmem>>, vector<32x256xf32>
    %cst_66 = arith.constant 0.000000e+00 : f32
    %109 = vector.shape_cast %23 : vector<1x256xi1> to vector<1x256xi1>
    %110 = vector.broadcast %109 : vector<1x256xi1> to vector<32x256xi1>
    %111 = vector.broadcast %cst_66 : f32 to vector<32x256xf32>
    %112 = arith.select %110, %108, %111 : vector<32x256xi1>, vector<32x256xf32>
    %113 = arith.truncf %112 : vector<32x256xf32> to vector<32x256xbf16>
    %c160_67 = arith.constant 160 : index
    %c256_68 = arith.constant 256 : index
    %114 = vector.load %arg6[%c160_67, %c256_68] : memref<288x512xbf16, #tpu.memory_space<vmem>>, vector<32x256xbf16>
    tpu.vector_store %arg6[%c160_67, %c256_68], %113 {strides = array<i32>} : memref<288x512xbf16, #tpu.memory_space<vmem>>, vector<32x256xbf16>,
    %c0_69 = arith.constant 0 : index
    %c143_70 = arith.constant 143 : index
    %115 = vector.load %arg5[%c0_69, %c143_70] : memref<32x512xf32, #tpu.memory_space<vmem>>, vector<32x256xf32>
    %cst_71 = arith.constant 0.000000e+00 : f32
    %116 = vector.shape_cast %21 : vector<1x256xi1> to vector<1x256xi1>
    %117 = vector.broadcast %116 : vector<1x256xi1> to vector<32x256xi1>
    %118 = vector.broadcast %cst_71 : f32 to vector<32x256xf32>
    %119 = arith.select %117, %115, %118 : vector<32x256xi1>, vector<32x256xf32>
    %120 = arith.truncf %119 : vector<32x256xf32> to vector<32x256xbf16>
    %c192_72 = arith.constant 192 : index
    %c256_73 = arith.constant 256 : index
    %121 = vector.load %arg6[%c192_72, %c256_73] : memref<288x512xbf16, #tpu.memory_space<vmem>>, vector<32x256xbf16>
    tpu.vector_store %arg6[%c192_72, %c256_73], %120 {strides = array<i32>} : memref<288x512xbf16, #tpu.memory_space<vmem>>, vector<32x256xbf16>,
    %c0_74 = arith.constant 0 : index
    %c144_75 = arith.constant 144 : index
    %122 = vector.load %arg5[%c0_74, %c144_75] : memref<32x512xf32, #tpu.memory_space<vmem>>, vector<32x256xf32>
    %123 = arith.truncf %122 : vector<32x256xf32> to vector<32x256xbf16>
    %c224_76 = arith.constant 224 : index
    %c256_77 = arith.constant 256 : index
    %124 = vector.load %arg6[%c224_76, %c256_77] : memref<288x512xbf16, #tpu.memory_space<vmem>>, vector<32x256xbf16>
    tpu.vector_store %arg6[%c224_76, %c256_77], %123 {strides = array<i32>} : memref<288x512xbf16, #tpu.memory_space<vmem>>, vector<32x256xbf16>,
    %c0_78 = arith.constant 0 : index
    %c145_79 = arith.constant 145 : index
    %125 = vector.load %arg5[%c0_78, %c145_79] : memref<32x512xf32, #tpu.memory_space<vmem>>, vector<32x256xf32>
    %cst_80 = arith.constant 0.000000e+00 : f32
    %126 = vector.shape_cast %23 : vector<1x256xi1> to vector<1x256xi1>
    %127 = vector.broadcast %126 : vector<1x256xi1> to vector<32x256xi1>
    %128 = vector.broadcast %cst_80 : f32 to vector<32x256xf32>
    %129 = arith.select %127, %125, %128 : vector<32x256xi1>, vector<32x256xf32>
    %130 = arith.truncf %129 : vector<32x256xf32> to vector<32x256xbf16>
    %c256_81 = arith.constant 256 : index
    %c256_82 = arith.constant 256 : index
    %131 = vector.load %arg6[%c256_81, %c256_82] : memref<288x512xbf16, #tpu.memory_space<vmem>>, vector<32x256xbf16>
    tpu.vector_store %arg6[%c256_81, %c256_82], %130 {strides = array<i32>} : memref<288x512xbf16, #tpu.memory_space<vmem>>, vector<32x256xbf16>,
    %c0_83 = arith.constant 0 : index
    %c0_84 = arith.constant 0 : index
    %132 = vector.load %arg2[%c0_83, %c0_84] : memref<32x288xbf16, #tpu.memory_space<vmem>>, vector<32x288xbf16>
    %c0_85 = arith.constant 0 : index
    %c0_86 = arith.constant 0 : index
    %133 = vector.load %arg6[%c0_85, %c0_86] : memref<288x512xbf16, #tpu.memory_space<vmem>>, vector<288x512xbf16>
    %cst_87 = arith.constant dense<0.000000e+00> : vector<32x512xf32>
    %134 = tpu.matmul %132, %133, %cst_87 {dimension_numbers = #tpu.dot_dimension_numbers<[1], [0], [0], [1], [0, 0, 1, 1], [], []>} : vector<32x288xbf16>, vector<288x512xbf16>, vector<32x512xf32> -> vector<32x512xf32>
    %cst_88 = arith.constant 0.000000e+00 : f32
    %135 = vector.broadcast %cst_88 : f32 to vector<32x512xf32>
    %136 = arith.maximumf %134, %135 : vector<32x512xf32>
    %c0_89 = arith.constant 0 : index
    %c0_90 = arith.constant 0 : index
    %137 = vector.load %arg7[%c0_89, %c0_90] : memref<32x512xf32, #tpu.memory_space<vmem>>, vector<32x512xf32>
    tpu.vector_store %arg7[%c0_89, %c0_90], %136 {strides = array<i32>} : memref<32x512xf32, #tpu.memory_space<vmem>>, vector<32x512xf32>,
    %c0_91 = arith.constant 0 : index
    %c0_92 = arith.constant 0 : index
    %138 = vector.load %arg7[%c0_91, %c0_92] : memref<32x512xf32, #tpu.memory_space<vmem>>, vector<32x256xf32>
    %c0_93 = arith.constant 0 : index
    %c128_94 = arith.constant 128 : index
    %139 = vector.load %arg5[%c0_93, %c128_94] : memref<32x512xf32, #tpu.memory_space<vmem>>, vector<32x256xf32>
    tpu.vector_store %arg5[%c0_93, %c128_94], %138 {strides = array<i32>} : memref<32x512xf32, #tpu.memory_space<vmem>>, vector<32x256xf32>,
    %c0_95 = arith.constant 0 : index
    %c111_96 = arith.constant 111 : index
    %140 = vector.load %arg5[%c0_95, %c111_96] : memref<32x512xf32, #tpu.memory_space<vmem>>, vector<32x256xf32>
    %cst_97 = arith.constant 0.000000e+00 : f32
    %141 = vector.shape_cast %21 : vector<1x256xi1> to vector<1x256xi1>
    %142 = vector.broadcast %141 : vector<1x256xi1> to vector<32x256xi1>
    %143 = vector.broadcast %cst_97 : f32 to vector<32x256xf32>
    %144 = arith.select %142, %140, %143 : vector<32x256xi1>, vector<32x256xf32>
    %145 = arith.truncf %144 : vector<32x256xf32> to vector<32x256xbf16>
    %c0_98 = arith.constant 0 : index
    %c0_99 = arith.constant 0 : index
    %146 = vector.load %arg6[%c0_98, %c0_99] : memref<288x512xbf16, #tpu.memory_space<vmem>>, vector<32x256xbf16>
    tpu.vector_store %arg6[%c0_98, %c0_99], %145 {strides = array<i32>} : memref<288x512xbf16, #tpu.memory_space<vmem>>, vector<32x256xbf16>,
    %c0_100 = arith.constant 0 : index
    %c112_101 = arith.constant 112 : index
    %147 = vector.load %arg5[%c0_100, %c112_101] : memref<32x512xf32, #tpu.memory_space<vmem>>, vector<32x256xf32>
    %148 = arith.truncf %147 : vector<32x256xf32> to vector<32x256xbf16>
    %c32_102 = arith.constant 32 : index
    %c0_103 = arith.constant 0 : index
    %149 = vector.load %arg6[%c32_102, %c0_103] : memref<288x512xbf16, #tpu.memory_space<vmem>>, vector<32x256xbf16>
    tpu.vector_store %arg6[%c32_102, %c0_103], %148 {strides = array<i32>} : memref<288x512xbf16, #tpu.memory_space<vmem>>, vector<32x256xbf16>,
    %c0_104 = arith.constant 0 : index
    %c113_105 = arith.constant 113 : index
    %150 = vector.load %arg5[%c0_104, %c113_105] : memref<32x512xf32, #tpu.memory_space<vmem>>, vector<32x256xf32>
    %cst_106 = arith.constant 0.000000e+00 : f32
    %151 = vector.shape_cast %23 : vector<1x256xi1> to vector<1x256xi1>
    %152 = vector.broadcast %151 : vector<1x256xi1> to vector<32x256xi1>
    %153 = vector.broadcast %cst_106 : f32 to vector<32x256xf32>
    %154 = arith.select %152, %150, %153 : vector<32x256xi1>, vector<32x256xf32>
    %155 = arith.truncf %154 : vector<32x256xf32> to vector<32x256xbf16>
    %c64_107 = arith.constant 64 : index
    %c0_108 = arith.constant 0 : index
    %156 = vector.load %arg6[%c64_107, %c0_108] : memref<288x512xbf16, #tpu.memory_space<vmem>>, vector<32x256xbf16>
    tpu.vector_store %arg6[%c64_107, %c0_108], %155 {strides = array<i32>} : memref<288x512xbf16, #tpu.memory_space<vmem>>, vector<32x256xbf16>,
    %c0_109 = arith.constant 0 : index
    %c127_110 = arith.constant 127 : index
    %157 = vector.load %arg5[%c0_109, %c127_110] : memref<32x512xf32, #tpu.memory_space<vmem>>, vector<32x256xf32>
    %cst_111 = arith.constant 0.000000e+00 : f32
    %158 = vector.shape_cast %21 : vector<1x256xi1> to vector<1x256xi1>
    %159 = vector.broadcast %158 : vector<1x256xi1> to vector<32x256xi1>
    %160 = vector.broadcast %cst_111 : f32 to vector<32x256xf32>
    %161 = arith.select %159, %157, %160 : vector<32x256xi1>, vector<32x256xf32>
    %162 = arith.truncf %161 : vector<32x256xf32> to vector<32x256xbf16>
    %c96_112 = arith.constant 96 : index
    %c0_113 = arith.constant 0 : index
    %163 = vector.load %arg6[%c96_112, %c0_113] : memref<288x512xbf16, #tpu.memory_space<vmem>>, vector<32x256xbf16>
    tpu.vector_store %arg6[%c96_112, %c0_113], %162 {strides = array<i32>} : memref<288x512xbf16, #tpu.memory_space<vmem>>, vector<32x256xbf16>,
    %c0_114 = arith.constant 0 : index
    %c128_115 = arith.constant 128 : index
    %164 = vector.load %arg5[%c0_114, %c128_115] : memref<32x512xf32, #tpu.memory_space<vmem>>, vector<32x256xf32>
    %165 = arith.truncf %164 : vector<32x256xf32> to vector<32x256xbf16>
    %c128_116 = arith.constant 128 : index
    %c0_117 = arith.constant 0 : index
    %166 = vector.load %arg6[%c128_116, %c0_117] : memref<288x512xbf16, #tpu.memory_space<vmem>>, vector<32x256xbf16>
    tpu.vector_store %arg6[%c128_116, %c0_117], %165 {strides = array<i32>} : memref<288x512xbf16, #tpu.memory_space<vmem>>, vector<32x256xbf16>,
    %c0_118 = arith.constant 0 : index
    %c129_119 = arith.constant 129 : index
    %167 = vector.load %arg5[%c0_118, %c129_119] : memref<32x512xf32, #tpu.memory_space<vmem>>, vector<32x256xf32>
    %cst_120 = arith.constant 0.000000e+00 : f32
    %168 = vector.shape_cast %23 : vector<1x256xi1> to vector<1x256xi1>
    %169 = vector.broadcast %168 : vector<1x256xi1> to vector<32x256xi1>
    %170 = vector.broadcast %cst_120 : f32 to vector<32x256xf32>
    %171 = arith.select %169, %167, %170 : vector<32x256xi1>, vector<32x256xf32>
    %172 = arith.truncf %171 : vector<32x256xf32> to vector<32x256xbf16>
    %c160_121 = arith.constant 160 : index
    %c0_122 = arith.constant 0 : index
    %173 = vector.load %arg6[%c160_121, %c0_122] : memref<288x512xbf16, #tpu.memory_space<vmem>>, vector<32x256xbf16>
    tpu.vector_store %arg6[%c160_121, %c0_122], %172 {strides = array<i32>} : memref<288x512xbf16, #tpu.memory_space<vmem>>, vector<32x256xbf16>,
    %c0_123 = arith.constant 0 : index
    %c143_124 = arith.constant 143 : index
    %174 = vector.load %arg5[%c0_123, %c143_124] : memref<32x512xf32, #tpu.memory_space<vmem>>, vector<32x256xf32>
    %cst_125 = arith.constant 0.000000e+00 : f32
    %175 = vector.shape_cast %21 : vector<1x256xi1> to vector<1x256xi1>
    %176 = vector.broadcast %175 : vector<1x256xi1> to vector<32x256xi1>
    %177 = vector.broadcast %cst_125 : f32 to vector<32x256xf32>
    %178 = arith.select %176, %174, %177 : vector<32x256xi1>, vector<32x256xf32>
    %179 = arith.truncf %178 : vector<32x256xf32> to vector<32x256xbf16>
    %c192_126 = arith.constant 192 : index
    %c0_127 = arith.constant 0 : index
    %180 = vector.load %arg6[%c192_126, %c0_127] : memref<288x512xbf16, #tpu.memory_space<vmem>>, vector<32x256xbf16>
    tpu.vector_store %arg6[%c192_126, %c0_127], %179 {strides = array<i32>} : memref<288x512xbf16, #tpu.memory_space<vmem>>, vector<32x256xbf16>,
    %c0_128 = arith.constant 0 : index
    %c144_129 = arith.constant 144 : index
    %181 = vector.load %arg5[%c0_128, %c144_129] : memref<32x512xf32, #tpu.memory_space<vmem>>, vector<32x256xf32>
    %182 = arith.truncf %181 : vector<32x256xf32> to vector<32x256xbf16>
    %c224_130 = arith.constant 224 : index
    %c0_131 = arith.constant 0 : index
    %183 = vector.load %arg6[%c224_130, %c0_131] : memref<288x512xbf16, #tpu.memory_space<vmem>>, vector<32x256xbf16>
    tpu.vector_store %arg6[%c224_130, %c0_131], %182 {strides = array<i32>} : memref<288x512xbf16, #tpu.memory_space<vmem>>, vector<32x256xbf16>,
    %c0_132 = arith.constant 0 : index
    %c145_133 = arith.constant 145 : index
    %184 = vector.load %arg5[%c0_132, %c145_133] : memref<32x512xf32, #tpu.memory_space<vmem>>, vector<32x256xf32>
    %cst_134 = arith.constant 0.000000e+00 : f32
    %185 = vector.shape_cast %23 : vector<1x256xi1> to vector<1x256xi1>
    %186 = vector.broadcast %185 : vector<1x256xi1> to vector<32x256xi1>
    %187 = vector.broadcast %cst_134 : f32 to vector<32x256xf32>
    %188 = arith.select %186, %184, %187 : vector<32x256xi1>, vector<32x256xf32>
    %189 = arith.truncf %188 : vector<32x256xf32> to vector<32x256xbf16>
    %c256_135 = arith.constant 256 : index
    %c0_136 = arith.constant 0 : index
    %190 = vector.load %arg6[%c256_135, %c0_136] : memref<288x512xbf16, #tpu.memory_space<vmem>>, vector<32x256xbf16>
    tpu.vector_store %arg6[%c256_135, %c0_136], %189 {strides = array<i32>} : memref<288x512xbf16, #tpu.memory_space<vmem>>, vector<32x256xbf16>,
    %c0_137 = arith.constant 0 : index
    %c256_138 = arith.constant 256 : index
    %191 = vector.load %arg7[%c0_137, %c256_138] : memref<32x512xf32, #tpu.memory_space<vmem>>, vector<32x256xf32>
    %c0_139 = arith.constant 0 : index
    %c128_140 = arith.constant 128 : index
    %192 = vector.load %arg5[%c0_139, %c128_140] : memref<32x512xf32, #tpu.memory_space<vmem>>, vector<32x256xf32>
    tpu.vector_store %arg5[%c0_139, %c128_140], %191 {strides = array<i32>} : memref<32x512xf32, #tpu.memory_space<vmem>>, vector<32x256xf32>,
    %c0_141 = arith.constant 0 : index
    %c111_142 = arith.constant 111 : index
    %193 = vector.load %arg5[%c0_141, %c111_142] : memref<32x512xf32, #tpu.memory_space<vmem>>, vector<32x256xf32>
    %cst_143 = arith.constant 0.000000e+00 : f32
    %194 = vector.shape_cast %21 : vector<1x256xi1> to vector<1x256xi1>
    %195 = vector.broadcast %194 : vector<1x256xi1> to vector<32x256xi1>
    %196 = vector.broadcast %cst_143 : f32 to vector<32x256xf32>
    %197 = arith.select %195, %193, %196 : vector<32x256xi1>, vector<32x256xf32>
    %198 = arith.truncf %197 : vector<32x256xf32> to vector<32x256xbf16>
    %c0_144 = arith.constant 0 : index
    %c256_145 = arith.constant 256 : index
    %199 = vector.load %arg6[%c0_144, %c256_145] : memref<288x512xbf16, #tpu.memory_space<vmem>>, vector<32x256xbf16>
    tpu.vector_store %arg6[%c0_144, %c256_145], %198 {strides = array<i32>} : memref<288x512xbf16, #tpu.memory_space<vmem>>, vector<32x256xbf16>,
    %c0_146 = arith.constant 0 : index
    %c112_147 = arith.constant 112 : index
    %200 = vector.load %arg5[%c0_146, %c112_147] : memref<32x512xf32, #tpu.memory_space<vmem>>, vector<32x256xf32>
    %201 = arith.truncf %200 : vector<32x256xf32> to vector<32x256xbf16>
    %c32_148 = arith.constant 32 : index
    %c256_149 = arith.constant 256 : index
    %202 = vector.load %arg6[%c32_148, %c256_149] : memref<288x512xbf16, #tpu.memory_space<vmem>>, vector<32x256xbf16>
    tpu.vector_store %arg6[%c32_148, %c256_149], %201 {strides = array<i32>} : memref<288x512xbf16, #tpu.memory_space<vmem>>, vector<32x256xbf16>,
    %c0_150 = arith.constant 0 : index
    %c113_151 = arith.constant 113 : index
    %203 = vector.load %arg5[%c0_150, %c113_151] : memref<32x512xf32, #tpu.memory_space<vmem>>, vector<32x256xf32>
    %cst_152 = arith.constant 0.000000e+00 : f32
    %204 = vector.shape_cast %23 : vector<1x256xi1> to vector<1x256xi1>
    %205 = vector.broadcast %204 : vector<1x256xi1> to vector<32x256xi1>
    %206 = vector.broadcast %cst_152 : f32 to vector<32x256xf32>
    %207 = arith.select %205, %203, %206 : vector<32x256xi1>, vector<32x256xf32>
    %208 = arith.truncf %207 : vector<32x256xf32> to vector<32x256xbf16>
    %c64_153 = arith.constant 64 : index
    %c256_154 = arith.constant 256 : index
    %209 = vector.load %arg6[%c64_153, %c256_154] : memref<288x512xbf16, #tpu.memory_space<vmem>>, vector<32x256xbf16>
    tpu.vector_store %arg6[%c64_153, %c256_154], %208 {strides = array<i32>} : memref<288x512xbf16, #tpu.memory_space<vmem>>, vector<32x256xbf16>,
    %c0_155 = arith.constant 0 : index
    %c127_156 = arith.constant 127 : index
    %210 = vector.load %arg5[%c0_155, %c127_156] : memref<32x512xf32, #tpu.memory_space<vmem>>, vector<32x256xf32>
    %cst_157 = arith.constant 0.000000e+00 : f32
    %211 = vector.shape_cast %21 : vector<1x256xi1> to vector<1x256xi1>
    %212 = vector.broadcast %211 : vector<1x256xi1> to vector<32x256xi1>
    %213 = vector.broadcast %cst_157 : f32 to vector<32x256xf32>
    %214 = arith.select %212, %210, %213 : vector<32x256xi1>, vector<32x256xf32>
    %215 = arith.truncf %214 : vector<32x256xf32> to vector<32x256xbf16>
    %c96_158 = arith.constant 96 : index
    %c256_159 = arith.constant 256 : index
    %216 = vector.load %arg6[%c96_158, %c256_159] : memref<288x512xbf16, #tpu.memory_space<vmem>>, vector<32x256xbf16>
    tpu.vector_store %arg6[%c96_158, %c256_159], %215 {strides = array<i32>} : memref<288x512xbf16, #tpu.memory_space<vmem>>, vector<32x256xbf16>,
    %c0_160 = arith.constant 0 : index
    %c128_161 = arith.constant 128 : index
    %217 = vector.load %arg5[%c0_160, %c128_161] : memref<32x512xf32, #tpu.memory_space<vmem>>, vector<32x256xf32>
    %218 = arith.truncf %217 : vector<32x256xf32> to vector<32x256xbf16>
    %c128_162 = arith.constant 128 : index
    %c256_163 = arith.constant 256 : index
    %219 = vector.load %arg6[%c128_162, %c256_163] : memref<288x512xbf16, #tpu.memory_space<vmem>>, vector<32x256xbf16>
    tpu.vector_store %arg6[%c128_162, %c256_163], %218 {strides = array<i32>} : memref<288x512xbf16, #tpu.memory_space<vmem>>, vector<32x256xbf16>,
    %c0_164 = arith.constant 0 : index
    %c129_165 = arith.constant 129 : index
    %220 = vector.load %arg5[%c0_164, %c129_165] : memref<32x512xf32, #tpu.memory_space<vmem>>, vector<32x256xf32>
    %cst_166 = arith.constant 0.000000e+00 : f32
    %221 = vector.shape_cast %23 : vector<1x256xi1> to vector<1x256xi1>
    %222 = vector.broadcast %221 : vector<1x256xi1> to vector<32x256xi1>
    %223 = vector.broadcast %cst_166 : f32 to vector<32x256xf32>
    %224 = arith.select %222, %220, %223 : vector<32x256xi1>, vector<32x256xf32>
    %225 = arith.truncf %224 : vector<32x256xf32> to vector<32x256xbf16>
    %c160_167 = arith.constant 160 : index
    %c256_168 = arith.constant 256 : index
    %226 = vector.load %arg6[%c160_167, %c256_168] : memref<288x512xbf16, #tpu.memory_space<vmem>>, vector<32x256xbf16>
    tpu.vector_store %arg6[%c160_167, %c256_168], %225 {strides = array<i32>} : memref<288x512xbf16, #tpu.memory_space<vmem>>, vector<32x256xbf16>,
    %c0_169 = arith.constant 0 : index
    %c143_170 = arith.constant 143 : index
    %227 = vector.load %arg5[%c0_169, %c143_170] : memref<32x512xf32, #tpu.memory_space<vmem>>, vector<32x256xf32>
    %cst_171 = arith.constant 0.000000e+00 : f32
    %228 = vector.shape_cast %21 : vector<1x256xi1> to vector<1x256xi1>
    %229 = vector.broadcast %228 : vector<1x256xi1> to vector<32x256xi1>
    %230 = vector.broadcast %cst_171 : f32 to vector<32x256xf32>
    %231 = arith.select %229, %227, %230 : vector<32x256xi1>, vector<32x256xf32>
    %232 = arith.truncf %231 : vector<32x256xf32> to vector<32x256xbf16>
    %c192_172 = arith.constant 192 : index
    %c256_173 = arith.constant 256 : index
    %233 = vector.load %arg6[%c192_172, %c256_173] : memref<288x512xbf16, #tpu.memory_space<vmem>>, vector<32x256xbf16>
    tpu.vector_store %arg6[%c192_172, %c256_173], %232 {strides = array<i32>} : memref<288x512xbf16, #tpu.memory_space<vmem>>, vector<32x256xbf16>,
    %c0_174 = arith.constant 0 : index
    %c144_175 = arith.constant 144 : index
    %234 = vector.load %arg5[%c0_174, %c144_175] : memref<32x512xf32, #tpu.memory_space<vmem>>, vector<32x256xf32>
    %235 = arith.truncf %234 : vector<32x256xf32> to vector<32x256xbf16>
    %c224_176 = arith.constant 224 : index
    %c256_177 = arith.constant 256 : index
    %236 = vector.load %arg6[%c224_176, %c256_177] : memref<288x512xbf16, #tpu.memory_space<vmem>>, vector<32x256xbf16>
    tpu.vector_store %arg6[%c224_176, %c256_177], %235 {strides = array<i32>} : memref<288x512xbf16, #tpu.memory_space<vmem>>, vector<32x256xbf16>,
    %c0_178 = arith.constant 0 : index
    %c145_179 = arith.constant 145 : index
    %237 = vector.load %arg5[%c0_178, %c145_179] : memref<32x512xf32, #tpu.memory_space<vmem>>, vector<32x256xf32>
    %cst_180 = arith.constant 0.000000e+00 : f32
    %238 = vector.shape_cast %23 : vector<1x256xi1> to vector<1x256xi1>
    %239 = vector.broadcast %238 : vector<1x256xi1> to vector<32x256xi1>
    %240 = vector.broadcast %cst_180 : f32 to vector<32x256xf32>
    %241 = arith.select %239, %237, %240 : vector<32x256xi1>, vector<32x256xf32>
    %242 = arith.truncf %241 : vector<32x256xf32> to vector<32x256xbf16>
    %c256_181 = arith.constant 256 : index
    %c256_182 = arith.constant 256 : index
    %243 = vector.load %arg6[%c256_181, %c256_182] : memref<288x512xbf16, #tpu.memory_space<vmem>>, vector<32x256xbf16>
    tpu.vector_store %arg6[%c256_181, %c256_182], %242 {strides = array<i32>} : memref<288x512xbf16, #tpu.memory_space<vmem>>, vector<32x256xbf16>,
    %c0_183 = arith.constant 0 : index
    %c0_184 = arith.constant 0 : index
    %244 = vector.load %arg3[%c0_183, %c0_184] : memref<32x288xbf16, #tpu.memory_space<vmem>>, vector<32x288xbf16>
    %c0_185 = arith.constant 0 : index
    %c0_186 = arith.constant 0 : index
    %245 = vector.load %arg6[%c0_185, %c0_186] : memref<288x512xbf16, #tpu.memory_space<vmem>>, vector<288x512xbf16>
    %cst_187 = arith.constant dense<0.000000e+00> : vector<32x512xf32>
    %246 = tpu.matmul %244, %245, %cst_187 {dimension_numbers = #tpu.dot_dimension_numbers<[1], [0], [0], [1], [0, 0, 1, 1], [], []>} : vector<32x288xbf16>, vector<288x512xbf16>, vector<32x512xf32> -> vector<32x512xf32>
    %c0_188 = arith.constant 0 : index
    %c0_189 = arith.constant 0 : index
    %247 = vector.load %arg7[%c0_188, %c0_189] : memref<32x512xf32, #tpu.memory_space<vmem>>, vector<32x512xf32>
    tpu.vector_store %arg7[%c0_188, %c0_189], %246 {strides = array<i32>} : memref<32x512xf32, #tpu.memory_space<vmem>>, vector<32x512xf32>,
    %c0_190 = arith.constant 0 : index
    %c0_191 = arith.constant 0 : index
    %c0_192 = arith.constant 0 : index
    %248 = vector.load %arg1[%c0_190, %c0_191, %c0_192] : memref<2x32x256xf32, #tpu.memory_space<vmem>>, vector<1x32x256xf32>
    %249 = vector.shape_cast %248 : vector<1x32x256xf32> to vector<32x256xf32>
    %c0_193 = arith.constant 0 : index
    %c0_194 = arith.constant 0 : index
    %250 = vector.load %arg7[%c0_193, %c0_194] : memref<32x512xf32, #tpu.memory_space<vmem>>, vector<32x256xf32>
    %251 = arith.addf %249, %250 : vector<32x256xf32>
    %c0_195 = arith.constant 0 : index
    %c0_196 = arith.constant 0 : index
    %c0_197 = arith.constant 0 : index
    %252 = vector.load %arg4[%c0_195, %c0_196, %c0_197] : memref<2x32x256xf32, #tpu.memory_space<vmem>>, vector<1x32x256xf32>
    %253 = vector.shape_cast %252 : vector<1x32x256xf32> to vector<32x256xf32>
    %254 = vector.shape_cast %251 : vector<32x256xf32> to vector<1x32x256xf32>
    tpu.vector_store %arg4[%c0_195, %c0_196, %c0_197], %254 {strides = array<i32>} : memref<2x32x256xf32, #tpu.memory_space<vmem>>, vector<1x32x256xf32>,
    %c1_198 = arith.constant 1 : index
    %c0_199 = arith.constant 0 : index
    %c0_200 = arith.constant 0 : index
    %255 = vector.load %arg1[%c1_198, %c0_199, %c0_200] : memref<2x32x256xf32, #tpu.memory_space<vmem>>, vector<1x32x256xf32>
    %256 = vector.shape_cast %255 : vector<1x32x256xf32> to vector<32x256xf32>
    %c0_201 = arith.constant 0 : index
    %c256_202 = arith.constant 256 : index
    %257 = vector.load %arg7[%c0_201, %c256_202] : memref<32x512xf32, #tpu.memory_space<vmem>>, vector<32x256xf32>
    %258 = arith.addf %256, %257 : vector<32x256xf32>
    %c1_203 = arith.constant 1 : index
    %c0_204 = arith.constant 0 : index
    %c0_205 = arith.constant 0 : index
    %259 = vector.load %arg4[%c1_203, %c0_204, %c0_205] : memref<2x32x256xf32, #tpu.memory_space<vmem>>, vector<1x32x256xf32>
    %260 = vector.shape_cast %259 : vector<1x32x256xf32> to vector<32x256xf32>
    %261 = vector.shape_cast %258 : vector<32x256xf32> to vector<1x32x256xf32>
    tpu.vector_store %arg4[%c1_203, %c0_204, %c0_205], %261 {strides = array<i32>} : memref<2x32x256xf32, #tpu.memory_space<vmem>>, vector<1x32x256xf32>,
    return
  }
  func.func @transform_0(%arg0: i32) -> (i32, i32, i32) {
    %c0_i32 = arith.constant 0 : i32
    %c0_i32_0 = arith.constant 0 : i32
    %c0_i32_1 = arith.constant 0 : i32
    return %arg0, %c0_i32, %c0_i32_0 : i32, i32, i32
  }
  func.func @transform_1(%arg0: i32) -> (i32, i32) {
    %c0_i32 = arith.constant 0 : i32
    %c0_i32_0 = arith.constant 0 : i32
    %c0_i32_1 = arith.constant 0 : i32
    return %c0_i32, %c0_i32_0 : i32, i32
  }
  func.func @transform_2(%arg0: i32) -> (i32, i32) {
    %c0_i32 = arith.constant 0 : i32
    %c0_i32_0 = arith.constant 0 : i32
    %c0_i32_1 = arith.constant 0 : i32
    return %c0_i32, %c0_i32_0 : i32, i32
  }
  func.func @transform_3(%arg0: i32) -> (i32, i32, i32) {
    %c0_i32 = arith.constant 0 : i32
    %c0_i32_0 = arith.constant 0 : i32
    %c0_i32_1 = arith.constant 0 : i32
    return %arg0, %c0_i32, %c0_i32_0 : i32, i32, i32
  }
}

</mosaic_0001>

<bundles_post_ra>
// kernel: tpu_custom_call.1
= control target key start
LH: loop header
LB: loop body
LE: loop exit
PB: predicated region body
PF: predicated region fallthrough
CT: control target
= control target key end

     0   :  { %8 = vsyncpa [#allocation6], 0  ;;  %s5948_s0 = inlined_call_operand.hbm [shape: f32[2,32,256], index: 0, kind: input, shape index: {}]   ;;  %s5949_s1 = inlined_call_operand.hbm [shape: bf16[32,288], index: 1, kind: input, shape index: {}]   ;;  %s5950_s2 = inlined_call_operand.hbm [shape: bf16[32,288], index: 2, kind: input, shape index: {}]   ;;  %s5951_s3 = inlined_call_operand.hbm [shape: f32[2,32,256], index: 3, kind: output, shape index: {}]  }
   0x1   :  { %9 = vsyncpa [#allocation9], 0 }
   0x2   :  { %10 = vsyncpa [#allocation7], 0  ;;  %s4521_s12 = smov [#allocation8]   ;;  %s4427_s16 = scalar_lea.hbm %s5949_s1, 768 }
   0x3   :  { %s28_s13 = sshll.u32 %s4521_s12, 4  ;;  %p4428_p0 = scmp.ne.s32.totalorder %s5949_s1, %s4427_s16  ;;  %s29_s13 = int_to_ptr.vmem [resolvable:$true] %s28_s13 }
   0x4   :  { %p4431_p1 = scmp.lt.u32.totalorder %s4427_s16, %s5949_s1 }
   0x6   :  { %p4433_p2 = pnand %p4431_p1, %p4428_p0 }
   0x8   :  { %4436 = shalt.err (!%p4433_p2)
}
   0x9   :  { %s4437_s21 = scalar_lea.vmem %s29_s13, 768  ;;  %p4442_p4 = scmp.lt.s32.totalorder %s29_s13, %s29_s13 }
   0xa   :  { %p4438_p3 = scmp.ne.s32.totalorder %s29_s13, %s4437_s21  ;;  %p4443_p5 = scmp.lt.s32.totalorder %s4437_s21, %s4437_s21 }
   0xc   :  { %p4444_p6 = por %p4443_p5, %p4442_p4 }
   0xe   :  { %p4445_p7 = pnand %p4444_p6, %p4438_p3 }
  0x10   :  { %4448 = shalt.err (!%p4445_p7)
}
  0x11   :  { %s4522_s22 = smov 192   ;;  %s4523_s23 = smov 12  }
  0x12   :  { %34 = dma.hbm_to_vmem [thread:$0]  %s5949_s1, 768, %s29_s13, [#allocation9], %s4522_s22, %s4522_s22, %s4523_s23  }
  0x13   :  { %s4524_s26 = smov [#allocation5]   ;;  %s4449_s30 = scalar_lea.hbm %s5948_s0, 2048 }
  0x14   :  { %s16_s27 = sshll.u32 %s4524_s26, 4  ;;  %p4450_p8 = scmp.ne.s32.totalorder %s5948_s0, %s4449_s30  ;;  %s17_s27 = int_to_ptr.vmem [resolvable:$true] %s16_s27 }
  0x15   :  { %p4453_p9 = scmp.lt.u32.totalorder %s4449_s30, %s5948_s0 }
  0x17   :  { %p4455_p10 = pnand %p4453_p9, %p4450_p8 }
  0x19   :  { %4458 = shalt.err (!%p4455_p10)
}
  0x1a   :  { %s4459_s8 = scalar_lea.vmem %s17_s27, 2048  ;;  %p4464_p12 = scmp.lt.s32.totalorder %s17_s27, %s17_s27 }
  0x1b   :  { %p4460_p11 = scmp.ne.s32.totalorder %s17_s27, %s4459_s8  ;;  %p4465_p13 = scmp.lt.s32.totalorder %s4459_s8, %s4459_s8 }
  0x1d   :  { %p4466_p0 = por %p4465_p13, %p4464_p12 }
  0x1f   :  { %p4467_p1 = pnand %p4466_p0, %p4460_p11 }
  0x21   :  { %4470 = shalt.err (!%p4467_p1)
}
  0x22   :  { %s4525_s1 = smov 256   ;;  %s4526_s9 = smov 16  }
  0x23   :  { %22 = dma.hbm_to_vmem [thread:$0]  %s5948_s0, 2048, %s17_s27, [#allocation6], %s4525_s1, %s4525_s1, %s4526_s9  }
  0x24   :  { %s4527_s12 = smov [#allocation10]   ;;  %s4471_s16 = scalar_lea.hbm %s5950_s2, 768 }
  0x25   :  { %s40_s13 = sshll.u32 %s4527_s12, 4  ;;  %p4472_p2 = scmp.ne.s32.totalorder %s5950_s2, %s4471_s16  ;;  %s41_s13 = int_to_ptr.vmem [resolvable:$true] %s40_s13 }
  0x26   :  { %p4475_p3 = scmp.lt.u32.totalorder %s4471_s16, %s5950_s2 }
  0x28   :  { %p4477_p4 = pnand %p4475_p3, %p4472_p2 }
  0x2a   :  { %4480 = shalt.err (!%p4477_p4)
}
  0x2b   :  { %s4481_s21 = scalar_lea.vmem %s41_s13, 768  ;;  %p4486_p6 = scmp.lt.s32.totalorder %s41_s13, %s41_s13 }
  0x2c   :  { %p4482_p5 = scmp.ne.s32.totalorder %s41_s13, %s4481_s21  ;;  %p4487_p7 = scmp.lt.s32.totalorder %s4481_s21, %s4481_s21 }
  0x2e   :  { %p4488_p8 = por %p4487_p7, %p4486_p6 }
  0x30   :  { %p4489_p9 = pnand %p4488_p8, %p4482_p5 }
  0x32   :  { %4492 = shalt.err (!%p4489_p9)
}
  0x33   :  { %46 = dma.hbm_to_vmem [thread:$0]  %s5950_s2, 768, %s41_s13, [#allocation9], %s4522_s22, %s4522_s22, %s4523_s23  }
  0x34   :  { %4515 = dma.done.wait [#allocation6], 2048  }
  0x35   :  { %4516 = vsyncadd [#allocation6], 4294965248 }
  0x36   :  { %4517 = dma.done.wait [#allocation9], 1536  }
  0x37   :  { %4518 = vsyncadd [#allocation9], 4294965760  ;;  %v4528_v0 = vmov 0.0   ;;  %s4529_s25 = smov 17   ;;  %v721_v1 = vld [vmem:[#allocation5 + $0x40] sm:$0xff]  ;;  %v4608_v2 = vld [vmem:[#allocation5 + $0x48] sm:$0xff]  ;;  %v65_v44 = vlaneseq }
  0x38   :  { %3697 = vrot.lane.b32.xlu1 %v4528_v0, %s4529_s25  ;;  %3692 = vrot.lane.b32.xlu0 %v4528_v0, %s4529_s25  ;;  %v96_v3 = vld [vmem:[#allocation5] sm:$0xff]  ;;  %v4611_v4 = vpack.i.bf16 %v4608_v2, %v721_v1  ;;  %v4613_v5 = vld [vmem:[#allocation5 + $0x8] sm:$0xff]  ;;  %v723_v6 = vld [vmem:[#allocation5 + $0x50] sm:$0xff]  ;;  %v4530_v33 = vmov 0.0|0.0   ;;  %s4531_s2 = smov 15   ;;  %s4532_s22 = smov 1   ;;  %v4765_v41 = vpack.i.bf16 %v4528_v0, %v4608_v2 }
  0x39   :  { %v4615_v7 = vld [vmem:[#allocation5 + $0x58] sm:$0xff]  ;;  %v4618_v8 = vpack.i.bf16 %v4613_v5, %v96_v3  ;;  %v98_v9 = vld [vmem:[#allocation5 + $0x10] sm:$0xff]  ;;  %v100_v15 = vld [vmem:[#allocation5 + $0x20] sm:$0xff]  ;;  %v4645_v25 = vpack.i.bf16 %v723_v6, %v721_v1  ;;  %v4675_v32 = vpack.c.bf16 %v723_v6, %v721_v1  ;;  %v4753_v39 = vpack.i.bf16 %v4528_v0, %v4613_v5  ;;  %s4533_s23 = smov 127   ;;  %s4534_s26 = smov 113  }
  0x3a   :  { %v4620_v10 = vld [vmem:[#allocation5 + $0x18] sm:$0xff]  ;;  %v4625_v11 = vpack.i.bf16 %v4615_v7, %v723_v6  ;;  %v102_v12 = vld [vmem:[#allocation5 + $0x30] sm:$0xff]  ;;  %v4632_v16 = vld [vmem:[#allocation5 + $0x28] sm:$0xff]  ;;  %v4647_v26 = vpack.i.bf16 %v98_v9, %v96_v3  ;;  %v4665_v30 = vpack.c.bf16 %v98_v9, %v96_v3  ;;  %v4671_v31 = vpack.c.bf16 %v4615_v7, %v4608_v2  ;;  %s4535_s27 = smov 112   ;;  %s4536_s28 = smov 111  }
  0x3b   :  { %v3706_v13 = vpack.i.bf16 %v4620_v10, %v98_v9  ;;  %v4630_v14 = vld [vmem:[#allocation5 + $0x38] sm:$0xff]  ;;  %v727_v17 = vld [vmem:[#allocation5 + $0x70] sm:$0xff]  ;;  %v725_v19 = vld [vmem:[#allocation5 + $0x60] sm:$0xff]  ;;  %v3721_v22 = vpack.i.bf16 %v4632_v16, %v100_v15  ;;  %v4652_v28 = vpack.i.bf16 %v102_v12, %v100_v15  ;;  %v4661_v29 = vpack.c.bf16 %v4620_v10, %v4613_v5  ;;  %s4538_s29 = smov [#allocation11]  }
  0x3c   :  { %3712 = vrot.lane.b32.xlu1 %v4611_v4, %s4529_s25  ;;  %3702 = vrot.lane.b32.xlu0 %v4618_v8, %s4529_s25  ;;  %v4634_v18 = vld [vmem:[#allocation5 + $0x78] sm:$0xff]  ;;  %v4636_v20 = vld [vmem:[#allocation5 + $0x68] sm:$0xff]  ;;  %v3726_v21 = vpack.i.bf16 %v4630_v14, %v102_v12  ;;  %v4650_v27 = vpack.i.bf16 %v727_v17, %v725_v19  ;;  %v4685_v34 = vpack.c.bf16 %v4630_v14, %v4632_v16  ;;  %v4795_v47 = vand.u32 127, %v65_v44  ;;  %s3320_s30 = sshll.u32 %s4538_s29, 4  ;;  %s3321_s30 = int_to_ptr.vmem [resolvable:$true] %s3320_s30 }
  0x3d   :  { %v3856_v23 = vpack.i.bf16 %v4634_v18, %v727_v17  ;;  %v3851_v24 = vpack.i.bf16 %v4636_v20, %v725_v19  ;;  %v4689_v35 = vpack.c.bf16 %v102_v12, %v100_v15  ;;  %v4695_v36 = vpack.c.bf16 %v4634_v18, %v4636_v20  ;;  %s4493_s4 = scalar_lea.vmem %s3321_s30, 2048  ;;  %p4498_p11 = scmp.lt.s32.totalorder %s3321_s30, %s3321_s30 }
  0x3e   :  { %v4699_v37 = vpack.c.bf16 %v727_v17, %v725_v19  ;;  %v4747_v38 = vpack.i.bf16 %v4528_v0, %v4620_v10  ;;  %v4759_v40 = vpack.i.bf16 %v4528_v0, %v4615_v7  ;;  %v4775_v42 = vpack.i.bf16 %v4528_v0, %v4630_v14  ;;  %p4494_p10 = scmp.ne.s32.totalorder %s3321_s30, %s4493_s4  ;;  %p4499_p12 = scmp.lt.s32.totalorder %s4493_s4, %s4493_s4 }
  0x3f   :  { %v4781_v43 = vpack.i.bf16 %v4528_v0, %v4632_v16  ;;  %v4787_v45 = vpack.i.bf16 %v4528_v0, %v4634_v18  ;;  %v4793_v46 = vpack.i.bf16 %v4528_v0, %v4636_v20  ;;  %v4802_v50 = vadd.s32 128, %v4795_v47 }
  0x40   :  { %3717 = vrot.lane.b32.xlu1 %v4625_v11, %s4529_s25  ;;  %3707 = vrot.lane.b32.xlu0 %v3706_v13, %s4529_s25  ;;  %v72_v53 = vand.u32 15, %v4795_v47  ;;  %vm164_vm0 = vcmask 138240   ;;  %vm233_vm5 = vcmask 130048   ;;  %vm298_vm6 = vcmask 121856   ;;  %v3283_v47 = vld [vmem:[#allocation5 + $0x48] sm:$0xff]  ;;  %p4500_p13 = por %p4499_p12, %p4498_p11 }
  0x41   :  { %v79_v52 = vand.u32 15, %v4802_v50  ;;  %vm379_vm11 = vcmask 7168   ;;  %vm476_vm12 = vcmask 1039360   ;;  %vm557_vm13 = vcmask 924672  }
  0x42   :  { %vm4818_vm2 = vcmp.ne.s32.totalorder %v72_v53, 0  ;;  %vm94_vm9 = vcmp.ne.s32.totalorder %v72_v53, 15  ;;  %vm626_vm14 = vcmask 916480   ;;  %vm687_vm15 = vcmask 908288   ;;  %p4501_p0 = pnand %p4500_p13, %p4494_p10 }
  0x43   :  { %vm93_vm1 = vcmp.ne.s32.totalorder %v79_v52, 0  ;;  %vm4841_vm4 = vmpackc.low %vm4818_vm2, %vm4818_vm2  ;;  %vm95_vm7 = vcmp.ne.s32.totalorder %v79_v52, 15 }
  0x44   :  { %3727 = vrot.lane.b32.xlu1 %v3726_v21, %s4529_s25  ;;  %3722 = vrot.lane.b32.xlu0 %v3721_v22, %s4529_s25  ;;  %vm4829_vm3 = vmpackc.low %vm93_vm1, %vm93_vm1  ;;  %vm1439_vm1 = vcmask 261120  }
  0x45   :  { %vm4921_vm8 = vmpackc.low %vm95_vm7, %vm95_vm7 }
  0x46   :  { %vm4943_vm10 = vmpackc.low %vm94_vm9, %vm94_vm9 }
  0x48   :  { %3737 = vrot.lane.b32.xlu1 %v3856_v23, %s4529_s25  ;;  %3732 = vrot.lane.b32.xlu0 %v3851_v24, %s4529_s25 }
  0x4c   :  { %3747 = vrot.lane.b32.xlu1 %v4528_v0, %s4529_s25  ;;  %3742 = vrot.lane.b32.xlu0 %v4528_v0, %s4529_s25 }
  0x50   :  { %225 = vrot.lane.b32.xlu1 %v4661_v29, %s4526_s9  ;;  %223 = vrot.lane.b32.xlu0 %v4665_v30, %s4526_s9 }
  0x54   :  { %845 = vrot.lane.b32.xlu1 %v4671_v31, %s4526_s9  ;;  %843 = vrot.lane.b32.xlu0 %v4675_v32, %s4526_s9 }
  0x58   :  { %841 = vrot.lane.b32.xlu1 %v4530_v33, %s4526_s9  ;;  %221 = vrot.lane.b32.xlu0 %v4530_v33, %s4526_s9 }
  0x5c   :  { %231 = vrot.lane.b32.xlu1 %v4685_v34, %s4526_s9  ;;  %229 = vrot.lane.b32.xlu0 %v4689_v35, %s4526_s9 }
  0x60   :  { %851 = vrot.lane.b32.xlu1 %v4695_v36, %s4526_s9  ;;  %849 = vrot.lane.b32.xlu0 %v4699_v37, %s4526_s9 }
  0x64   :  { %847 = vrot.lane.b32.xlu1 %v4530_v33, %s4526_s9  ;;  %227 = vrot.lane.b32.xlu0 %v4530_v33, %s4526_s9 }
  0x68   :  { %3757 = vrot.lane.b32.xlu1 %v3706_v13, %s4531_s2  ;;  %3752 = vrot.lane.b32.xlu0 %v4618_v8, %s4531_s2 }
  0x6c   :  { %3767 = vrot.lane.b32.xlu1 %v4625_v11, %s4531_s2  ;;  %3762 = vrot.lane.b32.xlu0 %v4611_v4, %s4531_s2 }
  0x70   :  { %3777 = vrot.lane.b32.xlu1 %v4528_v0, %s4531_s2  ;;  %3772 = vrot.lane.b32.xlu0 %v4528_v0, %s4531_s2 }
  0x74   :  { %3787 = vrot.lane.b32.xlu1 %v3726_v21, %s4531_s2  ;;  %3782 = vrot.lane.b32.xlu0 %v3721_v22, %s4531_s2 }
  0x78   :  { %3797 = vrot.lane.b32.xlu1 %v3856_v23, %s4531_s2  ;;  %3792 = vrot.lane.b32.xlu0 %v3851_v24, %s4531_s2 }
  0x7c   :  { %3807 = vrot.lane.b32.xlu1 %v4528_v0, %s4531_s2  ;;  %3802 = vrot.lane.b32.xlu0 %v4528_v0, %s4531_s2 }
  0x80   :  { %3817 = vrot.lane.b32.xlu1 %v3706_v13, %s4532_s22  ;;  %3812 = vrot.lane.b32.xlu0 %v4618_v8, %s4532_s22 }
  0x84   :  { %3827 = vrot.lane.b32.xlu1 %v4625_v11, %s4532_s22  ;;  %3822 = vrot.lane.b32.xlu0 %v4611_v4, %s4532_s22 }
  0x88   :  { %3837 = vrot.lane.b32.xlu1 %v4528_v0, %s4532_s22  ;;  %3832 = vrot.lane.b32.xlu0 %v4528_v0, %s4532_s22 }
  0x8c   :  { %3847 = vrot.lane.b32.xlu1 %v3726_v21, %s4532_s22  ;;  %3842 = vrot.lane.b32.xlu0 %v3721_v22, %s4532_s22 }
  0x90   :  { %3857 = vrot.lane.b32.xlu1 %v3856_v23, %s4532_s22  ;;  %3852 = vrot.lane.b32.xlu0 %v3851_v24, %s4532_s22  ;;  %v4422_v23 = vld [vmem:[#allocation10 + $0x1c] ss:$12 sps:$4 sm:$0xff]  }
  0x94   :  { %3867 = vrot.lane.b32.xlu1 %v4528_v0, %s4532_s22  ;;  %3862 = vrot.lane.b32.xlu0 %v4528_v0, %s4532_s22 }
  0x98   :  { %3877 = vrot.lane.b32.xlu1 %v4747_v38, %s4533_s23  ;;  %3872 = vrot.lane.b32.xlu0 %v4753_v39, %s4533_s23 }
  0x9c   :  { %3887 = vrot.lane.b32.xlu1 %v4759_v40, %s4533_s23  ;;  %3882 = vrot.lane.b32.xlu0 %v4765_v41, %s4533_s23 }
  0xa0   :  { %3897 = vrot.lane.b32.xlu1 %v4645_v25, %s4533_s23  ;;  %3892 = vrot.lane.b32.xlu0 %v4647_v26, %s4533_s23 }
  0xa4   :  { %3907 = vrot.lane.b32.xlu1 %v4775_v42, %s4533_s23  ;;  %3902 = vrot.lane.b32.xlu0 %v4781_v43, %s4533_s23 }
  0xa8   :  { %3917 = vrot.lane.b32.xlu1 %v4787_v45, %s4533_s23  ;;  %3912 = vrot.lane.b32.xlu0 %v4793_v46, %s4533_s23 }
  0xaa   :  { %v3698_v48 = vpop.permute.xlu1 %3697  ;;  %v3693_v49 = vpop.permute.xlu0 %3692 }
  0xab   :  { %v3700_v59 = vunpack.i.h.bf16 %v3698_v48  ;;  %v3699_v60 = vunpack.i.l.bf16 %v3698_v48  ;;  %v3695_v63 = vunpack.i.h.bf16 %v3693_v49  ;;  %v3694_v1 = vunpack.i.l.bf16 %v3693_v49 }
  0xac   :  { %3927 = vrot.lane.b32.xlu1 %v4650_v27, %s4533_s23  ;;  %3922 = vrot.lane.b32.xlu0 %v4652_v28, %s4533_s23 }
  0xae   :  { %v3713_v51 = vpop.permute.xlu1 %3712  ;;  %v3703_v54 = vpop.permute.xlu0 %3702 }
  0xaf   :  { %v3715_v55 = vunpack.i.h.bf16 %v3713_v51  ;;  %v3714_v56 = vunpack.i.l.bf16 %v3713_v51  ;;  %v3705_v57 = vunpack.i.h.bf16 %v3703_v54  ;;  %v3704_v58 = vunpack.i.l.bf16 %v3703_v54 }
  0xb0   :  { %3937 = vrot.lane.b32.xlu1 %v4747_v38, %s4534_s26  ;;  %3932 = vrot.lane.b32.xlu0 %v4753_v39, %s4534_s26 }
  0xb1   :  { %v786_v7 = vsel %vm164_vm0, %v3714_v56, %v3715_v55  ;;  %v785_v8 = vsel %vm164_vm0, %v3699_v60, %v3714_v56  ;;  %v166_v11 = vsel %vm164_vm0, %v3704_v58, %v3705_v57  ;;  %v165_v12 = vsel %vm164_vm0, %v3694_v1, %v3704_v58 }
  0xb2   :  { %v3718_v61 = vpop.permute.xlu1 %3717  ;;  %v3708_v4 = vpop.permute.xlu0 %3707 }
  0xb3   :  { %v3720_v2 = vunpack.i.h.bf16 %v3718_v61  ;;  %v3719_v3 = vunpack.i.l.bf16 %v3718_v61  ;;  %v3710_v5 = vunpack.i.h.bf16 %v3708_v4  ;;  %v3709_v6 = vunpack.i.l.bf16 %v3708_v4 }
  0xb4   :  { %3947 = vrot.lane.b32.xlu1 %v4759_v40, %s4534_s26  ;;  %3942 = vrot.lane.b32.xlu0 %v4765_v41, %s4534_s26 }
  0xb5   :  { %v788_v9 = vsel %vm164_vm0, %v3719_v3, %v3720_v2  ;;  %v787_v13 = vsel %vm164_vm0, %v3700_v59, %v3719_v3  ;;  %v168_v16 = vsel %vm164_vm0, %v3709_v6, %v3710_v5  ;;  %v167_v17 = vsel %vm164_vm0, %v3695_v63, %v3709_v6 }
  0xb6   :  { %v3728_v14 = vpop.permute.xlu1 %3727  ;;  %v3426_v15 = vpack.c.bf16 %v788_v9, %v786_v7  ;;  %v3429_v18 = vpack.c.bf16 %v787_v13, %v785_v8  ;;  %v3723_v21 = vpop.permute.xlu0 %3722  ;;  %v3354_v22 = vpack.c.bf16 %v168_v16, %v166_v11  ;;  %v3357_v24 = vpack.c.bf16 %v167_v17, %v165_v12 }
  0xb7   :  { %v3730_v19 = vunpack.i.h.bf16 %v3728_v14  ;;  %v3729_v20 = vunpack.i.l.bf16 %v3728_v14  ;;  %v3725_v44 = vunpack.i.h.bf16 %v3723_v21  ;;  %v3724_v48 = vunpack.i.l.bf16 %v3723_v21 }
  0xb8   :  { %3427 = vmatprep.subr.msk.bf16.mxu1 %vm4829_vm3, %v3426_v15  ;;  %3957 = vrot.lane.b32.xlu1 %v4645_v25, %s4534_s26 }
  0xb9   :  { %v172_v49 = vsel %vm164_vm0, %v3729_v20, %v3730_v19  ;;  %3355 = vmatprep.subr.msk.bf16.mxu0 %vm4829_vm3, %v3354_v22  ;;  %3952 = vrot.lane.b32.xlu0 %v4647_v26, %s4534_s26  ;;  %v170_v51 = vsel %vm164_vm0, %v3724_v48, %v3725_v44 }
  0xba   :  { %3358 = vmatpush1.bf16.msk.msra.mxu0 %vm4841_vm4, %v3357_v24  ;;  %3430 = vmatpush1.bf16.msk.msra.mxu1 %vm4841_vm4, %v3429_v18  ;;  %v3738_v54 = vpop.permute.xlu1 %3737  ;;  %v3733_v57 = vpop.permute.xlu0 %3732  ;;  %v3360_v58 = vpack.c.bf16 %v172_v49, %v170_v51 }
  0xbb   :  { %v3740_v55 = vunpack.i.h.bf16 %v3738_v54  ;;  %v3739_v56 = vunpack.i.l.bf16 %v3738_v54  ;;  %v3735_v59 = vunpack.i.h.bf16 %v3733_v57  ;;  %v3734_v60 = vunpack.i.l.bf16 %v3733_v57 }
  0xbc   :  { %3967 = vrot.lane.b32.xlu1 %v4775_v42, %s4534_s26  ;;  %3361 = vmatprep.subr.msk.bf16.mxu0 %vm4829_vm3, %v3360_v58 }
  0xbd   :  { %v792_v61 = vsel %vm164_vm0, %v3739_v56, %v3740_v55  ;;  %3962 = vrot.lane.b32.xlu0 %v4781_v43, %s4534_s26  ;;  %v790_v62 = vsel %vm164_vm0, %v3734_v60, %v3735_v59 }
  0xbe   :  { %v3748_v63 = vpop.permute.xlu1 %3747  ;;  %v3743_v3 = vpop.permute.xlu0 %3742  ;;  %v3432_v4 = vpack.c.bf16 %v792_v61, %v790_v62 }
  0xbf   :  { %v3750_v1 = vunpack.i.h.bf16 %v3748_v63  ;;  %v3749_v2 = vunpack.i.l.bf16 %v3748_v63  ;;  %v3745_v5 = vunpack.i.h.bf16 %v3743_v3  ;;  %v3744_v6 = vunpack.i.l.bf16 %v3743_v3 }
  0xc0   :  { %3977 = vrot.lane.b32.xlu1 %v4787_v45, %s4534_s26  ;;  %3433 = vmatprep.subr.msk.bf16.mxu1 %vm4829_vm3, %v3432_v4  ;;  %v4413_v4 = vld [vmem:[#allocation8 + $0x4] ss:$12 sps:$4 sm:$0xff]  }
  0xc1   :  { %v789_v7 = vsel %vm164_vm0, %v3749_v2, %v3734_v60  ;;  %v791_v8 = vsel %vm164_vm0, %v3750_v1, %v3739_v56  ;;  %3972 = vrot.lane.b32.xlu0 %v4793_v46, %s4534_s26  ;;  %v171_v9 = vsel %vm164_vm0, %v3745_v5, %v3729_v20  ;;  %v169_v11 = vsel %vm164_vm0, %v3744_v6, %v3724_v48 }
  0xc2   :  { %v226_v12 = vpop.permute.xlu1 %225  ;;  %v3435_v13 = vpack.c.bf16 %v791_v8, %v789_v7  ;;  %v224_v14 = vpop.permute.xlu0 %223  ;;  %v3363_v15 = vpack.c.bf16 %v171_v9, %v169_v11  ;;  %1478 = vmatprep.mubr.bf16.mxu0 %v4413_v4  ;;  %1584 = vmatprep.mubr.bf16.mxu1 %v4413_v4  ;;  %v4426_v7 = vld [vmem:[#allocation10 + $0x20] ss:$12 sps:$4 sm:$0xff]  }
  0xc3   :  { %v235_v16 = vsel %vm233_vm5, %v224_v14, %v226_v12 }
  0xc4   :  { %3987 = vrot.lane.b32.xlu1 %v4650_v27, %s4534_s26  ;;  %3436 = vmatpush1.bf16.msk.msra.mxu1 %vm4841_vm4, %v3435_v13 }
  0xc5   :  { %3364 = vmatpush1.bf16.msk.msra.mxu0 %vm4841_vm4, %v3363_v15  ;;  %3982 = vrot.lane.b32.xlu0 %v4652_v28, %s4534_s26 }
  0xc6   :  { %1450 = vmatprep.subr.bf16.mxu0 %v235_v16  ;;  %v846_v17 = vpop.permute.xlu1 %845  ;;  %v844_v18 = vpop.permute.xlu0 %843 }
  0xc7   :  { %v854_v19 = vsel %vm233_vm5, %v844_v18, %v846_v17 }
  0xc8   :  { %618 = vrot.lane.b32.xlu1 %v4530_v33, %s4535_s27  ;;  %1556 = vmatprep.subr.bf16.mxu1 %v854_v19 }
  0xc9   :  { %616 = vrot.lane.b32.xlu0 %v4661_v29, %s4535_s27 }
  0xca   :  { %v842_v20 = vpop.permute.xlu1 %841  ;;  %v222_v21 = vpop.permute.xlu0 %221 }
  0xcb   :  { %v853_v22 = vsel %vm233_vm5, %v842_v20, %v844_v18  ;;  %v234_v24 = vsel %vm233_vm5, %v222_v21, %v224_v14 }
  0xcc   :  { %1229 = vrot.lane.b32.xlu1 %v4530_v33, %s4535_s27  ;;  %1557 = vmatpush1.bf16.msra.mxu1 %v853_v22 }
  0xcd   :  { %1227 = vrot.lane.b32.xlu0 %v4671_v31, %s4535_s27  ;;  %1451 = vmatpush1.bf16.msra.mxu0 %v234_v24 }
  0xce   :  { %v232_v44 = vpop.permute.xlu1 %231  ;;  %v230_v48 = vpop.permute.xlu0 %229 }
  0xcf   :  { %v237_v49 = vsel %vm233_vm5, %v230_v48, %v232_v44 }
  0xd0   :  { %1225 = vrot.lane.b32.xlu1 %v4675_v32, %s4535_s27  ;;  %1452 = vmatprep.subr.bf16.mxu0 %v237_v49 }
  0xd1   :  { %614 = vrot.lane.b32.xlu0 %v4665_v30, %s4535_s27 }
  0xd2   :  { %v852_v51 = vpop.permute.xlu1 %851  ;;  %v850_v54 = vpop.permute.xlu0 %849 }
  0xd3   :  { %v856_v55 = vsel %vm233_vm5, %v850_v54, %v852_v51 }
  0xd4   :  { %624 = vrot.lane.b32.xlu1 %v4530_v33, %s4535_s27  ;;  %1558 = vmatprep.subr.bf16.mxu1 %v856_v55 }
  0xd5   :  { %622 = vrot.lane.b32.xlu0 %v4685_v34, %s4535_s27 }
  0xd6   :  { %v848_v56 = vpop.permute.xlu1 %847  ;;  %v228_v57 = vpop.permute.xlu0 %227 }
  0xd7   :  { %v855_v58 = vsel %vm233_vm5, %v848_v56, %v850_v54  ;;  %v236_v59 = vsel %vm233_vm5, %v228_v57, %v230_v48 }
  0xd8   :  { %1235 = vrot.lane.b32.xlu1 %v4530_v33, %s4535_s27  ;;  %1559 = vmatpush1.bf16.msra.mxu1 %v855_v58 }
  0xd9   :  { %1233 = vrot.lane.b32.xlu0 %v4695_v36, %s4535_s27  ;;  %1453 = vmatpush1.bf16.msra.mxu0 %v236_v59 }
  0xda   :  { %v3758_v60 = vpop.permute.xlu1 %3757  ;;  %v3753_v63 = vpop.permute.xlu0 %3752 }
  0xdb   :  { %v3760_v61 = vunpack.i.h.bf16 %v3758_v60  ;;  %v3759_v62 = vunpack.i.l.bf16 %v3758_v60  ;;  %v3755_v1 = vunpack.i.h.bf16 %v3753_v63  ;;  %v3754_v2 = vunpack.i.l.bf16 %v3753_v63 }
  0xdc   :  { %1231 = vrot.lane.b32.xlu1 %v4699_v37, %s4535_s27 }
  0xdd   :  { %v302_v3 = vsel %vm298_vm6, %v3759_v62, %v3760_v61  ;;  %620 = vrot.lane.b32.xlu0 %v4689_v35, %s4535_s27  ;;  %v300_v5 = vsel %vm298_vm6, %v3754_v2, %v3755_v1 }
  0xde   :  { %v3768_v6 = vpop.permute.xlu1 %3767  ;;  %v3763_v8 = vpop.permute.xlu0 %3762  ;;  %v3366_v9 = vpack.c.bf16 %v302_v3, %v300_v5 }
  0xdf   :  { %v3770_v50 = vunpack.i.h.bf16 %v3768_v6  ;;  %v3769_v52 = vunpack.i.l.bf16 %v3768_v6  ;;  %v3765_v11 = vunpack.i.h.bf16 %v3763_v8  ;;  %v3764_v12 = vunpack.i.l.bf16 %v3763_v8 }
  0xe0   :  { %3997 = vrot.lane.b32.xlu1 %v4747_v38, %s4536_s28  ;;  %3367 = vmatprep.subr.msk.bf16.mxu0 %vm4921_vm8, %v3366_v9 }
  0xe1   :  { %v916_v13 = vsel %vm298_vm6, %v3769_v52, %v3770_v50  ;;  %3992 = vrot.lane.b32.xlu0 %v4753_v39, %s4536_s28  ;;  %v914_v14 = vsel %vm298_vm6, %v3764_v12, %v3765_v11 }
  0xe2   :  { %v3778_v15 = vpop.permute.xlu1 %3777  ;;  %v3773_v18 = vpop.permute.xlu0 %3772  ;;  %v3438_v19 = vpack.c.bf16 %v916_v13, %v914_v14 }
  0xe3   :  { %v3780_v16 = vunpack.i.h.bf16 %v3778_v15  ;;  %v3779_v17 = vunpack.i.l.bf16 %v3778_v15  ;;  %v3775_v20 = vunpack.i.h.bf16 %v3773_v18  ;;  %v3774_v38 = vunpack.i.l.bf16 %v3773_v18 }
  0xe4   :  { %4007 = vrot.lane.b32.xlu1 %v4759_v40, %s4536_s28  ;;  %3439 = vmatprep.subr.msk.bf16.mxu1 %vm4921_vm8, %v3438_v19 }
  0xe5   :  { %v913_v39 = vsel %vm298_vm6, %v3779_v17, %v3764_v12  ;;  %v915_v21 = vsel %vm298_vm6, %v3780_v16, %v3769_v52  ;;  %4002 = vrot.lane.b32.xlu0 %v4765_v41, %s4536_s28  ;;  %v301_v53 = vsel %vm298_vm6, %v3775_v20, %v3759_v62  ;;  %v299_v22 = vsel %vm298_vm6, %v3774_v38, %v3754_v2 }
  0xe6   :  { %v3788_v24 = vpop.permute.xlu1 %3787  ;;  %v3441_v40 = vpack.c.bf16 %v915_v21, %v913_v39  ;;  %v3783_v49 = vpop.permute.xlu0 %3782  ;;  %v3369_v51 = vpack.c.bf16 %v301_v53, %v299_v22 }
  0xe7   :  { %v3790_v44 = vunpack.i.h.bf16 %v3788_v24  ;;  %v3789_v48 = vunpack.i.l.bf16 %v3788_v24  ;;  %v3785_v54 = vunpack.i.h.bf16 %v3783_v49  ;;  %v3784_v55 = vunpack.i.l.bf16 %v3783_v49 }
  0xe8   :  { %4017 = vrot.lane.b32.xlu1 %v4645_v25, %s4536_s28  ;;  %3442 = vmatpush1.bf16.msk.msra.mxu1 %vm4943_vm10, %v3441_v40 }
  0xe9   :  { %v306_v41 = vsel %vm298_vm6, %v3789_v48, %v3790_v44  ;;  %4012 = vrot.lane.b32.xlu0 %v4647_v26, %s4536_s28  ;;  %3370 = vmatpush1.bf16.msk.msra.mxu0 %vm4943_vm10, %v3369_v51  ;;  %v304_v56 = vsel %vm298_vm6, %v3784_v55, %v3785_v54 }
  0xea   :  { %v3798_v57 = vpop.permute.xlu1 %3797  ;;  %v3793_v60 = vpop.permute.xlu0 %3792  ;;  %v3372_v61 = vpack.c.bf16 %v306_v41, %v304_v56 }
  0xeb   :  { %v3800_v58 = vunpack.i.h.bf16 %v3798_v57  ;;  %v3799_v59 = vunpack.i.l.bf16 %v3798_v57  ;;  %v3795_v62 = vunpack.i.h.bf16 %v3793_v60  ;;  %v3794_v25 = vunpack.i.l.bf16 %v3793_v60 }
  0xec   :  { %4027 = vrot.lane.b32.xlu1 %v4775_v42, %s4536_s28  ;;  %3373 = vmatprep.subr.msk.bf16.mxu0 %vm4921_vm8, %v3372_v61 }
  0xed   :  { %v920_v63 = vsel %vm298_vm6, %v3799_v59, %v3800_v58  ;;  %4022 = vrot.lane.b32.xlu0 %v4781_v43, %s4536_s28  ;;  %v918_v26 = vsel %vm298_vm6, %v3794_v25, %v3795_v62 }
  0xee   :  { %v3808_v1 = vpop.permute.xlu1 %3807  ;;  %v3803_v4 = vpop.permute.xlu0 %3802  ;;  %v3444_v5 = vpack.c.bf16 %v920_v63, %v918_v26 }
  0xef   :  { %v3810_v2 = vunpack.i.h.bf16 %v3808_v1  ;;  %v3809_v3 = vunpack.i.l.bf16 %v3808_v1  ;;  %v3805_v6 = vunpack.i.h.bf16 %v3803_v4  ;;  %v3804_v50 = vunpack.i.l.bf16 %v3803_v4 }
  0xf0   :  { %4037 = vrot.lane.b32.xlu1 %v4787_v45, %s4536_s28  ;;  %3445 = vmatprep.subr.msk.bf16.mxu1 %vm4921_vm8, %v3444_v5 }
  0xf1   :  { %v917_v42 = vsel %vm298_vm6, %v3809_v3, %v3794_v25  ;;  %v919_v52 = vsel %vm298_vm6, %v3810_v2, %v3799_v59  ;;  %4032 = vrot.lane.b32.xlu0 %v4793_v46, %s4536_s28  ;;  %v305_v43 = vsel %vm298_vm6, %v3805_v6, %v3789_v48  ;;  %v303_v8 = vsel %vm298_vm6, %v3804_v50, %v3784_v55 }
  0xf2   :  { %v3818_v9 = vpop.permute.xlu1 %3817  ;;  %v3447_v11 = vpack.c.bf16 %v919_v52, %v917_v42  ;;  %v3813_v45 = vpop.permute.xlu0 %3812  ;;  %v3375_v14 = vpack.c.bf16 %v305_v43, %v303_v8 }
  0xf3   :  { %v3820_v12 = vunpack.i.h.bf16 %v3818_v9  ;;  %v3819_v13 = vunpack.i.l.bf16 %v3818_v9  ;;  %v3815_v15 = vunpack.i.h.bf16 %v3813_v45  ;;  %v3814_v16 = vunpack.i.l.bf16 %v3813_v45 }
  0xf4   :  { %4047 = vrot.lane.b32.xlu1 %v4650_v27, %s4536_s28  ;;  %3448 = vmatpush1.bf16.msk.msra.mxu1 %vm4943_vm10, %v3447_v11 }
  0xf5   :  { %v383_v46 = vsel %vm379_vm11, %v3819_v13, %v3820_v12  ;;  %4042 = vrot.lane.b32.xlu0 %v4652_v28, %s4536_s28  ;;  %3376 = vmatpush1.bf16.msk.msra.mxu0 %vm4943_vm10, %v3375_v14  ;;  %v381_v17 = vsel %vm379_vm11, %v3814_v16, %v3815_v15 }
  0xf6   :  { %v3828_v18 = vpop.permute.xlu1 %3827  ;;  %v3823_v38 = vpop.permute.xlu0 %3822  ;;  %v3378_v39 = vpack.c.bf16 %v383_v46, %v381_v17 }
  0xf7   :  { %v3830_v19 = vunpack.i.h.bf16 %v3828_v18  ;;  %v3829_v20 = vunpack.i.l.bf16 %v3828_v18  ;;  %v3825_v21 = vunpack.i.h.bf16 %v3823_v38  ;;  %v3824_v27 = vunpack.i.l.bf16 %v3823_v38 }
  0xf8   :  { %3379 = vmatprep.subr.msk.bf16.mxu0 %vm4829_vm3, %v3378_v39  ;;  %4057 = vrot.lane.b32.xlu1 %v4528_v0, %s4529_s25 }
  0xf9   :  { %v996_v53 = vsel %vm379_vm11, %v3829_v20, %v3830_v19  ;;  %v994_v22 = vsel %vm379_vm11, %v3824_v27, %v3825_v21  ;;  %4052 = vrot.lane.b32.xlu0 %v4528_v0, %s4529_s25 }
  0xfa   :  { %v3838_v28 = vpop.permute.xlu1 %3837  ;;  %v3833_v44 = vpop.permute.xlu0 %3832  ;;  %v3450_v48 = vpack.c.bf16 %v996_v53, %v994_v22 }
  0xfb   :  { %v3840_v24 = vunpack.i.h.bf16 %v3838_v28  ;;  %v3839_v40 = vunpack.i.l.bf16 %v3838_v28  ;;  %v3835_v49 = vunpack.i.h.bf16 %v3833_v44  ;;  %v3834_v51 = vunpack.i.l.bf16 %v3833_v44 }
  0xfc   :  { %3451 = vmatprep.subr.msk.bf16.mxu1 %vm4829_vm3, %v3450_v48  ;;  %4067 = vrot.lane.b32.xlu1 %v4528_v0, %s4529_s25 }
  0xfd   :  { %v993_v54 = vsel %vm379_vm11, %v3839_v40, %v3824_v27  ;;  %v995_v55 = vsel %vm379_vm11, %v3840_v24, %v3829_v20  ;;  %v382_v41 = vsel %vm379_vm11, %v3835_v49, %v3819_v13  ;;  %v380_v56 = vsel %vm379_vm11, %v3834_v51, %v3814_v16  ;;  %4062 = vrot.lane.b32.xlu0 %v4528_v0, %s4529_s25 }
  0xfe   :  { %v3848_v57 = vpop.permute.xlu1 %3847  ;;  %v3453_v58 = vpack.c.bf16 %v995_v55, %v993_v54  ;;  %v3843_v61 = vpop.permute.xlu0 %3842  ;;  %v3381_v62 = vpack.c.bf16 %v382_v41, %v380_v56 }
  0xff   :  { %v3850_v59 = vunpack.i.h.bf16 %v3848_v57  ;;  %v3849_v60 = vunpack.i.l.bf16 %v3848_v57  ;;  %v3845_v25 = vunpack.i.h.bf16 %v3843_v61  ;;  %v3844_v63 = vunpack.i.l.bf16 %v3843_v61 }
 0x100   :  { %3454 = vmatpush1.bf16.msk.msra.mxu1 %vm4841_vm4, %v3453_v58  ;;  %3382 = vmatpush1.bf16.msk.msra.mxu0 %vm4841_vm4, %v3381_v62 }
 0x101   :  { %v387_v26 = vsel %vm379_vm11, %v3849_v60, %v3850_v59  ;;  %v385_v1 = vsel %vm379_vm11, %v3844_v63, %v3845_v25  ;;  %1810 = vrot.lane.b32.xlu0 %v4530_v33, %s4526_s9  ;;  %2418 = vrot.lane.b32.xlu1 %v4530_v33, %s4526_s9 }
 0x102   :  { %v3858_v2 = vpop.permute.xlu1 %3857  ;;  %v3853_v5 = vpop.permute.xlu0 %3852  ;;  %v3384_v6 = vpack.c.bf16 %v387_v26, %v385_v1 }
 0x103   :  { %v3860_v3 = vunpack.i.h.bf16 %v3858_v2  ;;  %v3859_v4 = vunpack.i.l.bf16 %v3858_v2  ;;  %v3855_v50 = vunpack.i.h.bf16 %v3853_v5  ;;  %v3854_v42 = vunpack.i.l.bf16 %v3853_v5 }
 0x104   :  { %3385 = vmatprep.subr.msk.bf16.mxu0 %vm4829_vm3, %v3384_v6 }
 0x105   :  { %v1000_v52 = vsel %vm379_vm11, %v3859_v4, %v3860_v3  ;;  %v998_v43 = vsel %vm379_vm11, %v3854_v42, %v3855_v50  ;;  %1816 = vrot.lane.b32.xlu0 %v4530_v33, %s4526_s9  ;;  %2424 = vrot.lane.b32.xlu1 %v4530_v33, %s4526_s9 }
 0x106   :  { %v3868_v8 = vpop.permute.xlu1 %3867  ;;  %v3863_v12 = vpop.permute.xlu0 %3862  ;;  %v3456_v13 = vpack.c.bf16 %v1000_v52, %v998_v43 }
 0x107   :  { %v3870_v9 = vunpack.i.h.bf16 %v3868_v8  ;;  %v3869_v11 = vunpack.i.l.bf16 %v3868_v8  ;;  %v3865_v45 = vunpack.i.h.bf16 %v3863_v12  ;;  %v3864_v14 = vunpack.i.l.bf16 %v3863_v12 }
 0x108   :  { %3457 = vmatprep.subr.msk.bf16.mxu1 %vm4829_vm3, %v3456_v13 }
 0x109   :  { %v997_v15 = vsel %vm379_vm11, %v3869_v11, %v3854_v42  ;;  %v999_v16 = vsel %vm379_vm11, %v3870_v9, %v3859_v4  ;;  %v386_v46 = vsel %vm379_vm11, %v3865_v45, %v3849_v60  ;;  %v384_v17 = vsel %vm379_vm11, %v3864_v14, %v3844_v63  ;;  %4072 = vrot.lane.b32.xlu0 %v4528_v0, %s4531_s2 }
 0x10a   :  { %v3878_v18 = vpop.permute.xlu1 %3877  ;;  %v3459_v19 = vpack.c.bf16 %v999_v16, %v997_v15  ;;  %4077 = vrot.lane.b32.xlu1 %v4528_v0, %s4531_s2  ;;  %v3873_v20 = vpop.permute.xlu0 %3872  ;;  %v3387_v38 = vpack.c.bf16 %v386_v46, %v384_v17 }
 0x10b   :  { %v3880_v39 = vunpack.i.h.bf16 %v3878_v18  ;;  %v3879_v21 = vunpack.i.l.bf16 %v3878_v18  ;;  %v3875_v27 = vunpack.i.h.bf16 %v3873_v20  ;;  %v3874_v53 = vunpack.i.l.bf16 %v3873_v20 }
 0x10c   :  { %3460 = vmatpush1.bf16.msk.msra.mxu1 %vm4841_vm4, %v3459_v19  ;;  %3388 = vmatpush1.bf16.msk.msra.mxu0 %vm4841_vm4, %v3387_v38 }
 0x10d   :  { %1568 = vmatprep.subr.bf16.mxu1 %v4671_v31  ;;  %1462 = vmatprep.subr.bf16.mxu0 %v4661_v29  ;;  %v480_v49 = vsel %vm476_vm12, %v3879_v21, %v3880_v39  ;;  %v478_v31 = vsel %vm476_vm12, %v3874_v53, %v3875_v27 }
 0x10e   :  { %v3888_v22 = vpop.permute.xlu1 %3887  ;;  %4082 = vrot.lane.b32.xlu0 %v4528_v0, %s4531_s2  ;;  %v3883_v40 = vpop.permute.xlu0 %3882  ;;  %4087 = vrot.lane.b32.xlu1 %v4528_v0, %s4531_s2 }
 0x10f   :  { %v3890_v28 = vunpack.i.h.bf16 %v3888_v22  ;;  %v3889_v24 = vunpack.i.l.bf16 %v3888_v22  ;;  %v3885_v44 = vunpack.i.h.bf16 %v3883_v40  ;;  %v3884_v48 = vunpack.i.l.bf16 %v3883_v40 }
 0x110   :  { %1569 = vmatpush1.bf16.msra.mxu1 %v4675_v32  ;;  %1463 = vmatpush1.bf16.msra.mxu0 %v4665_v30  ;;  %v3390_v30 = vpack.c.bf16 %v480_v49, %v478_v31 }
 0x111   :  { %v1092_v51 = vsel %vm476_vm12, %v3889_v24, %v3890_v28  ;;  %1570 = vmatprep.subr.bf16.mxu1 %v4695_v36  ;;  %v1090_v29 = vsel %vm476_vm12, %v3884_v48, %v3885_v44  ;;  %1464 = vmatprep.subr.bf16.mxu0 %v4685_v34 }
 0x112   :  { %v3898_v54 = vpop.permute.xlu1 %3897  ;;  %4092 = vrot.lane.b32.xlu0 %v4528_v0, %s4532_s22  ;;  %v3893_v41 = vpop.permute.xlu0 %3892  ;;  %v3462_v56 = vpack.c.bf16 %v1092_v51, %v1090_v29  ;;  %4097 = vrot.lane.b32.xlu1 %v4528_v0, %s4532_s22 }
 0x113   :  { %v3900_v55 = vunpack.i.h.bf16 %v3898_v54  ;;  %v3899_v32 = vunpack.i.l.bf16 %v3898_v54  ;;  %v3895_v57 = vunpack.i.h.bf16 %v3893_v41  ;;  %v3894_v58 = vunpack.i.l.bf16 %v3893_v41 }
 0x114   :  { %1571 = vmatpush1.bf16.msra.mxu1 %v4699_v37  ;;  %1465 = vmatpush1.bf16.msra.mxu0 %v4689_v35 }
 0x115   :  { %v1089_v36 = vsel %vm476_vm12, %v3899_v32, %v3884_v48  ;;  %v1091_v59 = vsel %vm476_vm12, %v3900_v55, %v3889_v24  ;;  %3463 = vmatprep.subr.msk.bf16.mxu1 %vm4921_vm8, %v3462_v56  ;;  %v479_v34 = vsel %vm476_vm12, %v3895_v57, %v3879_v21  ;;  %v477_v60 = vsel %vm476_vm12, %v3894_v58, %v3874_v53 }
 0x116   :  { %3391 = vmatprep.subr.msk.bf16.mxu0 %vm4921_vm8, %v3390_v30  ;;  %v3908_v61 = vpop.permute.xlu1 %3907  ;;  %v3465_v62 = vpack.c.bf16 %v1091_v59, %v1089_v36  ;;  %v3903_v63 = vpop.permute.xlu0 %3902  ;;  %v3393_v26 = vpack.c.bf16 %v479_v34, %v477_v60  ;;  %4102 = vrot.lane.b32.xlu0 %v4528_v0, %s4532_s22 }
 0x117   :  { %v3910_v37 = vunpack.i.h.bf16 %v3908_v61  ;;  %v3909_v25 = vunpack.i.l.bf16 %v3908_v61  ;;  %v3905_v1 = vunpack.i.h.bf16 %v3903_v63  ;;  %v3904_v2 = vunpack.i.l.bf16 %v3903_v63  ;;  %4107 = vrot.lane.b32.xlu1 %v4528_v0, %s4532_s22 }
 0x118   :  { %3466 = vmatpush1.bf16.msk.msra.mxu1 %vm4943_vm10, %v3465_v62  ;;  %3394 = vmatpush1.bf16.msk.msra.mxu0 %vm4943_vm10, %v3393_v26 }
 0x119   :  { %v484_v35 = vsel %vm476_vm12, %v3909_v25, %v3910_v37  ;;  %v482_v3 = vsel %vm476_vm12, %v3904_v2, %v3905_v1 }
 0x11a   :  { %v3918_v4 = vpop.permute.xlu1 %3917  ;;  %v3913_v50 = vpop.permute.xlu0 %3912  ;;  %v3396_v42 = vpack.c.bf16 %v484_v35, %v482_v3 }
 0x11b   :  { %v3920_v5 = vunpack.i.h.bf16 %v3918_v4  ;;  %v3919_v6 = vunpack.i.l.bf16 %v3918_v4  ;;  %v3915_v52 = vunpack.i.h.bf16 %v3913_v50  ;;  %v3914_v43 = vunpack.i.l.bf16 %v3913_v50 }
 0x11c   :  { %3397 = vmatprep.subr.msk.bf16.mxu0 %vm4921_vm8, %v3396_v42 }
 0x11d   :  { %v1096_v8 = vsel %vm476_vm12, %v3919_v6, %v3920_v5  ;;  %v1094_v9 = vsel %vm476_vm12, %v3914_v43, %v3915_v52 }
 0x11e   :  { %v3928_v11 = vpop.permute.xlu1 %3927  ;;  %v3923_v45 = vpop.permute.xlu0 %3922  ;;  %v3468_v14 = vpack.c.bf16 %v1096_v8, %v1094_v9 }
 0x11f   :  { %v3930_v12 = vunpack.i.h.bf16 %v3928_v11  ;;  %v3929_v13 = vunpack.i.l.bf16 %v3928_v11  ;;  %v3925_v15 = vunpack.i.h.bf16 %v3923_v45  ;;  %v3924_v16 = vunpack.i.l.bf16 %v3923_v45 }
 0x120   :  { %3469 = vmatprep.subr.msk.bf16.mxu1 %vm4921_vm8, %v3468_v14 }
 0x121   :  { %v1093_v46 = vsel %vm476_vm12, %v3929_v13, %v3914_v43  ;;  %v1095_v17 = vsel %vm476_vm12, %v3930_v12, %v3919_v6  ;;  %v483_v18 = vsel %vm476_vm12, %v3925_v15, %v3909_v25  ;;  %v481_v19 = vsel %vm476_vm12, %v3924_v16, %v3904_v2 }
 0x122   :  { %v3938_v20 = vpop.permute.xlu1 %3937  ;;  %v3471_v38 = vpack.c.bf16 %v1095_v17, %v1093_v46  ;;  %v3933_v27 = vpop.permute.xlu0 %3932  ;;  %v3399_v53 = vpack.c.bf16 %v483_v18, %v481_v19 }
 0x123   :  { %v3940_v39 = vunpack.i.h.bf16 %v3938_v20  ;;  %v3939_v21 = vunpack.i.l.bf16 %v3938_v20  ;;  %v3935_v22 = vunpack.i.h.bf16 %v3933_v27  ;;  %v3934_v28 = vunpack.i.l.bf16 %v3933_v27 }
 0x124   :  { %3472 = vmatpush1.bf16.msk.msra.mxu1 %vm4943_vm10, %v3471_v38  ;;  %3400 = vmatpush1.bf16.msk.msra.mxu0 %vm4943_vm10, %v3399_v53 }
 0x125   :  { %v561_v24 = vsel %vm557_vm13, %v3939_v21, %v3940_v39  ;;  %v559_v40 = vsel %vm557_vm13, %v3934_v28, %v3935_v22 }
 0x126   :  { %v3948_v44 = vpop.permute.xlu1 %3947  ;;  %v3943_v31 = vpop.permute.xlu0 %3942  ;;  %v3402_v51 = vpack.c.bf16 %v561_v24, %v559_v40 }
 0x127   :  { %v3950_v48 = vunpack.i.h.bf16 %v3948_v44  ;;  %v3949_v49 = vunpack.i.l.bf16 %v3948_v44  ;;  %v3945_v29 = vunpack.i.h.bf16 %v3943_v31  ;;  %v3944_v54 = vunpack.i.l.bf16 %v3943_v31 }
 0x128   :  { %3403 = vmatprep.subr.msk.bf16.mxu0 %vm4829_vm3, %v3402_v51 }
 0x129   :  { %v1172_v55 = vsel %vm557_vm13, %v3949_v49, %v3950_v48  ;;  %v1170_v32 = vsel %vm557_vm13, %v3944_v54, %v3945_v29 }
 0x12a   :  { %v3958_v41 = vpop.permute.xlu1 %3957  ;;  %v3474_v30 = vpack.c.bf16 %v1172_v55, %v1170_v32 }
 0x12b   :  { %v3960_v56 = vunpack.i.h.bf16 %v3958_v41  ;;  %v3959_v57 = vunpack.i.l.bf16 %v3958_v41  ;;  %v3953_v58 = vpop.permute.xlu0 %3952 }
 0x12c   :  { %v3955_v36 = vunpack.i.h.bf16 %v3953_v58  ;;  %v3954_v59 = vunpack.i.l.bf16 %v3953_v58  ;;  %3475 = vmatprep.subr.msk.bf16.mxu1 %vm4829_vm3, %v3474_v30  ;;  %v4411_v30 = vld [vmem:[#allocation8] ss:$12 sps:$4 sm:$0xff]  }
 0x12d   :  { %v1169_v34 = vsel %vm557_vm13, %v3959_v57, %v3944_v54  ;;  %v1171_v60 = vsel %vm557_vm13, %v3960_v56, %v3949_v49 }
 0x12e   :  { %v560_v61 = vsel %vm557_vm13, %v3955_v36, %v3939_v21  ;;  %v558_v62 = vsel %vm557_vm13, %v3954_v59, %v3934_v28  ;;  %v3968_v37 = vpop.permute.xlu1 %3967  ;;  %v3477_v25 = vpack.c.bf16 %v1171_v60, %v1169_v34  ;;  %v4414_v59 = vld [vmem:[#allocation8 + $0x1c] ss:$12 sps:$4 sm:$0xff]  }
 0x12f   :  { %v3970_v63 = vunpack.i.h.bf16 %v3968_v37  ;;  %v3969_v26 = vunpack.i.l.bf16 %v3968_v37  ;;  %v3963_v1 = vpop.permute.xlu0 %3962  ;;  %v3405_v2 = vpack.c.bf16 %v560_v61, %v558_v62 }
 0x130   :  { %v3965_v35 = vunpack.i.h.bf16 %v3963_v1  ;;  %v3964_v3 = vunpack.i.l.bf16 %v3963_v1  ;;  %3478 = vmatpush1.bf16.msk.msra.mxu1 %vm4841_vm4, %v3477_v25 }
 0x131   :  { %v565_v4 = vsel %vm557_vm13, %v3969_v26, %v3970_v63  ;;  %3406 = vmatpush1.bf16.msk.msra.mxu0 %vm4841_vm4, %v3405_v2 }
 0x132   :  { %v563_v5 = vsel %vm557_vm13, %v3964_v3, %v3965_v35  ;;  %v3978_v6 = vpop.permute.xlu1 %3977 }
 0x133   :  { %v3980_v50 = vunpack.i.h.bf16 %v3978_v6  ;;  %v3979_v42 = vunpack.i.l.bf16 %v3978_v6  ;;  %v3973_v52 = vpop.permute.xlu0 %3972  ;;  %v3408_v43 = vpack.c.bf16 %v565_v4, %v563_v5  ;;  %v4416_v5 = vld [vmem:[#allocation8 + $0x18] ss:$12 sps:$4 sm:$0xff]  }
 0x134   :  { %v3975_v8 = vunpack.i.h.bf16 %v3973_v52  ;;  %v3974_v9 = vunpack.i.l.bf16 %v3973_v52 }
 0x135   :  { %v1176_v11 = vsel %vm557_vm13, %v3979_v42, %v3980_v50  ;;  %3409 = vmatprep.subr.msk.bf16.mxu0 %vm4829_vm3, %v3408_v43 }
 0x136   :  { %v1174_v12 = vsel %vm557_vm13, %v3974_v9, %v3975_v8  ;;  %v3988_v13 = vpop.permute.xlu1 %3987 }
 0x137   :  { %v3990_v45 = vunpack.i.h.bf16 %v3988_v13  ;;  %v3989_v14 = vunpack.i.l.bf16 %v3988_v13  ;;  %v3983_v15 = vpop.permute.xlu0 %3982  ;;  %v3480_v16 = vpack.c.bf16 %v1176_v11, %v1174_v12 }
 0x138   :  { %v3985_v46 = vunpack.i.h.bf16 %v3983_v15  ;;  %v3984_v17 = vunpack.i.l.bf16 %v3983_v15 }
 0x139   :  { %v1173_v18 = vsel %vm557_vm13, %v3989_v14, %v3974_v9  ;;  %v1175_v19 = vsel %vm557_vm13, %v3990_v45, %v3979_v42  ;;  %3481 = vmatprep.subr.msk.bf16.mxu1 %vm4829_vm3, %v3480_v16  ;;  %v5952_v14 = vmov 0  }
 0x13a   :  { %v564_v20 = vsel %vm557_vm13, %v3985_v46, %v3969_v26  ;;  %v562_v38 = vsel %vm557_vm13, %v3984_v17, %v3964_v3  ;;  %v619_v39 = vpop.permute.xlu1 %618  ;;  %v3483_v21 = vpack.c.bf16 %v1175_v19, %v1173_v18 }
 0x13b   :  { %v617_v27 = vpop.permute.xlu0 %616  ;;  %v3411_v53 = vpack.c.bf16 %v564_v20, %v562_v38 }
 0x13c   :  { %3484 = vmatpush1.bf16.msk.msra.mxu1 %vm4841_vm4, %v3483_v21  ;;  %v628_v22 = vsel %vm626_vm14, %v617_v27, %v619_v39 }
 0x13d   :  { %3412 = vmatpush1.bf16.msk.msra.mxu0 %vm4841_vm4, %v3411_v53 }
 0x13e   :  { %1474 = vmatprep.subr.bf16.mxu0 %v628_v22  ;;  %v1230_v28 = vpop.permute.xlu1 %1229 }
 0x13f   :  { %v1228_v24 = vpop.permute.xlu0 %1227 }
 0x140   :  { %v1238_v40 = vsel %vm626_vm14, %v1228_v24, %v1230_v28 }
 0x141   :  { %1580 = vmatprep.subr.bf16.mxu1 %v1238_v40 }
 0x142   :  { %v1226_v44 = vpop.permute.xlu1 %1225 }
 0x143   :  { %v615_v48 = vpop.permute.xlu0 %614  ;;  %v1237_v49 = vsel %vm626_vm14, %v1226_v44, %v1228_v24 }
 0x144   :  { %v627_v31 = vsel %vm626_vm14, %v615_v48, %v617_v27  ;;  %1581 = vmatpush1.bf16.msra.mxu1 %v1237_v49 }
 0x145   :  { %1475 = vmatpush1.bf16.msra.mxu0 %v627_v31 }
 0x146   :  { %v625_v51 = vpop.permute.xlu1 %624 }
 0x147   :  { %v623_v29 = vpop.permute.xlu0 %622 }
 0x148   :  { %v630_v54 = vsel %vm626_vm14, %v623_v29, %v625_v51 }
 0x149   :  { %1476 = vmatprep.subr.bf16.mxu0 %v630_v54 }
 0x14a   :  { %v1236_v55 = vpop.permute.xlu1 %1235 }
 0x14b   :  { %v1234_v32 = vpop.permute.xlu0 %1233 }
 0x14c   :  { %v1240_v41 = vsel %vm626_vm14, %v1234_v32, %v1236_v55 }
 0x14d   :  { %1582 = vmatprep.subr.bf16.mxu1 %v1240_v41 }
 0x14e   :  { %v1232_v56 = vpop.permute.xlu1 %1231 }
 0x14f   :  { %v621_v57 = vpop.permute.xlu0 %620  ;;  %v1239_v58 = vsel %vm626_vm14, %v1232_v56, %v1234_v32 }
 0x150   :  { %v629_v36 = vsel %vm626_vm14, %v621_v57, %v623_v29  ;;  %1583 = vmatpush1.bf16.msra.mxu1 %v1239_v58 }
 0x151   :  { %1477 = vmatpush1.bf16.msra.mxu0 %v629_v36 }
 0x152   :  { %v3998_v34 = vpop.permute.xlu1 %3997 }
 0x153   :  { %v4000_v60 = vunpack.i.h.bf16 %v3998_v34  ;;  %v3999_v61 = vunpack.i.l.bf16 %v3998_v34  ;;  %v3993_v62 = vpop.permute.xlu0 %3992  ;;  %1585 = vmatmul.mubr.bf16.vlgmr.msra.gmra.mrb[0].mxu1 %v4411_v30 }
 0x154   :  { %v3995_v37 = vunpack.i.h.bf16 %v3993_v62  ;;  %v3994_v25 = vunpack.i.l.bf16 %v3993_v62  ;;  %1479 = vmatmul.mubr.bf16.vlgmr.msra.gmra.mrb[0].mxu0 %v4411_v30  ;;  %1594 = vmatprep.mubr.bf16.mxu1 %v4414_v59 }
 0x155   :  { %v691_v63 = vsel %vm687_vm15, %v3999_v61, %v4000_v60  ;;  %1488 = vmatprep.mubr.bf16.mxu0 %v4414_v59 }
 0x156   :  { %v689_v26 = vsel %vm687_vm15, %v3994_v25, %v3995_v37  ;;  %v4008_v1 = vpop.permute.xlu1 %4007  ;;  %v4417_v37 = vld [vmem:[#allocation8 + $0x8] ss:$12 sps:$4 sm:$0xff]  }
 0x157   :  { %v4010_v2 = vunpack.i.h.bf16 %v4008_v1  ;;  %v4009_v35 = vunpack.i.l.bf16 %v4008_v1  ;;  %v4003_v3 = vpop.permute.xlu0 %4002  ;;  %v3414_v4 = vpack.c.bf16 %v691_v63, %v689_v26 }
 0x158   :  { %v4005_v6 = vunpack.i.h.bf16 %v4003_v3  ;;  %v4004_v50 = vunpack.i.l.bf16 %v4003_v3 }
 0x159   :  { %v1300_v42 = vsel %vm687_vm15, %v4009_v35, %v4010_v2  ;;  %3415 = vmatprep.subr.msk.bf16.mxu0 %vm4921_vm8, %v3414_v4 }
 0x15a   :  { %v1298_v52 = vsel %vm687_vm15, %v4004_v50, %v4005_v6  ;;  %v4018_v43 = vpop.permute.xlu1 %4017 }
 0x15b   :  { %v4020_v8 = vunpack.i.h.bf16 %v4018_v43  ;;  %v4019_v9 = vunpack.i.l.bf16 %v4018_v43  ;;  %v4013_v11 = vpop.permute.xlu0 %4012  ;;  %v3486_v12 = vpack.c.bf16 %v1300_v42, %v1298_v52  ;;  %1595 = vmatmul.mubr.bf16.gmra.mrb[4].mxu1 %v4416_v5 }
 0x15c   :  { %v4015_v13 = vunpack.i.h.bf16 %v4013_v11  ;;  %v4014_v45 = vunpack.i.l.bf16 %v4013_v11  ;;  %1489 = vmatmul.mubr.bf16.gmra.mrb[4].mxu0 %v4416_v5  ;;  %1637 = vmatprep.mubr.bf16.mxu1 %v5952_v14 }
 0x15d   :  { %v1297_v15 = vsel %vm687_vm15, %v4019_v9, %v4004_v50  ;;  %v1299_v16 = vsel %vm687_vm15, %v4020_v8, %v4009_v35  ;;  %3487 = vmatprep.subr.msk.bf16.mxu1 %vm4921_vm8, %v3486_v12  ;;  %1531 = vmatprep.mubr.bf16.mxu0 %v5952_v14 }
 0x15e   :  { %v3489_v46 = vpack.c.bf16 %v1299_v16, %v1297_v15  ;;  %v690_v17 = vsel %vm687_vm15, %v4015_v13, %v3999_v61  ;;  %v688_v18 = vsel %vm687_vm15, %v4014_v45, %v3994_v25  ;;  %v4028_v19 = vpop.permute.xlu1 %4027  ;;  %v4418_v25 = vld [vmem:[#allocation8 + $0x20] ss:$12 sps:$4 sm:$0xff]  }
 0x15f   :  { %v3417_v20 = vpack.c.bf16 %v690_v17, %v688_v18  ;;  %v4030_v38 = vunpack.i.h.bf16 %v4028_v19  ;;  %v4029_v39 = vunpack.i.l.bf16 %v4028_v19  ;;  %v4023_v21 = vpop.permute.xlu0 %4022 }
 0x160   :  { %v4025_v27 = vunpack.i.h.bf16 %v4023_v21  ;;  %v4024_v53 = vunpack.i.l.bf16 %v4023_v21  ;;  %3490 = vmatpush1.bf16.msk.msra.mxu1 %vm4943_vm10, %v3489_v46 }
 0x161   :  { %v695_v22 = vsel %vm687_vm15, %v4029_v39, %v4030_v38  ;;  %3418 = vmatpush1.bf16.msk.msra.mxu0 %vm4943_vm10, %v3417_v20 }
 0x162   :  { %v693_v28 = vsel %vm687_vm15, %v4024_v53, %v4025_v27  ;;  %v4038_v24 = vpop.permute.xlu1 %4037 }
 0x163   :  { %v4040_v40 = vunpack.i.h.bf16 %v4038_v24  ;;  %v4039_v44 = vunpack.i.l.bf16 %v4038_v24  ;;  %v4033_v48 = vpop.permute.xlu0 %4032  ;;  %v3420_v49 = vpack.c.bf16 %v695_v22, %v693_v28 }
 0x164   :  { %v4035_v31 = vunpack.i.h.bf16 %v4033_v48  ;;  %v4034_v51 = vunpack.i.l.bf16 %v4033_v48 }
 0x165   :  { %v1304_v29 = vsel %vm687_vm15, %v4039_v44, %v4040_v40  ;;  %3421 = vmatprep.subr.msk.bf16.mxu0 %vm4921_vm8, %v3420_v49 }
 0x166   :  { %v1302_v54 = vsel %vm687_vm15, %v4034_v51, %v4035_v31  ;;  %v4048_v55 = vpop.permute.xlu1 %4047 }
 0x167   :  { %v4050_v32 = vunpack.i.h.bf16 %v4048_v55  ;;  %v4049_v41 = vunpack.i.l.bf16 %v4048_v55  ;;  %v4043_v56 = vpop.permute.xlu0 %4042  ;;  %v3492_v57 = vpack.c.bf16 %v1304_v29, %v1302_v54 }
 0x168   :  { %v4045_v58 = vunpack.i.h.bf16 %v4043_v56  ;;  %v4044_v30 = vunpack.i.l.bf16 %v4043_v56 }
 0x169   :  { %v1301_v36 = vsel %vm687_vm15, %v4049_v41, %v4034_v51  ;;  %v1303_v59 = vsel %vm687_vm15, %v4050_v32, %v4039_v44  ;;  %3493 = vmatprep.subr.msk.bf16.mxu1 %vm4921_vm8, %v3492_v57 }
 0x16a   :  { %v3495_v34 = vpack.c.bf16 %v1303_v59, %v1301_v36  ;;  %v694_v60 = vsel %vm687_vm15, %v4045_v58, %v4029_v39  ;;  %v692_v61 = vsel %vm687_vm15, %v4044_v30, %v4024_v53 }
 0x16b   :  { %v3423_v62 = vpack.c.bf16 %v694_v60, %v692_v61 }
 0x16c   :  { %3496 = vmatpush1.bf16.msk.msra.mxu1 %vm4943_vm10, %v3495_v34 }
 0x16d   :  { %3424 = vmatpush1.bf16.msk.msra.mxu0 %vm4943_vm10, %v3423_v62 }
 0x16f   :  { %3341 = vmatmul.mubr.msk.bf16.vlgmr.msra.gmra.mrb[0].mxu1 %vm1439_vm1, %v4417_v37 }
 0x170   :  { %3339 = vmatmul.mubr.msk.bf16.vlgmr.msra.gmra.mrb[0].mxu0 %vm1439_vm1, %v4417_v37  ;;  %1647 = vmatprep.mubr.bf16.mxu1 %v5952_v14 }
 0x171   :  { %1541 = vmatprep.mubr.bf16.mxu0 %v5952_v14 }
 0x177   :  { %3342 = vmatmul.mubr.msk.bf16.gmra.mrb[4].mxu1 %vm1439_vm1, %v4418_v25 }
 0x178   :  { %3340 = vmatmul.mubr.msk.bf16.gmra.mrb[4].mxu0 %vm1439_vm1, %v4418_v25  ;;  %v5266_v25 = vpop.permute.xlu0 %4052 }
 0x242   :  { %v1639_v63 = vpop.f32.mrb[0].mxu1 }
 0x243   :  { %v1533_v26 = vpop.f32.mrb[0].mxu0  ;;  %v1660_v1 = vmax.f32 %v1639_v63, 0.0  ;;  %v1641_v2 = vpop.f32.mrb[1].mxu1 }
 0x244   :  { %v1658_v35 = vmax.f32 %v1533_v26, 0.0  ;;  %v1535_v3 = vpop.f32.mrb[1].mxu0  ;;  %v1661_v4 = vmax.f32 %v1641_v2, 0.0  ;;  %v1643_v5 = vpop.f32.mrb[2].mxu1 }
 0x245   :  { %v1659_v6 = vmax.f32 %v1535_v3, 0.0  ;;  %v1537_v50 = vpop.f32.mrb[2].mxu0  ;;  %v1664_v42 = vmax.f32 %v1643_v5, 0.0  ;;  %v1645_v52 = vpop.f32.mrb[3].mxu1 }
 0x246   :  { %v1662_v43 = vmax.f32 %v1537_v50, 0.0  ;;  %v1539_v8 = vpop.f32.mrb[3].mxu0  ;;  %v1665_v9 = vmax.f32 %v1645_v52, 0.0  ;;  %v4116_v11 = vpack.i.bf16 %v1661_v4, %v1660_v1  ;;  %v5225_v61 = vpack.i.bf16 %v4528_v0, %v1661_v4  ;;  %v5268_v63 = vpop.permute.xlu1 %4057 }
 0x247   :  { %v1663_v12 = vmax.f32 %v1539_v8, 0.0  ;;  %v4111_v13 = vpack.i.bf16 %v1659_v6, %v1658_v35  ;;  %v5169_v45 = vpack.i.bf16 %v1664_v42, %v1660_v1  ;;  %v5188_v51 = vpack.c.bf16 %v1664_v42, %v1660_v1  ;;  %v5274_v26 = vpop.permute.xlu0 %4062 }
 0x248   :  { %v4176_v15 = vpack.i.bf16 %v1665_v9, %v1664_v42  ;;  %v5176_v27 = vpack.i.bf16 %v1662_v43, %v1658_v35  ;;  %v5182_v40 = vpack.c.bf16 %v1662_v43, %v1658_v35  ;;  %v5190_v54 = vpack.c.bf16 %v1665_v9, %v1661_v4 }
 0x249   :  { %4112 = vrot.lane.b32.xlu0 %v4111_v13, %s4529_s25  ;;  %4167 = vrot.lane.b32.xlu1 %v5169_v45, %s4533_s23  ;;  %v4171_v16 = vpack.i.bf16 %v1663_v12, %v1662_v43  ;;  %v5186_v31 = vpack.c.bf16 %v1663_v12, %v1659_v6  ;;  %v5219_v60 = vpack.i.bf16 %v4528_v0, %v1659_v6 }
 0x24a   :  { %v1649_v46 = vpop.f32.mrb[4].mxu1  ;;  %v5228_v62 = vpack.i.bf16 %v4528_v0, %v1663_v12  ;;  %v5235_v37 = vpack.i.bf16 %v4528_v0, %v1665_v9  ;;  %v5276_v1 = vpop.permute.xlu1 %4067 }
 0x24b   :  { %v1543_v17 = vpop.f32.mrb[4].mxu0  ;;  %v1651_v18 = vpop.f32.mrb[5].mxu1  ;;  %v1668_v20 = vmax.f32 %v1649_v46, 0.0 }
 0x24c   :  { %v1666_v19 = vmax.f32 %v1543_v17, 0.0  ;;  %v1545_v38 = vpop.f32.mrb[5].mxu0  ;;  %v5174_v39 = vmax.f32 %v1651_v18, 0.0  ;;  %v1653_v21 = vpop.f32.mrb[6].mxu1 }
 0x24d   :  { %v5178_v53 = vmax.f32 %v1545_v38, 0.0  ;;  %v1672_v22 = vmax.f32 %v1653_v21, 0.0  ;;  %4117 = vrot.lane.b32.xlu0 %v4116_v11, %s4529_s25  ;;  %v1547_v28 = vpop.f32.mrb[6].mxu0  ;;  %v1655_v24 = vpop.f32.mrb[7].mxu1  ;;  %4172 = vrot.lane.b32.xlu1 %v4171_v16, %s4529_s25  ;;  %v4054_v38 = vunpack.i.l.bf16 %v5266_v25 }
 0x24e   :  { %v1670_v44 = vmax.f32 %v1547_v28, 0.0  ;;  %v5184_v48 = vmax.f32 %v1655_v24, 0.0  ;;  %v1549_v49 = vpop.f32.mrb[7].mxu0  ;;  %v4226_v41 = vpack.i.bf16 %v5174_v39, %v1668_v20  ;;  %v5287_v35 = vpack.i.bf16 %v4528_v0, %v5174_v39  ;;  %v5292_v4 = vpop.permute.xlu0 %1810 }
 0x24f   :  { %v1671_v29 = vmax.f32 %v1549_v49, 0.0  ;;  %v4221_v55 = vpack.i.bf16 %v5178_v53, %v1666_v19  ;;  %v5193_v32 = vpack.i.bf16 %v1672_v22, %v1668_v20  ;;  %v5206_v59 = vpack.c.bf16 %v1672_v22, %v1668_v20  ;;  %v5294_v5 = vpop.permute.xlu1 %2418 }
 0x250   :  { %v4276_v56 = vpack.i.bf16 %v5184_v48, %v1672_v22  ;;  %v5199_v58 = vpack.i.bf16 %v1670_v44, %v1666_v19  ;;  %v5201_v30 = vpack.c.bf16 %v1670_v44, %v1666_v19  ;;  %v5212_v34 = vpack.c.bf16 %v5184_v48, %v5174_v39 }
 0x251   :  { %4122 = vrot.lane.b32.xlu0 %v4111_v13, %s4531_s2  ;;  %4177 = vrot.lane.b32.xlu1 %v4176_v15, %s4529_s25  ;;  %v4271_v57 = vpack.i.bf16 %v1671_v29, %v1670_v44  ;;  %v5204_v36 = vpack.c.bf16 %v1671_v29, %v5178_v53  ;;  %5982 = vst [vmem:[#allocation15_spill] sm:$0xff] %v5206_v59  ;;  %v4055_v20 = vunpack.i.h.bf16 %v5266_v25  ;;  %v4060_v49 = vunpack.i.h.bf16 %v5268_v63 }
 0x252   :  { %5983 = vst [vmem:[#allocation16_spill] sm:$0xff] %v5212_v34  ;;  %v5280_v2 = vpack.i.bf16 %v4528_v0, %v5178_v53  ;;  %v5290_v3 = vpack.i.bf16 %v4528_v0, %v1671_v29  ;;  %v5302_v6 = vpack.i.bf16 %v4528_v0, %v5184_v48  ;;  %v5308_v50 = vpop.permute.xlu0 %1816  ;;  %v4059_v29 = vunpack.i.l.bf16 %v5268_v63 }
 0x253   :  { %v5310_v42 = vpop.permute.xlu1 %2424 }
 0x255   :  { %4127 = vrot.lane.b32.xlu0 %v4116_v11, %s4531_s2  ;;  %4182 = vrot.lane.b32.xlu1 %v4171_v16, %s4531_s2 }
 0x256   :  { %v5316_v52 = vpop.permute.xlu0 %4072 }
 0x257   :  { %v5318_v0 = vpop.permute.xlu1 %4077  ;;  %v4074_v25 = vunpack.i.l.bf16 %v5316_v52 }
 0x259   :  { %4132 = vrot.lane.b32.xlu0 %v4111_v13, %s4532_s22  ;;  %4187 = vrot.lane.b32.xlu1 %v4176_v15, %s4531_s2 }
 0x25a   :  { %v5328_v43 = vpop.permute.xlu0 %4082 }
 0x25b   :  { %v5330_v8 = vpop.permute.xlu1 %4087 }
 0x25d   :  { %4137 = vrot.lane.b32.xlu0 %v4116_v11, %s4532_s22  ;;  %4192 = vrot.lane.b32.xlu1 %v4171_v16, %s4532_s22 }
 0x25e   :  { %v5336_v9 = vpop.permute.xlu0 %4092 }
 0x25f   :  { %v5338_v11 = vpop.permute.xlu1 %4097 }
 0x261   :  { %4142 = vrot.lane.b32.xlu0 %v5219_v60, %s4533_s23  ;;  %4197 = vrot.lane.b32.xlu1 %v4176_v15, %s4532_s22 }
 0x262   :  { %v5348_v12 = vpop.permute.xlu0 %4102 }
 0x263   :  { %v5350_v13 = vpop.permute.xlu1 %4107 }
 0x265   :  { %4147 = vrot.lane.b32.xlu0 %v5225_v61, %s4533_s23  ;;  %4202 = vrot.lane.b32.xlu1 %v5228_v62, %s4533_s23 }
 0x269   :  { %4152 = vrot.lane.b32.xlu0 %v5219_v60, %s4534_s26  ;;  %4207 = vrot.lane.b32.xlu1 %v5235_v37, %s4533_s23 }
 0x26d   :  { %4157 = vrot.lane.b32.xlu0 %v5225_v61, %s4534_s26  ;;  %4212 = vrot.lane.b32.xlu1 %v5228_v62, %s4534_s26 }
 0x271   :  { %4162 = vrot.lane.b32.xlu0 %v5176_v27, %s4533_s23  ;;  %4217 = vrot.lane.b32.xlu1 %v5235_v37, %s4534_s26 }
 0x275   :  { %1812 = vrot.lane.b32.xlu0 %v5182_v40, %s4526_s9  ;;  %1814 = vrot.lane.b32.xlu1 %v5186_v31, %s4526_s9 }
 0x279   :  { %2420 = vrot.lane.b32.xlu0 %v5188_v51, %s4526_s9  ;;  %2422 = vrot.lane.b32.xlu1 %v5190_v54, %s4526_s9 }
 0x27d   :  { %4222 = vrot.lane.b32.xlu0 %v4221_v55, %s4529_s25  ;;  %4267 = vrot.lane.b32.xlu1 %v5193_v32, %s4533_s23 }
 0x281   :  { %4227 = vrot.lane.b32.xlu0 %v4226_v41, %s4529_s25  ;;  %4272 = vrot.lane.b32.xlu1 %v4271_v57, %s4529_s25 }
 0x285   :  { %4232 = vrot.lane.b32.xlu0 %v4221_v55, %s4531_s2  ;;  %4277 = vrot.lane.b32.xlu1 %v4276_v56, %s4529_s25 }
 0x289   :  { %4237 = vrot.lane.b32.xlu0 %v4226_v41, %s4531_s2  ;;  %4282 = vrot.lane.b32.xlu1 %v4271_v57, %s4531_s2 }
 0x28d   :  { %4242 = vrot.lane.b32.xlu0 %v4221_v55, %s4532_s22  ;;  %4287 = vrot.lane.b32.xlu1 %v4276_v56, %s4531_s2 }
 0x291   :  { %4247 = vrot.lane.b32.xlu0 %v4226_v41, %s4532_s22  ;;  %4292 = vrot.lane.b32.xlu1 %v4271_v57, %s4532_s22 }
 0x295   :  { %4252 = vrot.lane.b32.xlu0 %v5280_v2, %s4533_s23  ;;  %4297 = vrot.lane.b32.xlu1 %v4276_v56, %s4532_s22 }
 0x299   :  { %4257 = vrot.lane.b32.xlu0 %v5287_v35, %s4533_s23  ;;  %4302 = vrot.lane.b32.xlu1 %v5290_v3, %s4533_s23 }
 0x29d   :  { %4262 = vrot.lane.b32.xlu0 %v5199_v58, %s4533_s23  ;;  %4307 = vrot.lane.b32.xlu1 %v5302_v6, %s4533_s23 }
 0x2a1   :  { %1818 = vrot.lane.b32.xlu0 %v5201_v30, %s4526_s9  ;;  %1820 = vrot.lane.b32.xlu1 %v5204_v36, %s4526_s9 }
 0x2a5   :  { %2426 = vrot.lane.b32.xlu0 %v5206_v59, %s4526_s9  ;;  %2428 = vrot.lane.b32.xlu1 %v5212_v34, %s4526_s9 }
 0x2a9   :  { %4312 = vrot.lane.b32.xlu0 %v5176_v27, %s4534_s26  ;;  %4317 = vrot.lane.b32.xlu1 %v5169_v45, %s4534_s26 }
 0x2ad   :  { %4322 = vrot.lane.b32.xlu0 %v5280_v2, %s4534_s26  ;;  %4327 = vrot.lane.b32.xlu1 %v5290_v3, %s4534_s26 }
 0x2b1   :  { %4332 = vrot.lane.b32.xlu0 %v5287_v35, %s4534_s26  ;;  %4337 = vrot.lane.b32.xlu1 %v5302_v6, %s4534_s26 }
 0x2b5   :  { %4342 = vrot.lane.b32.xlu0 %v5199_v58, %s4534_s26  ;;  %4347 = vrot.lane.b32.xlu1 %v5193_v32, %s4534_s26 }
 0x2b9   :  { %2196 = vrot.lane.b32.xlu0 %v5186_v31, %s4535_s27  ;;  %2198 = vrot.lane.b32.xlu1 %v4530_v33, %s4535_s27 }
 0x2bb   :  { %v4113_v15 = vpop.permute.xlu0 %4112  ;;  %v5356_v16 = vpop.permute.xlu1 %4167 }
 0x2bc   :  { %v4115_v46 = vunpack.i.h.bf16 %v4113_v15  ;;  %v4114_v17 = vunpack.i.l.bf16 %v4113_v15 }
 0x2bd   :  { %2804 = vrot.lane.b32.xlu0 %v5190_v54, %s4535_s27  ;;  %2806 = vrot.lane.b32.xlu1 %v4530_v33, %s4535_s27 }
 0x2be   :  { %v1754_v28 = vsel %vm164_vm0, %v4054_v38, %v4114_v17  ;;  %v1755_v24 = vsel %vm164_vm0, %v4114_v17, %v4115_v46 }
 0x2bf   :  { %v4118_v18 = vpop.permute.xlu0 %4117  ;;  %v4173_v19 = vpop.permute.xlu1 %4172 }
 0x2c0   :  { %v4175_v39 = vunpack.i.h.bf16 %v4173_v19  ;;  %v4174_v21 = vunpack.i.l.bf16 %v4173_v19  ;;  %v4120_v53 = vunpack.i.h.bf16 %v4118_v18  ;;  %v4119_v22 = vunpack.i.l.bf16 %v4118_v18 }
 0x2c1   :  { %2194 = vrot.lane.b32.xlu0 %v5182_v40, %s4535_s27  ;;  %2802 = vrot.lane.b32.xlu1 %v5188_v51, %s4535_s27 }
 0x2c2   :  { %v1756_v44 = vsel %vm164_vm0, %v4055_v20, %v4174_v21  ;;  %v1757_v48 = vsel %vm164_vm0, %v4174_v21, %v4175_v39  ;;  %v2362_v38 = vsel %vm164_vm0, %v4059_v29, %v4119_v22  ;;  %v2363_v46 = vsel %vm164_vm0, %v4119_v22, %v4120_v53 }
 0x2c3   :  { %v3498_v55 = vpack.c.bf16 %v1757_v48, %v1755_v24  ;;  %v3501_v41 = vpack.c.bf16 %v1756_v44, %v1754_v28  ;;  %v4123_v56 = vpop.permute.xlu0 %4122  ;;  %v4178_v57 = vpop.permute.xlu1 %4177  ;;  %v4075_v21 = vunpack.i.h.bf16 %v5316_v52  ;;  %v4079_v44 = vunpack.i.l.bf16 %v5318_v0 }
 0x2c4   :  { %v4124_v15 = vunpack.i.l.bf16 %v4123_v56  ;;  %v4180_v18 = vunpack.i.h.bf16 %v4178_v57  ;;  %v4179_v19 = vunpack.i.l.bf16 %v4178_v57  ;;  %v4125_v63 = vunpack.i.h.bf16 %v4123_v56 }
 0x2c5   :  { %2200 = vrot.lane.b32.xlu0 %v5201_v30, %s4535_s27  ;;  %3499 = vmatprep.subr.msk.bf16.mxu0 %vm4829_vm3, %v3498_v55 }
 0x2c6   :  { %v5382_v17 = vsel %vm298_vm6, %v4074_v25, %v4124_v15  ;;  %v2364_v20 = vsel %vm164_vm0, %v4060_v49, %v4179_v19  ;;  %v2365_v39 = vsel %vm164_vm0, %v4179_v19, %v4180_v18  ;;  %2204 = vrot.lane.b32.xlu1 %v4530_v33, %s4535_s27  ;;  %3502 = vmatpush1.bf16.msk.msra.mxu0 %vm4841_vm4, %v3501_v41 }
 0x2c7   :  { %v3570_v53 = vpack.c.bf16 %v2365_v39, %v2363_v46  ;;  %v3573_v22 = vpack.c.bf16 %v2364_v20, %v2362_v38  ;;  %v4128_v28 = vpop.permute.xlu0 %4127  ;;  %v4183_v24 = vpop.permute.xlu1 %4182  ;;  %v5397_v52 = vsel %vm298_vm6, %v4124_v15, %v4125_v63  ;;  %v4094_v38 = vunpack.i.l.bf16 %v5336_v9 }
 0x2c8   :  { %v4129_v48 = vunpack.i.l.bf16 %v4128_v28  ;;  %v4185_v29 = vunpack.i.h.bf16 %v4183_v24  ;;  %v4184_v55 = vunpack.i.l.bf16 %v4183_v24  ;;  %v4130_v49 = vunpack.i.h.bf16 %v4128_v28 }
 0x2c9   :  { %4352 = vrot.lane.b32.xlu0 %v5219_v60, %s4536_s28  ;;  %3571 = vmatprep.subr.msk.bf16.mxu1 %vm4829_vm3, %v3570_v53  ;;  %v4080_v60 = vunpack.i.h.bf16 %v5318_v0  ;;  %v4099_v28 = vunpack.i.l.bf16 %v5338_v11 }
 0x2ca   :  { %v5400_v56 = vsel %vm298_vm6, %v4079_v44, %v4129_v48  ;;  %v5403_v41 = vsel %vm298_vm6, %v4075_v21, %v4184_v55  ;;  %v5406_v57 = vsel %vm298_vm6, %v4184_v55, %v4185_v29  ;;  %2812 = vrot.lane.b32.xlu1 %v4530_v33, %s4535_s27  ;;  %3574 = vmatpush1.bf16.msk.msra.mxu1 %vm4841_vm4, %v3573_v22  ;;  %v4095_v22 = vunpack.i.h.bf16 %v5336_v9 }
 0x2cb   :  { %v4133_v18 = vpop.permute.xlu0 %4132  ;;  %v4188_v19 = vpop.permute.xlu1 %4187  ;;  %v5419_v33 = vsel %vm298_vm6, %v4129_v48, %v4130_v49 }
 0x2cc   :  { %v4134_v46 = vunpack.i.l.bf16 %v4133_v18  ;;  %v4190_v63 = vunpack.i.h.bf16 %v4188_v19  ;;  %v4189_v20 = vunpack.i.l.bf16 %v4188_v19  ;;  %v4135_v0 = vunpack.i.h.bf16 %v4133_v18 }
 0x2cd   :  { %4362 = vrot.lane.b32.xlu0 %v5225_v61, %s4536_s28 }
 0x2ce   :  { %v5424_v39 = vsel %vm379_vm11, %v4094_v38, %v4134_v46  ;;  %v5427_v21 = vsel %vm298_vm6, %v4080_v60, %v4189_v20  ;;  %v5430_v53 = vsel %vm298_vm6, %v4189_v20, %v4190_v63  ;;  %2808 = vrot.lane.b32.xlu1 %v5206_v59, %s4535_s27  ;;  %v4421_v60 = vld [vmem:[#allocation10 + $0x4] ss:$12 sps:$4 sm:$0xff]   ;;  %v5443_v9 = vsel %vm379_vm11, %v4134_v46, %v4135_v0 }
 0x2cf   :  { %v4138_v44 = vpop.permute.xlu0 %4137  ;;  %v4193_v48 = vpop.permute.xlu1 %4192  ;;  %3054 = vmatprep.mubr.bf16.mxu0 %v4421_v60  ;;  %3160 = vmatprep.mubr.bf16.mxu1 %v4421_v60 }
 0x2d0   :  { %v4139_v29 = vunpack.i.l.bf16 %v4138_v44  ;;  %v4195_v55 = vunpack.i.h.bf16 %v4193_v48  ;;  %v4194_v49 = vunpack.i.l.bf16 %v4193_v48  ;;  %v4140_v18 = vunpack.i.h.bf16 %v4138_v44 }
 0x2d1   :  { %2202 = vrot.lane.b32.xlu0 %v5204_v36, %s4535_s27 }
 0x2d2   :  { %v5446_v19 = vsel %vm379_vm11, %v4099_v28, %v4139_v29  ;;  %v5449_v38 = vsel %vm379_vm11, %v4095_v22, %v4194_v49  ;;  %v5452_v63 = vsel %vm379_vm11, %v4194_v49, %v4195_v55  ;;  %4357 = vrot.lane.b32.xlu1 %v5228_v62, %s4536_s28  ;;  %v4100_v22 = vunpack.i.h.bf16 %v5338_v11 }
 0x2d3   :  { %v5460_v46 = vpop.permute.xlu0 %4142  ;;  %v4198_v0 = vpop.permute.xlu1 %4197  ;;  %v5464_v55 = vsel %vm379_vm11, %v4139_v29, %v4140_v18 }
 0x2d4   :  { %v4200_v28 = vunpack.i.h.bf16 %v4198_v0  ;;  %v4199_v48 = vunpack.i.l.bf16 %v4198_v0  ;;  %v4145_v62 = vunpack.i.h.bf16 %v5460_v46  ;;  %v4144_v49 = vunpack.i.l.bf16 %v5460_v46 }
 0x2d5   :  { %2810 = vrot.lane.b32.xlu0 %v5212_v34, %s4535_s27  ;;  %v4169_v0 = vunpack.i.l.bf16 %v5356_v16 }
 0x2d6   :  { %v5471_v14 = vsel %vm379_vm11, %v4100_v22, %v4199_v48  ;;  %v5474_v44 = vsel %vm379_vm11, %v4199_v48, %v4200_v28  ;;  %4367 = vrot.lane.b32.xlu1 %v5235_v37, %s4536_s28  ;;  %v5486_v28 = vsel %vm476_vm12, %v4144_v49, %v4145_v62 }
 0x2d7   :  { %v4148_v60 = vpop.permute.xlu0 %4147  ;;  %v4203_v18 = vpop.permute.xlu1 %4202  ;;  %5984 = vst [vmem:[#allocation17_spill] sm:$0xff] %v5486_v28  ;;  %v4070_v28 = vunpack.i.h.bf16 %v5276_v1 }
 0x2d8   :  { %v4149_v46 = vunpack.i.l.bf16 %v4148_v60  ;;  %v4205_v20 = vunpack.i.h.bf16 %v4203_v18  ;;  %v4204_v22 = vunpack.i.l.bf16 %v4203_v18  ;;  %v4150_v24 = vunpack.i.h.bf16 %v4148_v60 }
 0x2d9   :  { %4372 = vrot.lane.b32.xlu0 %v5176_v27, %s4536_s28  ;;  %v4170_v27 = vunpack.i.h.bf16 %v5356_v16 }
 0x2da   :  { %v5489_v37 = vsel %vm476_vm12, %v4169_v0, %v4149_v46  ;;  %v5492_v48 = vsel %vm476_vm12, %v4204_v22, %v4205_v20  ;;  %4377 = vrot.lane.b32.xlu1 %v5169_v45, %s4536_s28  ;;  %v5502_v61 = vsel %vm476_vm12, %v4149_v46, %v4150_v24 }
 0x2db   :  { %5985 = vst [vmem:[#allocation18_spill] sm:$0xff] %v5489_v37  ;;  %5986 = vst [vmem:[#allocation19_spill] sm:$0xff] %v5492_v48  ;;  %v5498_v18 = vpop.permute.xlu0 %4152  ;;  %v4208_v60 = vpop.permute.xlu1 %4207 }
 0x2dc   :  { %v4210_v11 = vunpack.i.h.bf16 %v4208_v60  ;;  %v4209_v62 = vunpack.i.l.bf16 %v4208_v60  ;;  %5987 = vst [vmem:[#allocation20_spill] sm:$0xff] %v5502_v61  ;;  %v4155_v20 = vunpack.i.h.bf16 %v5498_v18  ;;  %v5954_v45 = vunpack.i.l.bf16 %v5498_v18 }
 0x2dd   :  { %4382 = vrot.lane.b32.xlu0 %v5280_v2, %s4536_s28 }
 0x2de   :  { %v5509_v0 = vsel %vm476_vm12, %v4170_v27, %v4209_v62  ;;  %v5512_v29 = vsel %vm476_vm12, %v4209_v62, %v4210_v11  ;;  %4387 = vrot.lane.b32.xlu1 %v5290_v3, %s4536_s28  ;;  %v5531_v3 = vsel %vm557_vm13, %v5954_v45, %v4155_v20 }
 0x2df   :  { %5988 = vst [vmem:[#allocation21_spill] sm:$0xff] %v5509_v0  ;;  %5989 = vst [vmem:[#allocation22_spill] sm:$0xff] %v5512_v29  ;;  %v5520_v2 = vpop.permute.xlu0 %4157  ;;  %v5522_v46 = vpop.permute.xlu1 %4212 }
 0x2e0   :  { %v4215_v60 = vunpack.i.h.bf16 %v5522_v46  ;;  %v5955_v27 = vunpack.i.l.bf16 %v5522_v46  ;;  %5990 = vst [vmem:[#allocation23_spill] sm:$0xff] %v5531_v3  ;;  %v4160_v11 = vunpack.i.h.bf16 %v5520_v2 }
 0x2e1   :  { %4392 = vrot.lane.b32.xlu0 %v5287_v35, %s4536_s28 }
 0x2e2   :  { %v5538_v24 = vsel %vm557_vm13, %v5955_v27, %v4215_v60  ;;  %4397 = vrot.lane.b32.xlu1 %v5302_v6, %s4536_s28  ;;  %v5992_v60 = vunpack.i.l.bf16 %v5520_v2 }
 0x2e3   :  { %5991 = vst [vmem:[#allocation24_spill] sm:$0xff] %v5538_v24  ;;  %v4163_v16 = vpop.permute.xlu0 %4162  ;;  %v5544_v15 = vpop.permute.xlu1 %4217 }
 0x2e4   :  { %v4165_v20 = vunpack.i.h.bf16 %v4163_v16  ;;  %v4164_v45 = vunpack.i.l.bf16 %v4163_v16  ;;  %v4220_v25 = vunpack.i.h.bf16 %v5544_v15  ;;  %v5959_v62 = vunpack.i.l.bf16 %v5544_v15 }
 0x2e5   :  { %4402 = vrot.lane.b32.xlu0 %v5199_v58, %s4536_s28  ;;  %v5553_v27 = vsel %vm557_vm13, %v5992_v60, %v4160_v11 }
 0x2e6   :  { %5993 = vst [vmem:[#allocation25_spill] sm:$0xff] %v5553_v27  ;;  %v5556_v6 = vsel %vm476_vm12, %v4164_v45, %v4144_v49  ;;  %v5559_v35 = vsel %vm476_vm12, %v4165_v20, %v4204_v22  ;;  %v5564_v16 = vsel %vm557_vm13, %v5959_v62, %v4220_v25  ;;  %4407 = vrot.lane.b32.xlu1 %v5193_v32, %s4536_s28  ;;  %v4064_v25 = vunpack.i.l.bf16 %v5274_v26 }
 0x2e7   :  { %5994 = vst [vmem:[#allocation26_spill] sm:$0xff] %v5556_v6  ;;  %5995 = vst [vmem:[#allocation27_spill] sm:$0xff] %v5559_v35  ;;  %v1813_v60 = vpop.permute.xlu0 %1812  ;;  %v1815_v49 = vpop.permute.xlu1 %1814  ;;  %v4065_v32 = vunpack.i.h.bf16 %v5274_v26  ;;  %v4069_v26 = vunpack.i.l.bf16 %v5276_v1 }
 0x2e8   :  { %5996 = vst [vmem:[#allocation28_spill] sm:$0xff] %v5564_v16 }
 0x2eb   :  { %v2421_v45 = vpop.permute.xlu0 %2420  ;;  %v2423_v3 = vpop.permute.xlu1 %2422 }
 0x2ef   :  { %v4223_v22 = vpop.permute.xlu0 %4222  ;;  %v5572_v20 = vpop.permute.xlu1 %4267 }
 0x2f0   :  { %5997 = vst [vmem:[#allocation29_spill] sm:$0xff] %v5572_v20  ;;  %v4225_v24 = vunpack.i.h.bf16 %v4223_v22  ;;  %v4224_v37 = vunpack.i.l.bf16 %v4223_v22 }
 0x2f2   :  { %v1758_v29 = vsel %vm164_vm0, %v4064_v25, %v4224_v37  ;;  %v1759_v11 = vsel %vm164_vm0, %v4224_v37, %v4225_v24  ;;  %v1823_v37 = vsel %vm233_vm5, %v1813_v60, %v1815_v49 }
 0x2f3   :  { %v4228_v62 = vpop.permute.xlu0 %4227  ;;  %v4273_v0 = vpop.permute.xlu1 %4272 }
 0x2f4   :  { %v4275_v61 = vunpack.i.h.bf16 %v4273_v0  ;;  %v4274_v58 = vunpack.i.l.bf16 %v4273_v0  ;;  %v4230_v27 = vunpack.i.h.bf16 %v4228_v62  ;;  %v4229_v16 = vunpack.i.l.bf16 %v4228_v62 }
 0x2f6   :  { %v1760_v59 = vsel %vm164_vm0, %v4065_v32, %v4274_v58  ;;  %v1761_v20 = vsel %vm164_vm0, %v4274_v58, %v4275_v61  ;;  %v2366_v24 = vsel %vm164_vm0, %v4069_v26, %v4229_v16  ;;  %v2367_v61 = vsel %vm164_vm0, %v4229_v16, %v4230_v27 }
 0x2f7   :  { %v3504_v6 = vpack.c.bf16 %v1761_v20, %v1759_v11  ;;  %v3507_v22 = vpack.c.bf16 %v1760_v59, %v1758_v29  ;;  %v5580_v35 = vpop.permute.xlu0 %4232  ;;  %v4278_v34 = vpop.permute.xlu1 %4277  ;;  %v2430_v16 = vsel %vm233_vm5, %v5294_v5, %v2421_v45 }
 0x2f8   :  { %v4280_v0 = vunpack.i.h.bf16 %v4278_v34  ;;  %v4279_v48 = vunpack.i.l.bf16 %v4278_v34 }
 0x2f9   :  { %3505 = vmatprep.subr.msk.bf16.mxu0 %vm4829_vm3, %v3504_v6  ;;  %v1822_v6 = vsel %vm233_vm5, %v5292_v4, %v1813_v60 }
 0x2fa   :  { %v2368_v59 = vsel %vm164_vm0, %v4070_v28, %v4279_v48  ;;  %v2369_v29 = vsel %vm164_vm0, %v4279_v48, %v4280_v0  ;;  %3508 = vmatpush1.bf16.msk.msra.mxu0 %vm4841_vm4, %v3507_v22  ;;  %v2431_v48 = vsel %vm233_vm5, %v2421_v45, %v2423_v3  ;;  %v4235_v0 = vunpack.i.h.bf16 %v5580_v35 }
 0x2fb   :  { %v3576_v62 = vpack.c.bf16 %v2369_v29, %v2367_v61  ;;  %v3579_v1 = vpack.c.bf16 %v2368_v59, %v2366_v24  ;;  %v5593_v58 = vpop.permute.xlu0 %4237  ;;  %v4283_v34 = vpop.permute.xlu1 %4282  ;;  %3026 = vmatprep.subr.bf16.mxu0 %v1823_v37  ;;  %v4234_v37 = vunpack.i.l.bf16 %v5580_v35  ;;  %v4085_v59 = vunpack.i.h.bf16 %v5328_v43 }
 0x2fc   :  { %v4285_v22 = vunpack.i.h.bf16 %v4283_v34  ;;  %v4284_v26 = vunpack.i.l.bf16 %v4283_v34  ;;  %v4084_v34 = vunpack.i.l.bf16 %v5328_v43  ;;  %v4239_v35 = vunpack.i.l.bf16 %v5593_v58 }
 0x2fd   :  { %3577 = vmatprep.subr.msk.bf16.mxu1 %vm4829_vm3, %v3576_v62 }
 0x2fe   :  { %3027 = vmatpush1.bf16.msra.mxu0 %v1822_v6  ;;  %3580 = vmatpush1.bf16.msk.msra.mxu1 %vm4841_vm4, %v3579_v1  ;;  %v1889_v29 = vsel %vm298_vm6, %v4284_v26, %v4285_v22  ;;  %v4240_v6 = vunpack.i.h.bf16 %v5593_v58  ;;  %v4090_v22 = vunpack.i.h.bf16 %v5330_v8 }
 0x2ff   :  { %v5599_v27 = vpop.permute.xlu0 %4242  ;;  %v5603_v28 = vpop.permute.xlu1 %4287  ;;  %3132 = vmatprep.subr.bf16.mxu1 %v2431_v48 }
 0x300   :  { %v4290_v62 = vunpack.i.h.bf16 %v5603_v28  ;;  %v4289_v1 = vunpack.i.l.bf16 %v5603_v28  ;;  %v1888_v28 = vsel %vm298_vm6, %v4085_v59, %v4284_v26  ;;  %v5999_v26 = vpack.c.bf16 %v5403_v41, %v5382_v17 }
 0x302   :  { %3133 = vmatpush1.bf16.msra.mxu1 %v2430_v16 }
 0x303   :  { %v5608_v11 = vpop.permute.xlu0 %4247  ;;  %v5610_v4 = vpop.permute.xlu1 %4292 }
 0x304   :  { %v4294_v58 = vunpack.i.l.bf16 %v5610_v4 }
 0x307   :  { %v5612_v60 = vpop.permute.xlu0 %4252  ;;  %v5614_v49 = vpop.permute.xlu1 %4297 }
 0x30b   :  { %v5616_v20 = vpop.permute.xlu0 %4257  ;;  %v5618_v25 = vpop.permute.xlu1 %4302 }
 0x30f   :  { %v5620_v32 = vpop.permute.xlu0 %4262  ;;  %v5622_v3 = vpop.permute.xlu1 %4307 }
 0x313   :  { %v1819_v5 = vpop.permute.xlu0 %1818  ;;  %v1821_v45 = vpop.permute.xlu1 %1820 }
 0x314   :  { %v1825_v24 = vsel %vm233_vm5, %v1819_v5, %v1821_v45  ;;  %v1824_v61 = vsel %vm233_vm5, %v5308_v50, %v1819_v5  ;;  %v5998_v50 = vpack.c.bf16 %v5406_v57, %v5397_v52  ;;  %v1887_v5 = vsel %vm298_vm6, %v4234_v37, %v4235_v0 }
 0x315   :  { %3028 = vmatprep.subr.bf16.mxu0 %v1825_v24  ;;  %v3516_v45 = vpack.c.bf16 %v1889_v29, %v1887_v5  ;;  %v4295_v24 = vunpack.i.h.bf16 %v5610_v4  ;;  %v4089_v57 = vunpack.i.l.bf16 %v5330_v8  ;;  %v2497_v0 = vsel %vm298_vm6, %v4289_v1, %v4290_v62 }
 0x316   :  { %3029 = vmatpush1.bf16.msra.mxu0 %v1824_v61  ;;  %v4105_v61 = vunpack.i.h.bf16 %v5348_v12  ;;  %v2495_v4 = vsel %vm298_vm6, %v4239_v35, %v4240_v6  ;;  %v4244_v8 = vunpack.i.l.bf16 %v5599_v27 }
 0x317   :  { %v2427_v48 = vpop.permute.xlu0 %2426  ;;  %3511 = vmatprep.subr.msk.bf16.mxu0 %vm4921_vm8, %v5998_v50  ;;  %v2429_v16 = vpop.permute.xlu1 %2428  ;;  %v1886_v50 = vsel %vm298_vm6, %v4084_v34, %v4234_v37  ;;  %v6000_v37 = vpack.c.bf16 %v5430_v53, %v5419_v33  ;;  %v1969_v5 = vsel %vm379_vm11, %v4294_v58, %v4295_v24  ;;  %v6002_v33 = vunpack.i.l.bf16 %v5498_v18 }
 0x318   :  { %v2433_v43 = vsel %vm233_vm5, %v2427_v48, %v2429_v16  ;;  %v2432_v52 = vsel %vm233_vm5, %v5310_v42, %v2427_v48  ;;  %v3519_v59 = vpack.c.bf16 %v1888_v28, %v1886_v50  ;;  %v4245_v42 = vunpack.i.h.bf16 %v5599_v27 }
 0x319   :  { %3134 = vmatprep.subr.bf16.mxu1 %v2433_v43  ;;  %v2494_v48 = vsel %vm298_vm6, %v4089_v57, %v4239_v35  ;;  %v2496_v16 = vsel %vm298_vm6, %v4090_v22, %v4289_v1  ;;  %v3588_v27 = vpack.c.bf16 %v2497_v0, %v2495_v4  ;;  %v6001_v28 = vunpack.i.l.bf16 %v5522_v46 }
 0x31a   :  { %3514 = vmatpush1.bf16.msk.msra.mxu0 %vm4943_vm10, %v5999_v26  ;;  %3135 = vmatpush1.bf16.msra.mxu1 %v2432_v52  ;;  %v6004_v1 = vunpack.i.l.bf16 %v5520_v2  ;;  %v4300_v46 = vunpack.i.h.bf16 %v5614_v49  ;;  %v4299_v18 = vunpack.i.l.bf16 %v5614_v49  ;;  %v6005_v2 = vpack.c.bf16 %v5427_v21, %v5400_v56 }
 0x31b   :  { %v4313_v29 = vpop.permute.xlu0 %4312  ;;  %3517 = vmatprep.subr.msk.bf16.mxu0 %vm4921_vm8, %v3516_v45  ;;  %3583 = vmatprep.subr.msk.bf16.mxu1 %vm4921_vm8, %v6000_v37  ;;  %v4318_v17 = vpop.permute.xlu1 %4317  ;;  %v6003_v45 = vunpack.i.l.bf16 %v5544_v15  ;;  %v6006_v57 = vpack.c.bf16 %v5452_v63, %v5443_v9  ;;  %v4104_v50 = vunpack.i.l.bf16 %v5348_v12  ;;  %v1967_v0 = vsel %vm379_vm11, %v4244_v8, %v4245_v42 }
 0x31c   :  { %v4315_v41 = vunpack.i.h.bf16 %v4313_v29  ;;  %v4314_v62 = vunpack.i.l.bf16 %v4313_v29  ;;  %v4320_v34 = vunpack.i.h.bf16 %v4318_v17  ;;  %v4319_v6 = vunpack.i.l.bf16 %v4318_v17 }
 0x31d   :  { %v3591_v26 = vpack.c.bf16 %v2496_v16, %v2494_v48  ;;  %v4250_v56 = vunpack.i.h.bf16 %v5608_v11  ;;  %v4249_v21 = vunpack.i.l.bf16 %v5608_v11  ;;  %v1968_v4 = vsel %vm379_vm11, %v4105_v61, %v4294_v58 }
 0x31e   :  { %v5674_v43 = vsel %vm557_vm13, %v4315_v41, %v6001_v28  ;;  %v5679_v53 = vsel %vm557_vm13, %v4314_v62, %v6002_v33  ;;  %v5684_v52 = vsel %vm557_vm13, %v4320_v34, %v6003_v45  ;;  %v5689_v35 = vsel %vm557_vm13, %v4319_v6, %v6004_v1  ;;  %3520 = vmatpush1.bf16.msk.msra.mxu0 %vm4943_vm10, %v3519_v59  ;;  %v6013_v33 = vld [vmem:[#allocation16_spill] sm:$0xff] }
 0x31f   :  { %v3549_v22 = vpack.c.bf16 %v5674_v43, %v5679_v53  ;;  %v3621_v15 = vpack.c.bf16 %v5684_v52, %v5689_v35  ;;  %v5699_v24 = vpop.permute.xlu0 %4322  ;;  %3586 = vmatpush1.bf16.msk.msra.mxu1 %vm4943_vm10, %v6005_v2  ;;  %3523 = vmatprep.subr.msk.bf16.mxu0 %vm4829_vm3, %v6006_v57  ;;  %v5711_v49 = vpop.permute.xlu1 %4327  ;;  %v3528_v9 = vpack.c.bf16 %v1969_v5, %v1967_v0  ;;  %v4110_v58 = vunpack.i.h.bf16 %v5350_v13  ;;  %v6010_v5 = vld [vmem:[#allocation19_spill] sm:$0xff]  ;;  %v6015_v0 = vld [vmem:[#allocation26_spill] sm:$0xff] }
 0x320   :  { %3589 = vmatprep.subr.msk.bf16.mxu1 %vm4921_vm8, %v3588_v27  ;;  %v6007_v63 = vpack.c.bf16 %v5449_v38, %v5424_v39  ;;  %v1966_v12 = vsel %vm379_vm11, %v4104_v50, %v4244_v8  ;;  %v2577_v59 = vsel %vm379_vm11, %v4299_v18, %v4300_v46  ;;  %v6008_v38 = vpack.c.bf16 %v5474_v44, %v5464_v55  ;;  %v6014_v50 = vld [vmem:[#allocation27_spill] sm:$0xff] }
 0x321   :  { %v3531_v39 = vpack.c.bf16 %v1968_v4, %v1966_v12  ;;  %v2575_v61 = vsel %vm379_vm11, %v4249_v21, %v4250_v56  ;;  %v4109_v8 = vunpack.i.l.bf16 %v5350_v13  ;;  %v2576_v29 = vsel %vm379_vm11, %v4110_v58, %v4299_v18  ;;  %v6020_v12 = vld [vmem:[#allocation20_spill] sm:$0xff] }
 0x322   :  { %3526 = vmatpush1.bf16.msk.msra.mxu0 %vm4841_vm4, %v6007_v63  ;;  %v3600_v37 = vpack.c.bf16 %v2577_v59, %v2575_v61  ;;  %v6009_v41 = vpack.c.bf16 %v5471_v14, %v5446_v19  ;;  %v4305_v62 = vunpack.i.h.bf16 %v5618_v25  ;;  %v4304_v34 = vunpack.i.l.bf16 %v5618_v25 }
 0x323   :  { %v5727_v42 = vpop.permute.xlu0 %4332  ;;  %3592 = vmatpush1.bf16.msk.msra.mxu1 %vm4943_vm10, %v3591_v26  ;;  %3529 = vmatprep.subr.msk.bf16.mxu0 %vm4829_vm3, %v3528_v9  ;;  %v5733_v11 = vpop.permute.xlu1 %4337  ;;  %v2574_v13 = vsel %vm379_vm11, %v4109_v8, %v4249_v21  ;;  %v4255_v19 = vunpack.i.h.bf16 %v5612_v60  ;;  %v4254_v6 = vunpack.i.l.bf16 %v5612_v60  ;;  %v4265_v48 = vunpack.i.h.bf16 %v5620_v32  ;;  %v6011_v60 = vld [vmem:[#allocation17_spill] sm:$0xff]  ;;  %v6017_v21 = vld [vmem:[#allocation15_spill] sm:$0xff] }
 0x324   :  { %3595 = vmatprep.subr.msk.bf16.mxu1 %vm4829_vm3, %v6008_v38  ;;  %v3603_v55 = vpack.c.bf16 %v2576_v29, %v2574_v13  ;;  %v4264_v25 = vunpack.i.l.bf16 %v5620_v32  ;;  %v4310_v16 = vunpack.i.h.bf16 %v5622_v3  ;;  %v6012_v28 = vpack.c.bf16 %v6010_v5, %v6011_v60 }
 0x325   :  { %v2063_v32 = vsel %vm476_vm12, %v4254_v6, %v4255_v19  ;;  %v4325_v46 = vunpack.i.h.bf16 %v5699_v24  ;;  %v4324_v18 = vunpack.i.l.bf16 %v5699_v24  ;;  %v4330_v2 = vunpack.i.h.bf16 %v5711_v49  ;;  %v6018_v24 = vld [vmem:[#allocation29_spill] sm:$0xff] }
 0x326   :  { %3532 = vmatpush1.bf16.msk.msra.mxu0 %vm4841_vm4, %v3531_v39  ;;  %v2062_v1 = vsel %vm476_vm12, %v4264_v25, %v4254_v6  ;;  %v4329_v57 = vunpack.i.l.bf16 %v5711_v49  ;;  %v6016_v26 = vpack.c.bf16 %v6014_v50, %v6015_v0  ;;  %v4270_v9 = vunpack.i.h.bf16 %v6018_v24  ;;  %v6019_v49 = vld [vmem:[#allocation22_spill] sm:$0xff]  ;;  %v6025_v25 = vld [vmem:[#allocation24_spill] sm:$0xff] }
 0x327   :  { %v5746_v17 = vpop.permute.xlu0 %4342  ;;  %3598 = vmatpush1.bf16.msk.msra.mxu1 %vm4841_vm4, %v6009_v41  ;;  %3038 = vmatprep.subr.bf16.mxu0 %v5186_v31  ;;  %v5754_v44 = vpop.permute.xlu1 %4347  ;;  %v6021_v59 = vpack.c.bf16 %v6019_v49, %v6020_v12  ;;  %v4269_v58 = vunpack.i.l.bf16 %v6018_v24  ;;  %v4335_v13 = vunpack.i.h.bf16 %v5727_v42  ;;  %v6023_v6 = vld [vmem:[#allocation18_spill] sm:$0xff] }
 0x328   :  { %3601 = vmatprep.subr.msk.bf16.mxu1 %vm4829_vm3, %v3600_v37  ;;  %v4345_v38 = vunpack.i.h.bf16 %v5746_v17  ;;  %v4344_v61 = vunpack.i.l.bf16 %v5746_v17  ;;  %v2143_v37 = vsel %vm557_vm13, %v4324_v18, %v4325_v46  ;;  %v2145_v41 = vsel %vm557_vm13, %v4329_v57, %v4330_v2  ;;  %v6022_v17 = vld [vmem:[#allocation21_spill] sm:$0xff] }
 0x329   :  { %v3552_v5 = vpack.c.bf16 %v2145_v41, %v2143_v37  ;;  %v4419_v24 = vld [vmem:[#allocation10] ss:$12 sps:$4 sm:$0xff]  }
 0x32a   :  { %3039 = vmatpush1.bf16.msra.mxu0 %v5182_v40  ;;  %v2065_v40 = vsel %vm476_vm12, %v4304_v34, %v4305_v62  ;;  %v4340_v62 = vunpack.i.h.bf16 %v5733_v11  ;;  %v2142_v60 = vsel %vm557_vm13, %v4344_v61, %v4324_v18 }
 0x32b   :  { %v5762_v14 = vpop.permute.xlu0 %2196  ;;  %3604 = vmatpush1.bf16.msk.msra.mxu1 %vm4841_vm4, %v3603_v55  ;;  %3040 = vmatprep.subr.bf16.mxu0 %v5204_v36  ;;  %v5767_v31 = vpop.permute.xlu1 %2198  ;;  %v4309_v36 = vunpack.i.l.bf16 %v5622_v3  ;;  %v4259_v3 = vunpack.i.l.bf16 %v5616_v20  ;;  %v3540_v45 = vpack.c.bf16 %v2065_v40, %v2063_v32  ;;  %v4334_v55 = vunpack.i.l.bf16 %v5727_v42  ;;  %v6026_v40 = vld [vmem:[#allocation23_spill] sm:$0xff] }
 0x32c   :  { %3144 = vmatprep.subr.bf16.mxu1 %v5190_v54  ;;  %v4350_v32 = vunpack.i.h.bf16 %v5754_v44  ;;  %v2207_v2 = vsel %vm626_vm14, %v5762_v14, %v5767_v31 }
 0x32d   :  { %v2672_v8 = vsel %vm476_vm12, %v4270_v9, %v4309_v36 }
 0x32e   :  { %3041 = vmatpush1.bf16.msra.mxu0 %v5201_v30  ;;  %v4260_v30 = vunpack.i.h.bf16 %v5616_v20  ;;  %v2673_v20 = vsel %vm476_vm12, %v4309_v36, %v4310_v16  ;;  %v6027_v16 = vpack.c.bf16 %v6025_v25, %v6026_v40  ;;  %v2670_v36 = vsel %vm476_vm12, %v4269_v58, %v4259_v3 }
 0x32f   :  { %v5778_v27 = vpop.permute.xlu0 %2804  ;;  %3145 = vmatpush1.bf16.msra.mxu1 %v5188_v51  ;;  %3535 = vmatprep.subr.msk.bf16.mxu0 %vm4921_vm8, %v6012_v28  ;;  %v5786_v54 = vpop.permute.xlu1 %2806  ;;  %v2064_v51 = vsel %vm476_vm12, %v4265_v48, %v4304_v34  ;;  %v4339_v34 = vunpack.i.l.bf16 %v5733_v11  ;;  %v6024_v48 = vpack.c.bf16 %v6022_v17, %v6023_v6  ;;  %v3615_v11 = vpack.c.bf16 %v2672_v8, %v2670_v36 }
 0x330   :  { %3146 = vmatprep.subr.bf16.mxu1 %v6013_v33  ;;  %v3543_v63 = vpack.c.bf16 %v2064_v51, %v2062_v1  ;;  %v2671_v39 = vsel %vm476_vm12, %v4259_v3, %v4260_v30  ;;  %v2144_v28 = vsel %vm557_vm13, %v4345_v38, %v4329_v57  ;;  %v4349_v30 = vunpack.i.l.bf16 %v5754_v44  ;;  %v6028_v44 = vld [vmem:[#allocation28_spill] sm:$0xff]  ;;  %v6029_v51 = vld [vmem:[#allocation25_spill] sm:$0xff] }
 0x331   :  { %v3612_v29 = vpack.c.bf16 %v2673_v20, %v2671_v39  ;;  %v2751_v33 = vsel %vm557_vm13, %v4334_v55, %v4335_v13  ;;  %v2753_v3 = vsel %vm557_vm13, %v4339_v34, %v4340_v62  ;;  %v3555_v1 = vpack.c.bf16 %v2144_v28, %v2142_v60 }
 0x332   :  { %3538 = vmatpush1.bf16.msk.msra.mxu0 %vm4943_vm10, %v6016_v26  ;;  %v6030_v46 = vpack.c.bf16 %v6028_v44, %v6029_v51  ;;  %v3624_v53 = vpack.c.bf16 %v2753_v3, %v2751_v33  ;;  %v2752_v18 = vsel %vm557_vm13, %v4350_v32, %v4339_v34  ;;  %v2815_v52 = vsel %vm626_vm14, %v5778_v27, %v5786_v54 }
 0x333   :  { %v2195_v56 = vpop.permute.xlu0 %2194  ;;  %3147 = vmatpush1.bf16.msra.mxu1 %v6017_v21  ;;  %3541 = vmatprep.subr.msk.bf16.mxu0 %vm4921_vm8, %v3540_v45  ;;  %v5807_v4 = vpop.permute.xlu1 %2802 }
 0x334   :  { %3607 = vmatprep.subr.msk.bf16.mxu1 %vm4921_vm8, %v6021_v59  ;;  %v2206_v26 = vsel %vm626_vm14, %v2195_v56, %v5762_v14  ;;  %v2814_v9 = vsel %vm626_vm14, %v5807_v4, %v5778_v27 }
 0x336   :  { %3544 = vmatpush1.bf16.msk.msra.mxu0 %vm4943_vm10, %v3543_v63 }
 0x337   :  { %v2201_v19 = vpop.permute.xlu0 %2200  ;;  %3610 = vmatpush1.bf16.msk.msra.mxu1 %vm4943_vm10, %v6024_v48  ;;  %3547 = vmatprep.subr.msk.bf16.mxu0 %vm4829_vm3, %v6027_v16  ;;  %v4424_v48 = vld [vmem:[#allocation10 + $0x18] ss:$12 sps:$4 sm:$0xff]  }
 0x338   :  { %3613 = vmatprep.subr.msk.bf16.mxu1 %vm4921_vm8, %v3612_v29  ;;  %v2205_v42 = vpop.permute.xlu1 %2204 }
 0x33a   :  { %3550 = vmatpush1.bf16.msk.msra.mxu0 %vm4841_vm4, %v3549_v22  ;;  %v2750_v22 = vsel %vm557_vm13, %v4349_v30, %v4334_v55 }
 0x33b   :  { %v5852_v45 = vpop.permute.xlu0 %4352  ;;  %3616 = vmatpush1.bf16.msk.msra.mxu1 %vm4943_vm10, %v3615_v11  ;;  %3553 = vmatprep.subr.msk.bf16.mxu0 %vm4829_vm3, %v3552_v5  ;;  %v3627_v0 = vpack.c.bf16 %v2752_v18, %v2750_v22 }
 0x33c   :  { %3619 = vmatprep.subr.msk.bf16.mxu1 %vm4829_vm3, %v6030_v46  ;;  %v2813_v43 = vpop.permute.xlu1 %2812  ;;  %v4355_v20 = vunpack.i.h.bf16 %v5852_v45  ;;  %v4354_v31 = vunpack.i.l.bf16 %v5852_v45  ;;  %v6031_v45 = vmov 0  }
 0x33e   :  { %3556 = vmatpush1.bf16.msk.msra.mxu0 %vm4841_vm4, %v3555_v1  ;;  %v2267_v63 = vsel %vm687_vm15, %v4354_v31, %v4355_v20 }
 0x33f   :  { %v4363_v57 = vpop.permute.xlu0 %4362  ;;  %3622 = vmatpush1.bf16.msk.msra.mxu1 %vm4841_vm4, %v3621_v15  ;;  %3050 = vmatprep.subr.bf16.mxu0 %v2207_v2 }
 0x340   :  { %v2809_v50 = vpop.permute.xlu1 %2808  ;;  %3625 = vmatprep.subr.msk.bf16.mxu1 %vm4829_vm3, %v3624_v53  ;;  %v4365_v49 = vunpack.i.h.bf16 %v4363_v57  ;;  %v4364_v54 = vunpack.i.l.bf16 %v4363_v57 }
 0x342   :  { %3051 = vmatpush1.bf16.msra.mxu0 %v2206_v26  ;;  %v2875_v4 = vsel %vm687_vm15, %v4364_v54, %v4365_v49  ;;  %v3252_v49 = vld [vmem:[#allocation5 + $0x10] sm:$0xff] }
 0x343   :  { %v2203_v21 = vpop.permute.xlu0 %2202  ;;  %3628 = vmatpush1.bf16.msk.msra.mxu1 %vm4841_vm4, %v3627_v0 }
 0x344   :  { %v4358_v35 = vpop.permute.xlu1 %4357  ;;  %3156 = vmatprep.subr.bf16.mxu1 %v2815_v52  ;;  %v2209_v10 = vsel %vm626_vm14, %v2203_v21, %v2205_v42  ;;  %v2208_v15 = vsel %vm626_vm14, %v2201_v19, %v2203_v21 }
 0x345   :  { %v4360_v14 = vunpack.i.h.bf16 %v4358_v35  ;;  %v4359_v56 = vunpack.i.l.bf16 %v4358_v35  ;;  %3052 = vmatprep.subr.bf16.mxu0 %v2209_v10 }
 0x346   :  { %3053 = vmatpush1.bf16.msra.mxu0 %v2208_v15 }
 0x347   :  { %v2269_v12 = vsel %vm687_vm15, %v4359_v56, %v4360_v14  ;;  %v2811_v59 = vpop.permute.xlu0 %2810  ;;  %3157 = vmatpush1.bf16.msra.mxu1 %v2814_v9  ;;  %v3251_v9 = vld [vmem:[#allocation5 + $0x8] sm:$0xff] }
 0x348   :  { %v3558_v58 = vpack.c.bf16 %v2269_v12, %v2267_v63  ;;  %v4368_v39 = vpop.permute.xlu1 %4367  ;;  %v2817_v38 = vsel %vm626_vm14, %v2811_v59, %v2813_v43  ;;  %v2816_v27 = vsel %vm626_vm14, %v2809_v50, %v2811_v59 }
 0x349   :  { %v4370_v61 = vunpack.i.h.bf16 %v4368_v39  ;;  %v4369_v8 = vunpack.i.l.bf16 %v4368_v39  ;;  %3158 = vmatprep.subr.bf16.mxu1 %v2817_v38  ;;  %3055 = vmatmul.mubr.bf16.vlgmr.msra.gmra.mrb[8].mxu0 %v4419_v24  ;;  %v3284_v39 = vld [vmem:[#allocation5 + $0x50] sm:$0xff] }
 0x34a   :  { %3559 = vmatprep.subr.msk.bf16.mxu0 %vm4921_vm8, %v3558_v58  ;;  %3064 = vmatprep.mubr.bf16.mxu0 %v4422_v23  ;;  %v3253_v58 = vld [vmem:[#allocation5 + $0x18] sm:$0xff] }
 0x34b   :  { %v2877_v29 = vsel %vm687_vm15, %v4369_v8, %v4370_v61  ;;  %v4373_v37 = vpop.permute.xlu0 %4372  ;;  %3159 = vmatpush1.bf16.msra.mxu1 %v2816_v27 }
 0x34c   :  { %v3630_v41 = vpack.c.bf16 %v2877_v29, %v2875_v4  ;;  %v4375_v13 = vunpack.i.h.bf16 %v4373_v37  ;;  %v4374_v55 = vunpack.i.l.bf16 %v4373_v37  ;;  %v4378_v62 = vpop.permute.xlu1 %4377  ;;  %v3285_v4 = vld [vmem:[#allocation5 + $0x58] sm:$0xff] }
 0x34d   :  { %v4380_v34 = vunpack.i.h.bf16 %v4378_v62  ;;  %v4379_v19 = vunpack.i.l.bf16 %v4378_v62 }
 0x34e   :  { %v2266_v17 = vsel %vm687_vm15, %v4374_v55, %v4354_v31  ;;  %v2268_v6 = vsel %vm687_vm15, %v4375_v13, %v4359_v56  ;;  %3631 = vmatprep.subr.msk.bf16.mxu1 %vm4921_vm8, %v3630_v41  ;;  %3161 = vmatmul.mubr.bf16.vlgmr.msra.gmra.mrb[8].mxu1 %v4419_v24  ;;  %v4425_v56 = vld [vmem:[#allocation10 + $0x8] ss:$12 sps:$4 sm:$0xff]  }
 0x34f   :  { %v3561_v25 = vpack.c.bf16 %v2268_v6, %v2266_v17  ;;  %v2874_v40 = vsel %vm687_vm15, %v4379_v19, %v4364_v54  ;;  %v2876_v16 = vsel %vm687_vm15, %v4380_v34, %v4369_v8  ;;  %v4383_v36 = vpop.permute.xlu0 %4382  ;;  %3170 = vmatprep.mubr.bf16.mxu1 %v4422_v23  ;;  %v3250_v24 = vld [vmem:[#allocation5] sm:$0xff]  ;;  %v3255_v6 = vld [vmem:[#allocation5 + $0x28] sm:$0xff] }
 0x350   :  { %v3633_v42 = vpack.c.bf16 %v2876_v16, %v2874_v40  ;;  %v4385_v11 = vunpack.i.h.bf16 %v4383_v36  ;;  %v4384_v5 = vunpack.i.l.bf16 %v4383_v36  ;;  %v4388_v60 = vpop.permute.xlu1 %4387  ;;  %v3282_v23 = vld [vmem:[#allocation5 + $0x40] sm:$0xff]  ;;  %v3256_v40 = vld [vmem:[#allocation5 + $0x30] sm:$0xff]  ;;  %v3287_v16 = vld [vmem:[#allocation5 + $0x68] sm:$0xff] }
 0x351   :  { %v4390_v28 = vunpack.i.h.bf16 %v4388_v60  ;;  %v4389_v32 = vunpack.i.l.bf16 %v4388_v60  ;;  %3562 = vmatpush1.bf16.msk.msra.mxu0 %vm4943_vm10, %v3561_v25  ;;  %v3254_v17 = vld [vmem:[#allocation5 + $0x20] sm:$0xff]  ;;  %v3288_v60 = vld [vmem:[#allocation5 + $0x70] sm:$0xff] }
 0x352   :  { %v2271_v30 = vsel %vm687_vm15, %v4384_v5, %v4385_v11  ;;  %3634 = vmatpush1.bf16.msk.msra.mxu1 %vm4943_vm10, %v3633_v42  ;;  %3065 = vmatmul.mubr.bf16.gmra.mrb[12].mxu0 %v4424_v48 }
 0x353   :  { %v2273_v33 = vsel %vm687_vm15, %v4389_v32, %v4390_v28  ;;  %v4393_v3 = vpop.permute.xlu0 %4392  ;;  %3107 = vmatprep.mubr.bf16.mxu0 %v6031_v45 }
 0x354   :  { %v3564_v1 = vpack.c.bf16 %v2273_v33, %v2271_v30  ;;  %v4395_v44 = vunpack.i.h.bf16 %v4393_v3  ;;  %v4394_v51 = vunpack.i.l.bf16 %v4393_v3  ;;  %v4398_v46 = vpop.permute.xlu1 %4397  ;;  %v3289_v3 = vld [vmem:[#allocation5 + $0x78] sm:$0xff] }
 0x355   :  { %v4400_v43 = vunpack.i.h.bf16 %v4398_v46  ;;  %v4399_v53 = vunpack.i.l.bf16 %v4398_v46 }
 0x356   :  { %v2879_v22 = vsel %vm687_vm15, %v4394_v51, %v4395_v44  ;;  %3565 = vmatprep.subr.msk.bf16.mxu0 %vm4921_vm8, %v3564_v1  ;;  %3171 = vmatmul.mubr.bf16.gmra.mrb[12].mxu1 %v4424_v48  ;;  %v3286_v48 = vld [vmem:[#allocation5 + $0x60] sm:$0xff] }
 0x357   :  { %v2881_v18 = vsel %vm687_vm15, %v4399_v53, %v4400_v43  ;;  %v4403_v2 = vpop.permute.xlu0 %4402  ;;  %3213 = vmatprep.mubr.bf16.mxu1 %v6031_v45 }
 0x358   :  { %v3636_v57 = vpack.c.bf16 %v2881_v18, %v2879_v22  ;;  %v4405_v50 = vunpack.i.h.bf16 %v4403_v2  ;;  %v4404_v0 = vunpack.i.l.bf16 %v4403_v2  ;;  %v4408_v26 = vpop.permute.xlu1 %4407 }
 0x359   :  { %v4410_v20 = vunpack.i.h.bf16 %v4408_v26  ;;  %v4409_v31 = vunpack.i.l.bf16 %v4408_v26 }
 0x35a   :  { %v2270_v21 = vsel %vm687_vm15, %v4404_v0, %v4384_v5  ;;  %v2272_v52 = vsel %vm687_vm15, %v4405_v50, %v4389_v32  ;;  %3637 = vmatprep.subr.msk.bf16.mxu1 %vm4921_vm8, %v3636_v57  ;;  %v3257_v5 = vld [vmem:[#allocation5 + $0x38] sm:$0xff] }
 0x35b   :  { %v3567_v35 = vpack.c.bf16 %v2272_v52, %v2270_v21  ;;  %v2878_v10 = vsel %vm687_vm15, %v4409_v31, %v4394_v51  ;;  %v2880_v15 = vsel %vm687_vm15, %v4410_v20, %v4399_v53 }
 0x35c   :  { %v3639_v14 = vpack.c.bf16 %v2880_v15, %v2878_v10 }
 0x35d   :  { %3568 = vmatpush1.bf16.msk.msra.mxu0 %vm4943_vm10, %v3567_v35 }
 0x35e   :  { %3640 = vmatpush1.bf16.msk.msra.mxu1 %vm4943_vm10, %v3639_v14 }
 0x360   :  { %3349 = vmatmul.mubr.msk.bf16.vlgmr.msra.gmra.mrb[8].mxu0 %vm1439_vm1, %v4425_v56 }
 0x361   :  { %3351 = vmatmul.mubr.msk.bf16.vlgmr.msra.gmra.mrb[8].mxu1 %vm1439_vm1, %v4425_v56  ;;  %3117 = vmatprep.mubr.bf16.mxu0 %v6031_v45 }
 0x362   :  { %3223 = vmatprep.mubr.bf16.mxu1 %v6031_v45 }
 0x368   :  { %3350 = vmatmul.mubr.msk.bf16.gmra.mrb[12].mxu0 %vm1439_vm1, %v4426_v7 }
 0x369   :  { %3352 = vmatmul.mubr.msk.bf16.gmra.mrb[12].mxu1 %vm1439_vm1, %v4426_v7 }
 0x433   :  { %v3109_v63 = vpop.f32.mrb[8].mxu0 }
 0x434   :  { %v3266_v54 = vadd.f32 %v3250_v24, %v3109_v63  ;;  %v3111_v12 = vpop.f32.mrb[9].mxu0  ;;  %v3215_v59 = vpop.f32.mrb[8].mxu1 }
 0x435   :  { %v3267_v38 = vadd.f32 %v3251_v9, %v3111_v12  ;;  %v3298_v61 = vadd.f32 %v3282_v23, %v3215_v59  ;;  %v3113_v8 = vpop.f32.mrb[10].mxu0  ;;  %v3217_v27 = vpop.f32.mrb[9].mxu1 }
 0x436   :  { %3274 = vst [vmem:[#allocation11] sm:$0xff] %v3266_v54  ;;  %v3268_v29 = vadd.f32 %v3252_v49, %v3113_v8  ;;  %v3299_v37 = vadd.f32 %v3283_v47, %v3217_v27  ;;  %v3115_v41 = vpop.f32.mrb[11].mxu0  ;;  %v3219_v13 = vpop.f32.mrb[10].mxu1 }
 0x437   :  { %3275 = vst [vmem:[#allocation11 + $0x8] sm:$0xff] %v3267_v38  ;;  %3307 = vst [vmem:[#allocation11 + $0x40] sm:$0xff] %v3298_v61  ;;  %v3269_v55 = vadd.f32 %v3253_v58, %v3115_v41  ;;  %v3300_v62 = vadd.f32 %v3284_v39, %v3219_v13  ;;  %v3221_v34 = vpop.f32.mrb[11].mxu1 }
 0x438   :  { %3276 = vst [vmem:[#allocation11 + $0x10] sm:$0xff] %v3268_v29  ;;  %3308 = vst [vmem:[#allocation11 + $0x48] sm:$0xff] %v3299_v37  ;;  %v3301_v19 = vadd.f32 %v3285_v4, %v3221_v34 }
 0x439   :  { %3277 = vst [vmem:[#allocation11 + $0x18] sm:$0xff] %v3269_v55  ;;  %3309 = vst [vmem:[#allocation11 + $0x50] sm:$0xff] %v3300_v62 }
 0x43a   :  { %3310 = vst [vmem:[#allocation11 + $0x58] sm:$0xff] %v3301_v19 }
 0x43b   :  { %v3119_v25 = vpop.f32.mrb[12].mxu0 }
 0x43c   :  { %v3270_v36 = vadd.f32 %v3254_v17, %v3119_v25  ;;  %v3121_v42 = vpop.f32.mrb[13].mxu0  ;;  %v3225_v11 = vpop.f32.mrb[12].mxu1 }
 0x43d   :  { %v3271_v28 = vadd.f32 %v3255_v6, %v3121_v42  ;;  %v3302_v32 = vadd.f32 %v3286_v48, %v3225_v11  ;;  %v3123_v30 = vpop.f32.mrb[14].mxu0  ;;  %v3227_v33 = vpop.f32.mrb[13].mxu1 }
 0x43e   :  { %3278 = vst [vmem:[#allocation11 + $0x20] sm:$0xff] %v3270_v36  ;;  %v3272_v45 = vadd.f32 %v3256_v40, %v3123_v30  ;;  %v3303_v1 = vadd.f32 %v3287_v16, %v3227_v33  ;;  %v3125_v44 = vpop.f32.mrb[15].mxu0  ;;  %v3229_v51 = vpop.f32.mrb[14].mxu1 }
 0x43f   :  { %3279 = vst [vmem:[#allocation11 + $0x28] sm:$0xff] %v3271_v28  ;;  %3311 = vst [vmem:[#allocation11 + $0x60] sm:$0xff] %v3302_v32  ;;  %v3273_v46 = vadd.f32 %v3257_v5, %v3125_v44  ;;  %v3304_v43 = vadd.f32 %v3288_v60, %v3229_v51  ;;  %v3231_v53 = vpop.f32.mrb[15].mxu1 }
 0x440   :  { %3280 = vst [vmem:[#allocation11 + $0x30] sm:$0xff] %v3272_v45  ;;  %3312 = vst [vmem:[#allocation11 + $0x68] sm:$0xff] %v3303_v1  ;;  %v3305_v22 = vadd.f32 %v3289_v3, %v3231_v53 }
 0x441   :  { %3281 = vst [vmem:[#allocation11 + $0x38] sm:$0xff] %v3273_v46  ;;  %3313 = vst [vmem:[#allocation11 + $0x70] sm:$0xff] %v3304_v43 }
 0x442   :  { %3314 = vst [vmem:[#allocation11 + $0x78] sm:$0xff] %v3305_v22 }
 0x443   :  { %4504 = shalt.err (!%p4501_p0)
}
 0x444   :  { %s4505_s7 = scalar_lea.hbm %s5951_s3, 2048 }
 0x445   :  { %p4506_p1 = scmp.ne.s32.totalorder %s5951_s3, %s4505_s7  ;;  %p4509_p2 = scmp.lt.u32.totalorder %s4505_s7, %s5951_s3 }
 0x447   :  { %p4511_p3 = pnand %p4509_p2, %p4506_p1 }
 0x449   :  { %4514 = shalt.err (!%p4511_p3)
}
 0x44a   :  { %3326 = dma.vmem_to_hbm [thread:$0]  %s3321_s30, 2048, %s5951_s3, [#allocation7], %s4525_s1, %s4525_s1, %s4526_s9  }
 0x44b   :  { %4519 = dma.done.wait [#allocation7], 2048  }
 0x44c   :  { %4520 = vsyncadd [#allocation7], 4294965248 }
 0x44d   :  { %3330 = vsyncpa [#allocation6], 1 }
 0x44e   :  { %3331 = vsyncpa [#allocation9], 1 }
 0x44f   :  { %3332 = vsyncpa [#allocation7], 1 }

</bundles_post_ra>
